<compile_context>
chip_gen: v7x
topology: tpu7x:2x2x1
jax: 0.10.0
libtpu: 0.0.40
codegen_flags: <defaults>
</compile_context>

<pallas_src>
import math

import jax
import jax.numpy as jnp
from jax.experimental import pallas as pl
from jax.experimental.pallas import tpu as pltpu

N_NODES = 12          # in_dim = 192 = 12 nodes * 16 hidden -> 12 nodes, 2 input feats
C_IN = 2
HID = 16
IN_DIM = N_NODES * HID   # 192
C_MID = 64
C_OUT = 3 + 3 + 2 + 2    # 10
BN_EPS = 1e-5
PAD = 2                  # max dilation of the k=3 convs


# ----------------------------------------------------------------------------
# Fused kernel: GCN + BN + ReLU + self-attention + temporal conv stack
# ----------------------------------------------------------------------------
def auwgcn_kernel(x_ref, adj_ref, gw_ref, gb_ref, mqk_ref, w0v_ref, h0_ref,
                  w1_ref, h1_ref, w2_ref, h2_ref, wc_ref, o_ref, pad_ref):
    x = x_ref[0].astype(jnp.float32)                    # (T, 12, 2)
    T = x.shape[0]

    # --- GraphConvolution + folded BatchNorm1d(16) + ReLU ---------------------
    # adjacency mix first (on the 2 input channels), then the 2->16 projection as
    # a VPU outer-product sum; BN scale/shift pre-folded into gw/gb host-side.
    adjb = jnp.broadcast_to(adj_ref[...], (T, N_NODES, N_NODES))
    xm = jnp.einsum('tij,tjc->tic', adjb, x, preferred_element_type=jnp.float32)
    gw = gw_ref[...]                                    # (2, 16)
    h = xm[:, :, 0:1] * gw[0:1, :] + xm[:, :, 1:2] * gw[1:2, :] + gb_ref[...]
    h = jnp.maximum(h, 0.0)                             # (T, 12, 16)

    # --- self-attention -------------------------------------------------------
    # scores = h (Wq Wk^T / sqrt(d)) h^T with the middle matrix pre-folded (mqk);
    # the V projection is folded into the first temporal conv weights (w0v).
    mqkb = jnp.broadcast_to(mqk_ref[...], (T, HID, HID))
    tmp = jnp.einsum('tnf,tfg->tng', h, mqkb, preferred_element_type=jnp.float32)
    scores = jnp.einsum('tng,tkg->tnk', tmp, h, preferred_element_type=jnp.float32)
    m = jnp.max(scores, axis=-1, keepdims=True)
    e = jnp.exp(scores - m)
    attn = e * pl.reciprocal(jnp.sum(e, axis=-1, keepdims=True), approx=True)
    z = jnp.einsum('tqk,tkf->tqf', attn, h, preferred_element_type=jnp.float32)  # (T,12,16)

    # --- Conv1d(192->64, k=1) + folded BN + ReLU -------------------------------
    # per-node contraction (Wv and BN scale already folded in) keeps time on lanes.
    w0v = w0v_ref[...]                                  # (12, 64, 16)
    y = jnp.zeros((C_MID, T), dtype=jnp.float32)
    for node in range(N_NODES):
        y = y + jnp.einsum('of,tf->ot', w0v[node], z[:, node, :],
                           preferred_element_type=jnp.float32)
    y = jnp.maximum(y + h0_ref[...], 0.0)               # (64, T)

    # --- dilated k=3 convs via a zero-padded VMEM scratch (no T x T matmuls) ---
    pad_ref[...] = jnp.zeros_like(pad_ref)              # pads stay zero for all layers

    def conv_k3(v, w3, dil):
        # PyTorch Conv1d k=3, padding=dil, dilation=dil:
        # out[:, t] = W[:,:,0] @ v[:, t-dil] + W[:,:,1] @ v[:, t] + W[:,:,2] @ v[:, t+dil]
        pad_ref[:, PAD:PAD + T] = v
        left = pad_ref[:, PAD - dil:PAD - dil + T]       # v[:, t-dil], zero padded
        right = pad_ref[:, PAD + dil:PAD + dil + T]      # v[:, t+dil], zero padded
        return (jnp.dot(w3[1], v, preferred_element_type=jnp.float32)
                + jnp.dot(w3[0], left, preferred_element_type=jnp.float32)
                + jnp.dot(w3[2], right, preferred_element_type=jnp.float32))

    y = jnp.maximum(conv_k3(y, w1_ref[...], 1) + h1_ref[...], 0.0)   # k=3, pad=1
    y = jnp.maximum(conv_k3(y, w2_ref[...], 2) + h2_ref[...], 0.0)   # k=3, pad=2, dil=2
    out = conv_k3(y, wc_ref[...], 2)                                  # classification head
    o_ref[0] = out.astype(o_ref.dtype)


# ----------------------------------------------------------------------------
# Host-side parameter folding (eval-mode BN, Wq.Wk^T, V-projection into conv0)
# ----------------------------------------------------------------------------
def pack_params(p):
    gs = p['bn_gs'].reshape(1, HID)
    gb = p['bn_gb'].reshape(1, HID)
    gw = (p['gc_w'] * gs).astype(jnp.float32)                       # (2, 16)
    gbias = (p['gc_b'].reshape(1, HID) * gs + gb).astype(jnp.float32)

    mqk = ((p['wq'] @ p['wk'].T) * (1.0 / math.sqrt(HID))).astype(jnp.float32)

    w0_3 = p['w0'].reshape(C_MID, N_NODES, HID)                     # (64, 12, 16)
    w0v = jnp.einsum('ong,fg->onf', w0_3, p['wv'])                  # fold V projection
    w0v = (w0v * p['s0'].reshape(C_MID, 1, 1)).transpose(1, 0, 2)   # fold BN scale -> (12,64,16)

    w1 = (p['w1'] * p['s1'].reshape(1, C_MID, 1)).astype(jnp.float32)
    w2 = (p['w2'] * p['s2'].reshape(1, C_MID, 1)).astype(jnp.float32)

    return dict(adj=p['adj'].astype(jnp.float32), gw=gw, gb=gbias, mqk=mqk,
                w0v=w0v.astype(jnp.float32), h0=p['h0'], w1=w1, h1=p['h1'],
                w2=w2, h2=p['h2'], wc=p['wc'])


# ----------------------------------------------------------------------------
# Wrapper = AUwGCN.forward
# ----------------------------------------------------------------------------
def auwgcn_forward(x, p):
    b, t, n, c = x.shape
    assert n == N_NODES and c == C_IN
    kp = pack_params(p)
    full = lambda shape: pl.BlockSpec(shape, lambda *_: (0,) * len(shape))
    return pl.pallas_call(
        auwgcn_kernel,
        out_shape=jax.ShapeDtypeStruct((b, C_OUT, t), jnp.float32),
        grid=(b,),
        in_specs=[
            pl.BlockSpec((1, t, N_NODES, C_IN), lambda i: (i, 0, 0, 0)),
            full((N_NODES, N_NODES)),
            full((C_IN, HID)),
            full((1, HID)),
            full((HID, HID)),
            full((N_NODES, C_MID, HID)),
            full((C_MID, 1)),
            full((3, C_MID, C_MID)),
            full((C_MID, 1)),
            full((3, C_MID, C_MID)),
            full((C_MID, 1)),
            full((3, C_OUT, C_MID)),
        ],
        out_specs=pl.BlockSpec((1, C_OUT, t), lambda i: (i, 0, 0)),
        scratch_shapes=[pltpu.VMEM((C_MID, t + 2 * PAD), jnp.float32)],
        compiler_params=pltpu.CompilerParams(
            dimension_semantics=("parallel",),
            vmem_limit_bytes=64 * 1024 * 1024),
    )(x.astype(jnp.float32), kp['adj'], kp['gw'], kp['gb'], kp['mqk'],
      kp['w0v'], kp['h0'], kp['w1'], kp['h1'], kp['w2'], kp['h2'], kp['wc'])


# ----------------------------------------------------------------------------
# Deterministic parameter init (mirrors the PyTorch __init__ shapes)
# ----------------------------------------------------------------------------
def _bn_fold(key, C):
    kk = jax.random.split(key, 4)
    gamma = 1.0 + 0.1 * jax.random.normal(kk[0], (C,))
    beta = 0.1 * jax.random.normal(kk[1], (C,))
    mean = 0.1 * jax.random.normal(kk[2], (C,))
    var = 1.0 + 0.1 * jnp.abs(jax.random.normal(kk[3], (C,)))
    s = gamma / jnp.sqrt(var + BN_EPS)
    sh = beta - mean * s
    return s.reshape(C, 1).astype(jnp.float32), sh.reshape(C, 1).astype(jnp.float32)


def init_params(key):
    ks = jax.random.split(key, 14)
    stdv = 1.0 / math.sqrt(HID)
    gc_w = jax.random.uniform(ks[0], (C_IN, HID), jnp.float32, -stdv, stdv)
    gc_b = jax.random.uniform(ks[1], (1, HID), jnp.float32, -stdv, stdv)

    a = jnp.abs(jax.random.normal(ks[2], (N_NODES, N_NODES), jnp.float32)) + jnp.eye(N_NODES)
    adj = a / jnp.sum(a, axis=1, keepdims=True)

    g_gamma = 1.0 + 0.1 * jnp.arange(HID, dtype=jnp.float32)
    g_beta = 0.05 * jnp.arange(HID, dtype=jnp.float32)
    g_mean = 0.01 * jnp.arange(HID, dtype=jnp.float32)
    g_var = 1.0 + 0.02 * jnp.arange(HID, dtype=jnp.float32)
    g_scale = g_gamma / jnp.sqrt(g_var + BN_EPS)
    bn_gs = g_scale.reshape(1, HID)
    bn_gb = (g_beta - g_mean * g_scale).reshape(1, HID)

    wq = jax.random.uniform(ks[3], (HID, HID), jnp.float32, -stdv, stdv)
    wk = jax.random.uniform(ks[4], (HID, HID), jnp.float32, -stdv, stdv)
    wv = jax.random.uniform(ks[5], (HID, HID), jnp.float32, -stdv, stdv)

    # kaiming-normal style conv weights (deterministic), stored as (tap, out, in)
    w0 = (jax.random.normal(ks[6], (C_MID, IN_DIM)) * math.sqrt(2.0 / IN_DIM)).astype(jnp.float32)
    w1 = (jax.random.normal(ks[7], (3, C_MID, C_MID)) * math.sqrt(2.0 / (3 * C_MID))).astype(jnp.float32)
    w2 = (jax.random.normal(ks[8], (3, C_MID, C_MID)) * math.sqrt(2.0 / (3 * C_MID))).astype(jnp.float32)
    wc = (jax.random.normal(ks[9], (3, C_OUT, C_MID)) * math.sqrt(2.0 / (3 * C_MID))).astype(jnp.float32)

    s0, h0 = _bn_fold(ks[10], C_MID)
    s1, h1 = _bn_fold(ks[11], C_MID)
    s2, h2 = _bn_fold(ks[12], C_MID)

    return dict(adj=adj, gc_w=gc_w, gc_b=gc_b, bn_gs=bn_gs, bn_gb=bn_gb,
                wq=wq, wk=wk, wv=wv, w0=w0, w1=w1, w2=w2, wc=wc,
                s0=s0, h0=h0, s1=s1, h1=h1, s2=s2, h2=h2)


# ----------------------------------------------------------------------------
# Pure-JAX reference (mirrors the PyTorch forward, for correctness check)
# ----------------------------------------------------------------------------
def reference_forward(x, p):
    b, t, n, c = x.shape
    B = b * t
    xf = x.reshape(B, n, c).astype(jnp.float32)
    support = jnp.einsum('bnc,cf->bnf', xf, p['gc_w'])
    h = jnp.einsum('ij,bjf->bif', p['adj'], support) + p['gc_b']
    h = jnp.maximum(h * p['bn_gs'] + p['bn_gb'], 0.0)
    Q = jnp.einsum('bnf,fg->bng', h, p['wq'])
    K = jnp.einsum('bnf,fg->bng', h, p['wk'])
    V = jnp.einsum('bnf,fg->bng', h, p['wv'])
    sc = jnp.einsum('bqf,bkf->bqk', Q, K) / math.sqrt(HID)
    attn = jax.nn.softmax(sc, axis=-1)
    out = jnp.einsum('bqk,bkf->bqf', attn, V)
    seq = out.reshape(b, t, n * HID).transpose(0, 2, 1)

    def conv3(y, ws, dil):
        yp = jnp.pad(y, ((0, 0), (0, 0), (dil, dil)))
        return sum(jnp.einsum('oc,bct->bot', ws[k], yp[:, :, k * dil:k * dil + t])
                   for k in range(3))

    y = jnp.einsum('oc,bct->bot', p['w0'], seq)
    y = jnp.maximum(y * p['s0'][None] + p['h0'][None], 0.0)
    y = conv3(y, p['w1'], 1)
    y = jnp.maximum(y * p['s1'][None] + p['h1'][None], 0.0)
    y = conv3(y, p['w2'], 2)
    y = jnp.maximum(y * p['s2'][None] + p['h2'][None], 0.0)
    return conv3(y, p['wc'], 2)


if __name__ == "__main__":
    key = jax.random.PRNGKey(0)
    pkey, xkey = jax.random.split(key)
    params = init_params(pkey)

    b, t = 2, 8
    x = jax.random.normal(xkey, (b, t, N_NODES, C_IN), jnp.float32)

    out = jax.block_until_ready(auwgcn_forward(x, params))
    assert out.shape == (b, C_OUT, t), out.shape

    ref = reference_forward(x, params)
    err = float(jnp.max(jnp.abs(out - ref)))
    if not err < 5e-3:
        raise SystemExit(f"kernel/reference mismatch, max abs err = {err}")

    print("KERNEL_OK")
</pallas_src>

<mosaic_0001>
module attributes {stable_mosaic.version = 11 : i64} {
  func.func @auwgcn_kernel(%arg0: i32, %arg1: memref<1x8x12x2xf32, #tpu.memory_space<vmem>>, %arg2: memref<12x12xf32, #tpu.memory_space<vmem>>, %arg3: memref<2x16xf32, #tpu.memory_space<vmem>>, %arg4: memref<1x16xf32, #tpu.memory_space<vmem>>, %arg5: memref<16x16xf32, #tpu.memory_space<vmem>>, %arg6: memref<12x64x16xf32, #tpu.memory_space<vmem>>, %arg7: memref<64x1xf32, #tpu.memory_space<vmem>>, %arg8: memref<3x64x64xf32, #tpu.memory_space<vmem>>, %arg9: memref<64x1xf32, #tpu.memory_space<vmem>>, %arg10: memref<3x64x64xf32, #tpu.memory_space<vmem>>, %arg11: memref<64x1xf32, #tpu.memory_space<vmem>>, %arg12: memref<3x10x64xf32, #tpu.memory_space<vmem>>, %arg13: memref<1x10x8xf32, #tpu.memory_space<vmem>>, %arg14: memref<64x12xf32, #tpu.memory_space<vmem>>) attributes {dimension_semantics = [#tpu.dimension_semantics<parallel>], iteration_bounds = array<i64: 2>, scalar_prefetch = 0 : i64, scratch_operands = 1 : i64, tpu.core_type = #tpu.core_type<tc>, window_params = [{transform_indices = @transform_0, window_bounds = array<i64: 1, 8, 12, 2>}, {pipeline_mode = #tpu.pipeline_mode<synchronous>, transform_indices = @transform_1, window_bounds = array<i64: 12, 12>}, {pipeline_mode = #tpu.pipeline_mode<synchronous>, transform_indices = @transform_2, window_bounds = array<i64: 2, 16>}, {pipeline_mode = #tpu.pipeline_mode<synchronous>, transform_indices = @transform_3, window_bounds = array<i64: 1, 16>}, {pipeline_mode = #tpu.pipeline_mode<synchronous>, transform_indices = @transform_4, window_bounds = array<i64: 16, 16>}, {pipeline_mode = #tpu.pipeline_mode<synchronous>, transform_indices = @transform_5, window_bounds = array<i64: 12, 64, 16>}, {pipeline_mode = #tpu.pipeline_mode<synchronous>, transform_indices = @transform_6, window_bounds = array<i64: 64, 1>}, {pipeline_mode = #tpu.pipeline_mode<synchronous>, transform_indices = @transform_7, window_bounds = array<i64: 3, 64, 64>}, {pipeline_mode = #tpu.pipeline_mode<synchronous>, transform_indices = @transform_8, window_bounds = array<i64: 64, 1>}, {pipeline_mode = #tpu.pipeline_mode<synchronous>, transform_indices = @transform_9, window_bounds = array<i64: 3, 64, 64>}, {pipeline_mode = #tpu.pipeline_mode<synchronous>, transform_indices = @transform_10, window_bounds = array<i64: 64, 1>}, {pipeline_mode = #tpu.pipeline_mode<synchronous>, transform_indices = @transform_11, window_bounds = array<i64: 3, 10, 64>}, {transform_indices = @transform_12, window_bounds = array<i64: 1, 10, 8>}]} {
    %c0 = arith.constant 0 : index
    %c0_0 = arith.constant 0 : index
    %c0_1 = arith.constant 0 : index
    %c0_2 = arith.constant 0 : index
    %0 = vector.load %arg1[%c0, %c0_0, %c0_1, %c0_2] : memref<1x8x12x2xf32, #tpu.memory_space<vmem>>, vector<1x8x12x2xf32>
    %1 = vector.shape_cast %0 : vector<1x8x12x2xf32> to vector<8x12x2xf32>
    %c0_3 = arith.constant 0 : index
    %c0_4 = arith.constant 0 : index
    %2 = vector.load %arg2[%c0_3, %c0_4] : memref<12x12xf32, #tpu.memory_space<vmem>>, vector<12x12xf32>
    %3 = vector.shape_cast %2 : vector<12x12xf32> to vector<1x12x12xf32>
    %4 = vector.broadcast %3 : vector<1x12x12xf32> to vector<8x12x12xf32>
    "tpu.trace_start"() <{level = 10 : i32, message = "tij,tjc->tic"}> : () -> ()
    %cst = arith.constant dense<0.000000e+00> : vector<8x12x2xf32>
    %5 = tpu.matmul %4, %1, %cst {dimension_numbers = #tpu.dot_dimension_numbers<[2], [1], [1], [2], [0, 0, 0, 1, 1, 2], [0], [0]>} : vector<8x12x12xf32>, vector<8x12x2xf32>, vector<8x12x2xf32> -> vector<8x12x2xf32>
    "tpu.trace_stop"() : () -> ()
    %c0_5 = arith.constant 0 : index
    %c0_6 = arith.constant 0 : index
    %6 = vector.load %arg3[%c0_5, %c0_6] : memref<2x16xf32, #tpu.memory_space<vmem>>, vector<2x16xf32>
    %7 = vector.extract_strided_slice %5 {offsets = [0, 0, 0], sizes = [8, 12, 1], strides = [1, 1, 1]} : vector<8x12x2xf32> to vector<8x12x1xf32>
    %8 = vector.extract_strided_slice %6 {offsets = [0, 0], sizes = [1, 16], strides = [1, 1]} : vector<2x16xf32> to vector<1x16xf32>
    %9 = vector.shape_cast %8 : vector<1x16xf32> to vector<1x1x16xf32>
    %10 = vector.broadcast %7 : vector<8x12x1xf32> to vector<8x12x16xf32>
    %11 = vector.broadcast %9 : vector<1x1x16xf32> to vector<8x12x16xf32>
    %12 = arith.mulf %10, %11 : vector<8x12x16xf32>
    %13 = vector.extract_strided_slice %5 {offsets = [0, 0, 1], sizes = [8, 12, 1], strides = [1, 1, 1]} : vector<8x12x2xf32> to vector<8x12x1xf32>
    %14 = vector.extract_strided_slice %6 {offsets = [1, 0], sizes = [1, 16], strides = [1, 1]} : vector<2x16xf32> to vector<1x16xf32>
    %15 = vector.shape_cast %14 : vector<1x16xf32> to vector<1x1x16xf32>
    %16 = vector.broadcast %13 : vector<8x12x1xf32> to vector<8x12x16xf32>
    %17 = vector.broadcast %15 : vector<1x1x16xf32> to vector<8x12x16xf32>
    %18 = arith.mulf %16, %17 : vector<8x12x16xf32>
    %19 = arith.addf %12, %18 : vector<8x12x16xf32>
    %c0_7 = arith.constant 0 : index
    %c0_8 = arith.constant 0 : index
    %20 = vector.load %arg4[%c0_7, %c0_8] : memref<1x16xf32, #tpu.memory_space<vmem>>, vector<1x16xf32>
    %21 = vector.shape_cast %20 : vector<1x16xf32> to vector<1x1x16xf32>
    %22 = vector.broadcast %21 : vector<1x1x16xf32> to vector<8x12x16xf32>
    %23 = arith.addf %19, %22 : vector<8x12x16xf32>
    %cst_9 = arith.constant 0.000000e+00 : f32
    %24 = vector.broadcast %cst_9 : f32 to vector<8x12x16xf32>
    %25 = arith.maximumf %23, %24 : vector<8x12x16xf32>
    %c0_10 = arith.constant 0 : index
    %c0_11 = arith.constant 0 : index
    %26 = vector.load %arg5[%c0_10, %c0_11] : memref<16x16xf32, #tpu.memory_space<vmem>>, vector<16x16xf32>
    %27 = vector.shape_cast %26 : vector<16x16xf32> to vector<1x16x16xf32>
    %28 = vector.broadcast %27 : vector<1x16x16xf32> to vector<8x16x16xf32>
    "tpu.trace_start"() <{level = 10 : i32, message = "tnf,tfg->tng"}> : () -> ()
    %cst_12 = arith.constant dense<0.000000e+00> : vector<8x12x16xf32>
    %29 = tpu.matmul %25, %28, %cst_12 {dimension_numbers = #tpu.dot_dimension_numbers<[2], [1], [1], [2], [0, 0, 0, 1, 1, 2], [0], [0]>} : vector<8x12x16xf32>, vector<8x16x16xf32>, vector<8x12x16xf32> -> vector<8x12x16xf32>
    "tpu.trace_stop"() : () -> ()
    "tpu.trace_start"() <{level = 10 : i32, message = "tng,tkg->tnk"}> : () -> ()
    %cst_13 = arith.constant dense<0.000000e+00> : vector<8x12x12xf32>
    %30 = tpu.matmul %29, %25, %cst_13 {dimension_numbers = #tpu.dot_dimension_numbers<[2], [2], [1], [1], [0, 0, 0, 1, 1, 1], [0], [0]>} : vector<8x12x16xf32>, vector<8x12x16xf32>, vector<8x12x12xf32> -> vector<8x12x12xf32>
    "tpu.trace_stop"() : () -> ()
    %cst_14 = arith.constant dense<0xFF800000> : vector<8x12xf32>
    %31 = vector.multi_reduction <maximumf>, %30, %cst_14 [2] : vector<8x12x12xf32> to vector<8x12xf32>
    %32 = vector.shape_cast %31 : vector<8x12xf32> to vector<8x12x1xf32>
    %33 = vector.broadcast %32 : vector<8x12x1xf32> to vector<8x12x12xf32>
    %34 = arith.subf %30, %33 : vector<8x12x12xf32>
    %35 = math.exp %34 : vector<8x12x12xf32>
    %cst_15 = arith.constant dense<0.000000e+00> : vector<8x12xf32>
    %36 = vector.multi_reduction <add>, %35, %cst_15 [2] : vector<8x12x12xf32> to vector<8x12xf32>
    %37 = vector.shape_cast %36 : vector<8x12xf32> to vector<8x12x1xf32>
    %38 = tpu.reciprocal %37 {approx = true} : vector<8x12x1xf32> -> vector<8x12x1xf32>
    %39 = vector.broadcast %38 : vector<8x12x1xf32> to vector<8x12x12xf32>
    %40 = arith.mulf %35, %39 : vector<8x12x12xf32>
    "tpu.trace_start"() <{level = 10 : i32, message = "tqk,tkf->tqf"}> : () -> ()
    %cst_16 = arith.constant dense<0.000000e+00> : vector<8x12x16xf32>
    %41 = tpu.matmul %40, %25, %cst_16 {dimension_numbers = #tpu.dot_dimension_numbers<[2], [1], [1], [2], [0, 0, 0, 1, 1, 2], [0], [0]>} : vector<8x12x12xf32>, vector<8x12x16xf32>, vector<8x12x16xf32> -> vector<8x12x16xf32>
    "tpu.trace_stop"() : () -> ()
    %c0_17 = arith.constant 0 : index
    %c0_18 = arith.constant 0 : index
    %c0_19 = arith.constant 0 : index
    %42 = vector.load %arg6[%c0_17, %c0_18, %c0_19] : memref<12x64x16xf32, #tpu.memory_space<vmem>>, vector<12x64x16xf32>
    %cst_20 = arith.constant 0.000000e+00 : f32
    %43 = vector.broadcast %cst_20 : f32 to vector<64x8xf32>
    %44 = vector.extract_strided_slice %42 {offsets = [0, 0, 0], sizes = [1, 64, 16], strides = [1, 1, 1]} : vector<12x64x16xf32> to vector<1x64x16xf32>
    %45 = vector.shape_cast %44 : vector<1x64x16xf32> to vector<64x16xf32>
    %46 = vector.extract_strided_slice %41 {offsets = [0, 0, 0], sizes = [8, 1, 16], strides = [1, 1, 1]} : vector<8x12x16xf32> to vector<8x1x16xf32>
    %47 = vector.shape_cast %46 : vector<8x1x16xf32> to vector<8x16xf32>
    "tpu.trace_start"() <{level = 10 : i32, message = "of,tf->ot"}> : () -> ()
    %cst_21 = arith.constant dense<0.000000e+00> : vector<64x8xf32>
    %48 = tpu.matmul %45, %47, %cst_21 {dimension_numbers = #tpu.dot_dimension_numbers<[1], [1], [0], [0], [0, 0, 1, 0], [], []>} : vector<64x16xf32>, vector<8x16xf32>, vector<64x8xf32> -> vector<64x8xf32>
    "tpu.trace_stop"() : () -> ()
    %49 = arith.addf %43, %48 : vector<64x8xf32>
    %50 = vector.extract_strided_slice %42 {offsets = [1, 0, 0], sizes = [1, 64, 16], strides = [1, 1, 1]} : vector<12x64x16xf32> to vector<1x64x16xf32>
    %51 = vector.shape_cast %50 : vector<1x64x16xf32> to vector<64x16xf32>
    %52 = vector.extract_strided_slice %41 {offsets = [0, 1, 0], sizes = [8, 1, 16], strides = [1, 1, 1]} : vector<8x12x16xf32> to vector<8x1x16xf32>
    %53 = vector.shape_cast %52 : vector<8x1x16xf32> to vector<8x16xf32>
    "tpu.trace_start"() <{level = 10 : i32, message = "of,tf->ot"}> : () -> ()
    %cst_22 = arith.constant dense<0.000000e+00> : vector<64x8xf32>
    %54 = tpu.matmul %51, %53, %cst_22 {dimension_numbers = #tpu.dot_dimension_numbers<[1], [1], [0], [0], [0, 0, 1, 0], [], []>} : vector<64x16xf32>, vector<8x16xf32>, vector<64x8xf32> -> vector<64x8xf32>
    "tpu.trace_stop"() : () -> ()
    %55 = arith.addf %49, %54 : vector<64x8xf32>
    %56 = vector.extract_strided_slice %42 {offsets = [2, 0, 0], sizes = [1, 64, 16], strides = [1, 1, 1]} : vector<12x64x16xf32> to vector<1x64x16xf32>
    %57 = vector.shape_cast %56 : vector<1x64x16xf32> to vector<64x16xf32>
    %58 = vector.extract_strided_slice %41 {offsets = [0, 2, 0], sizes = [8, 1, 16], strides = [1, 1, 1]} : vector<8x12x16xf32> to vector<8x1x16xf32>
    %59 = vector.shape_cast %58 : vector<8x1x16xf32> to vector<8x16xf32>
    "tpu.trace_start"() <{level = 10 : i32, message = "of,tf->ot"}> : () -> ()
    %cst_23 = arith.constant dense<0.000000e+00> : vector<64x8xf32>
    %60 = tpu.matmul %57, %59, %cst_23 {dimension_numbers = #tpu.dot_dimension_numbers<[1], [1], [0], [0], [0, 0, 1, 0], [], []>} : vector<64x16xf32>, vector<8x16xf32>, vector<64x8xf32> -> vector<64x8xf32>
    "tpu.trace_stop"() : () -> ()
    %61 = arith.addf %55, %60 : vector<64x8xf32>
    %62 = vector.extract_strided_slice %42 {offsets = [3, 0, 0], sizes = [1, 64, 16], strides = [1, 1, 1]} : vector<12x64x16xf32> to vector<1x64x16xf32>
    %63 = vector.shape_cast %62 : vector<1x64x16xf32> to vector<64x16xf32>
    %64 = vector.extract_strided_slice %41 {offsets = [0, 3, 0], sizes = [8, 1, 16], strides = [1, 1, 1]} : vector<8x12x16xf32> to vector<8x1x16xf32>
    %65 = vector.shape_cast %64 : vector<8x1x16xf32> to vector<8x16xf32>
    "tpu.trace_start"() <{level = 10 : i32, message = "of,tf->ot"}> : () -> ()
    %cst_24 = arith.constant dense<0.000000e+00> : vector<64x8xf32>
    %66 = tpu.matmul %63, %65, %cst_24 {dimension_numbers = #tpu.dot_dimension_numbers<[1], [1], [0], [0], [0, 0, 1, 0], [], []>} : vector<64x16xf32>, vector<8x16xf32>, vector<64x8xf32> -> vector<64x8xf32>
    "tpu.trace_stop"() : () -> ()
    %67 = arith.addf %61, %66 : vector<64x8xf32>
    %68 = vector.extract_strided_slice %42 {offsets = [4, 0, 0], sizes = [1, 64, 16], strides = [1, 1, 1]} : vector<12x64x16xf32> to vector<1x64x16xf32>
    %69 = vector.shape_cast %68 : vector<1x64x16xf32> to vector<64x16xf32>
    %70 = vector.extract_strided_slice %41 {offsets = [0, 4, 0], sizes = [8, 1, 16], strides = [1, 1, 1]} : vector<8x12x16xf32> to vector<8x1x16xf32>
    %71 = vector.shape_cast %70 : vector<8x1x16xf32> to vector<8x16xf32>
    "tpu.trace_start"() <{level = 10 : i32, message = "of,tf->ot"}> : () -> ()
    %cst_25 = arith.constant dense<0.000000e+00> : vector<64x8xf32>
    %72 = tpu.matmul %69, %71, %cst_25 {dimension_numbers = #tpu.dot_dimension_numbers<[1], [1], [0], [0], [0, 0, 1, 0], [], []>} : vector<64x16xf32>, vector<8x16xf32>, vector<64x8xf32> -> vector<64x8xf32>
    "tpu.trace_stop"() : () -> ()
    %73 = arith.addf %67, %72 : vector<64x8xf32>
    %74 = vector.extract_strided_slice %42 {offsets = [5, 0, 0], sizes = [1, 64, 16], strides = [1, 1, 1]} : vector<12x64x16xf32> to vector<1x64x16xf32>
    %75 = vector.shape_cast %74 : vector<1x64x16xf32> to vector<64x16xf32>
    %76 = vector.extract_strided_slice %41 {offsets = [0, 5, 0], sizes = [8, 1, 16], strides = [1, 1, 1]} : vector<8x12x16xf32> to vector<8x1x16xf32>
    %77 = vector.shape_cast %76 : vector<8x1x16xf32> to vector<8x16xf32>
    "tpu.trace_start"() <{level = 10 : i32, message = "of,tf->ot"}> : () -> ()
    %cst_26 = arith.constant dense<0.000000e+00> : vector<64x8xf32>
    %78 = tpu.matmul %75, %77, %cst_26 {dimension_numbers = #tpu.dot_dimension_numbers<[1], [1], [0], [0], [0, 0, 1, 0], [], []>} : vector<64x16xf32>, vector<8x16xf32>, vector<64x8xf32> -> vector<64x8xf32>
    "tpu.trace_stop"() : () -> ()
    %79 = arith.addf %73, %78 : vector<64x8xf32>
    %80 = vector.extract_strided_slice %42 {offsets = [6, 0, 0], sizes = [1, 64, 16], strides = [1, 1, 1]} : vector<12x64x16xf32> to vector<1x64x16xf32>
    %81 = vector.shape_cast %80 : vector<1x64x16xf32> to vector<64x16xf32>
    %82 = vector.extract_strided_slice %41 {offsets = [0, 6, 0], sizes = [8, 1, 16], strides = [1, 1, 1]} : vector<8x12x16xf32> to vector<8x1x16xf32>
    %83 = vector.shape_cast %82 : vector<8x1x16xf32> to vector<8x16xf32>
    "tpu.trace_start"() <{level = 10 : i32, message = "of,tf->ot"}> : () -> ()
    %cst_27 = arith.constant dense<0.000000e+00> : vector<64x8xf32>
    %84 = tpu.matmul %81, %83, %cst_27 {dimension_numbers = #tpu.dot_dimension_numbers<[1], [1], [0], [0], [0, 0, 1, 0], [], []>} : vector<64x16xf32>, vector<8x16xf32>, vector<64x8xf32> -> vector<64x8xf32>
    "tpu.trace_stop"() : () -> ()
    %85 = arith.addf %79, %84 : vector<64x8xf32>
    %86 = vector.extract_strided_slice %42 {offsets = [7, 0, 0], sizes = [1, 64, 16], strides = [1, 1, 1]} : vector<12x64x16xf32> to vector<1x64x16xf32>
    %87 = vector.shape_cast %86 : vector<1x64x16xf32> to vector<64x16xf32>
    %88 = vector.extract_strided_slice %41 {offsets = [0, 7, 0], sizes = [8, 1, 16], strides = [1, 1, 1]} : vector<8x12x16xf32> to vector<8x1x16xf32>
    %89 = vector.shape_cast %88 : vector<8x1x16xf32> to vector<8x16xf32>
    "tpu.trace_start"() <{level = 10 : i32, message = "of,tf->ot"}> : () -> ()
    %cst_28 = arith.constant dense<0.000000e+00> : vector<64x8xf32>
    %90 = tpu.matmul %87, %89, %cst_28 {dimension_numbers = #tpu.dot_dimension_numbers<[1], [1], [0], [0], [0, 0, 1, 0], [], []>} : vector<64x16xf32>, vector<8x16xf32>, vector<64x8xf32> -> vector<64x8xf32>
    "tpu.trace_stop"() : () -> ()
    %91 = arith.addf %85, %90 : vector<64x8xf32>
    %92 = vector.extract_strided_slice %42 {offsets = [8, 0, 0], sizes = [1, 64, 16], strides = [1, 1, 1]} : vector<12x64x16xf32> to vector<1x64x16xf32>
    %93 = vector.shape_cast %92 : vector<1x64x16xf32> to vector<64x16xf32>
    %94 = vector.extract_strided_slice %41 {offsets = [0, 8, 0], sizes = [8, 1, 16], strides = [1, 1, 1]} : vector<8x12x16xf32> to vector<8x1x16xf32>
    %95 = vector.shape_cast %94 : vector<8x1x16xf32> to vector<8x16xf32>
    "tpu.trace_start"() <{level = 10 : i32, message = "of,tf->ot"}> : () -> ()
    %cst_29 = arith.constant dense<0.000000e+00> : vector<64x8xf32>
    %96 = tpu.matmul %93, %95, %cst_29 {dimension_numbers = #tpu.dot_dimension_numbers<[1], [1], [0], [0], [0, 0, 1, 0], [], []>} : vector<64x16xf32>, vector<8x16xf32>, vector<64x8xf32> -> vector<64x8xf32>
    "tpu.trace_stop"() : () -> ()
    %97 = arith.addf %91, %96 : vector<64x8xf32>
    %98 = vector.extract_strided_slice %42 {offsets = [9, 0, 0], sizes = [1, 64, 16], strides = [1, 1, 1]} : vector<12x64x16xf32> to vector<1x64x16xf32>
    %99 = vector.shape_cast %98 : vector<1x64x16xf32> to vector<64x16xf32>
    %100 = vector.extract_strided_slice %41 {offsets = [0, 9, 0], sizes = [8, 1, 16], strides = [1, 1, 1]} : vector<8x12x16xf32> to vector<8x1x16xf32>
    %101 = vector.shape_cast %100 : vector<8x1x16xf32> to vector<8x16xf32>
    "tpu.trace_start"() <{level = 10 : i32, message = "of,tf->ot"}> : () -> ()
    %cst_30 = arith.constant dense<0.000000e+00> : vector<64x8xf32>
    %102 = tpu.matmul %99, %101, %cst_30 {dimension_numbers = #tpu.dot_dimension_numbers<[1], [1], [0], [0], [0, 0, 1, 0], [], []>} : vector<64x16xf32>, vector<8x16xf32>, vector<64x8xf32> -> vector<64x8xf32>
    "tpu.trace_stop"() : () -> ()
    %103 = arith.addf %97, %102 : vector<64x8xf32>
    %104 = vector.extract_strided_slice %42 {offsets = [10, 0, 0], sizes = [1, 64, 16], strides = [1, 1, 1]} : vector<12x64x16xf32> to vector<1x64x16xf32>
    %105 = vector.shape_cast %104 : vector<1x64x16xf32> to vector<64x16xf32>
    %106 = vector.extract_strided_slice %41 {offsets = [0, 10, 0], sizes = [8, 1, 16], strides = [1, 1, 1]} : vector<8x12x16xf32> to vector<8x1x16xf32>
    %107 = vector.shape_cast %106 : vector<8x1x16xf32> to vector<8x16xf32>
    "tpu.trace_start"() <{level = 10 : i32, message = "of,tf->ot"}> : () -> ()
    %cst_31 = arith.constant dense<0.000000e+00> : vector<64x8xf32>
    %108 = tpu.matmul %105, %107, %cst_31 {dimension_numbers = #tpu.dot_dimension_numbers<[1], [1], [0], [0], [0, 0, 1, 0], [], []>} : vector<64x16xf32>, vector<8x16xf32>, vector<64x8xf32> -> vector<64x8xf32>
    "tpu.trace_stop"() : () -> ()
    %109 = arith.addf %103, %108 : vector<64x8xf32>
    %110 = vector.extract_strided_slice %42 {offsets = [11, 0, 0], sizes = [1, 64, 16], strides = [1, 1, 1]} : vector<12x64x16xf32> to vector<1x64x16xf32>
    %111 = vector.shape_cast %110 : vector<1x64x16xf32> to vector<64x16xf32>
    %112 = vector.extract_strided_slice %41 {offsets = [0, 11, 0], sizes = [8, 1, 16], strides = [1, 1, 1]} : vector<8x12x16xf32> to vector<8x1x16xf32>
    %113 = vector.shape_cast %112 : vector<8x1x16xf32> to vector<8x16xf32>
    "tpu.trace_start"() <{level = 10 : i32, message = "of,tf->ot"}> : () -> ()
    %cst_32 = arith.constant dense<0.000000e+00> : vector<64x8xf32>
    %114 = tpu.matmul %111, %113, %cst_32 {dimension_numbers = #tpu.dot_dimension_numbers<[1], [1], [0], [0], [0, 0, 1, 0], [], []>} : vector<64x16xf32>, vector<8x16xf32>, vector<64x8xf32> -> vector<64x8xf32>
    "tpu.trace_stop"() : () -> ()
    %115 = arith.addf %109, %114 : vector<64x8xf32>
    %c0_33 = arith.constant 0 : index
    %c0_34 = arith.constant 0 : index
    %116 = vector.load %arg7[%c0_33, %c0_34] : memref<64x1xf32, #tpu.memory_space<vmem>>, vector<64x1xf32>
    %117 = vector.broadcast %116 : vector<64x1xf32> to vector<64x8xf32>
    %118 = arith.addf %115, %117 : vector<64x8xf32>
    %cst_35 = arith.constant 0.000000e+00 : f32
    %119 = vector.broadcast %cst_35 : f32 to vector<64x8xf32>
    %120 = arith.maximumf %118, %119 : vector<64x8xf32>
    %cst_36 = arith.constant 0.000000e+00 : f32
    %121 = vector.broadcast %cst_36 : f32 to vector<64x12xf32>
    %c0_37 = arith.constant 0 : index
    %c0_38 = arith.constant 0 : index
    %122 = vector.load %arg14[%c0_37, %c0_38] : memref<64x12xf32, #tpu.memory_space<vmem>>, vector<64x12xf32>
    tpu.vector_store %arg14[%c0_37, %c0_38], %121 {strides = array<i32>} : memref<64x12xf32, #tpu.memory_space<vmem>>, vector<64x12xf32>,
    %c0_39 = arith.constant 0 : index
    %c0_40 = arith.constant 0 : index
    %c0_41 = arith.constant 0 : index
    %123 = vector.load %arg8[%c0_39, %c0_40, %c0_41] : memref<3x64x64xf32, #tpu.memory_space<vmem>>, vector<3x64x64xf32>
    %c0_42 = arith.constant 0 : index
    %c2 = arith.constant 2 : index
    %124 = vector.load %arg14[%c0_42, %c2] : memref<64x12xf32, #tpu.memory_space<vmem>>, vector<64x8xf32>
    tpu.vector_store %arg14[%c0_42, %c2], %120 {strides = array<i32>} : memref<64x12xf32, #tpu.memory_space<vmem>>, vector<64x8xf32>,
    %c0_43 = arith.constant 0 : index
    %c1 = arith.constant 1 : index
    %125 = vector.load %arg14[%c0_43, %c1] : memref<64x12xf32, #tpu.memory_space<vmem>>, vector<64x8xf32>
    %c0_44 = arith.constant 0 : index
    %c3 = arith.constant 3 : index
    %126 = vector.load %arg14[%c0_44, %c3] : memref<64x12xf32, #tpu.memory_space<vmem>>, vector<64x8xf32>
    %127 = vector.extract_strided_slice %123 {offsets = [1, 0, 0], sizes = [1, 64, 64], strides = [1, 1, 1]} : vector<3x64x64xf32> to vector<1x64x64xf32>
    %128 = vector.shape_cast %127 : vector<1x64x64xf32> to vector<64x64xf32>
    %cst_45 = arith.constant dense<0.000000e+00> : vector<64x8xf32>
    %129 = tpu.matmul %128, %120, %cst_45 {dimension_numbers = #tpu.dot_dimension_numbers<[1], [0], [0], [1], [0, 0, 1, 1], [], []>} : vector<64x64xf32>, vector<64x8xf32>, vector<64x8xf32> -> vector<64x8xf32>
    %130 = vector.extract_strided_slice %123 {offsets = [0, 0, 0], sizes = [1, 64, 64], strides = [1, 1, 1]} : vector<3x64x64xf32> to vector<1x64x64xf32>
    %131 = vector.shape_cast %130 : vector<1x64x64xf32> to vector<64x64xf32>
    %cst_46 = arith.constant dense<0.000000e+00> : vector<64x8xf32>
    %132 = tpu.matmul %131, %125, %cst_46 {dimension_numbers = #tpu.dot_dimension_numbers<[1], [0], [0], [1], [0, 0, 1, 1], [], []>} : vector<64x64xf32>, vector<64x8xf32>, vector<64x8xf32> -> vector<64x8xf32>
    %133 = arith.addf %129, %132 : vector<64x8xf32>
    %134 = vector.extract_strided_slice %123 {offsets = [2, 0, 0], sizes = [1, 64, 64], strides = [1, 1, 1]} : vector<3x64x64xf32> to vector<1x64x64xf32>
    %135 = vector.shape_cast %134 : vector<1x64x64xf32> to vector<64x64xf32>
    %cst_47 = arith.constant dense<0.000000e+00> : vector<64x8xf32>
    %136 = tpu.matmul %135, %126, %cst_47 {dimension_numbers = #tpu.dot_dimension_numbers<[1], [0], [0], [1], [0, 0, 1, 1], [], []>} : vector<64x64xf32>, vector<64x8xf32>, vector<64x8xf32> -> vector<64x8xf32>
    %137 = arith.addf %133, %136 : vector<64x8xf32>
    %c0_48 = arith.constant 0 : index
    %c0_49 = arith.constant 0 : index
    %138 = vector.load %arg9[%c0_48, %c0_49] : memref<64x1xf32, #tpu.memory_space<vmem>>, vector<64x1xf32>
    %139 = vector.broadcast %138 : vector<64x1xf32> to vector<64x8xf32>
    %140 = arith.addf %137, %139 : vector<64x8xf32>
    %cst_50 = arith.constant 0.000000e+00 : f32
    %141 = vector.broadcast %cst_50 : f32 to vector<64x8xf32>
    %142 = arith.maximumf %140, %141 : vector<64x8xf32>
    %c0_51 = arith.constant 0 : index
    %c0_52 = arith.constant 0 : index
    %c0_53 = arith.constant 0 : index
    %143 = vector.load %arg10[%c0_51, %c0_52, %c0_53] : memref<3x64x64xf32, #tpu.memory_space<vmem>>, vector<3x64x64xf32>
    %c0_54 = arith.constant 0 : index
    %c2_55 = arith.constant 2 : index
    %144 = vector.load %arg14[%c0_54, %c2_55] : memref<64x12xf32, #tpu.memory_space<vmem>>, vector<64x8xf32>
    tpu.vector_store %arg14[%c0_54, %c2_55], %142 {strides = array<i32>} : memref<64x12xf32, #tpu.memory_space<vmem>>, vector<64x8xf32>,
    %c0_56 = arith.constant 0 : index
    %c0_57 = arith.constant 0 : index
    %145 = vector.load %arg14[%c0_56, %c0_57] : memref<64x12xf32, #tpu.memory_space<vmem>>, vector<64x8xf32>
    %c0_58 = arith.constant 0 : index
    %c4 = arith.constant 4 : index
    %146 = vector.load %arg14[%c0_58, %c4] : memref<64x12xf32, #tpu.memory_space<vmem>>, vector<64x8xf32>
    %147 = vector.extract_strided_slice %143 {offsets = [1, 0, 0], sizes = [1, 64, 64], strides = [1, 1, 1]} : vector<3x64x64xf32> to vector<1x64x64xf32>
    %148 = vector.shape_cast %147 : vector<1x64x64xf32> to vector<64x64xf32>
    %cst_59 = arith.constant dense<0.000000e+00> : vector<64x8xf32>
    %149 = tpu.matmul %148, %142, %cst_59 {dimension_numbers = #tpu.dot_dimension_numbers<[1], [0], [0], [1], [0, 0, 1, 1], [], []>} : vector<64x64xf32>, vector<64x8xf32>, vector<64x8xf32> -> vector<64x8xf32>
    %150 = vector.extract_strided_slice %143 {offsets = [0, 0, 0], sizes = [1, 64, 64], strides = [1, 1, 1]} : vector<3x64x64xf32> to vector<1x64x64xf32>
    %151 = vector.shape_cast %150 : vector<1x64x64xf32> to vector<64x64xf32>
    %cst_60 = arith.constant dense<0.000000e+00> : vector<64x8xf32>
    %152 = tpu.matmul %151, %145, %cst_60 {dimension_numbers = #tpu.dot_dimension_numbers<[1], [0], [0], [1], [0, 0, 1, 1], [], []>} : vector<64x64xf32>, vector<64x8xf32>, vector<64x8xf32> -> vector<64x8xf32>
    %153 = arith.addf %149, %152 : vector<64x8xf32>
    %154 = vector.extract_strided_slice %143 {offsets = [2, 0, 0], sizes = [1, 64, 64], strides = [1, 1, 1]} : vector<3x64x64xf32> to vector<1x64x64xf32>
    %155 = vector.shape_cast %154 : vector<1x64x64xf32> to vector<64x64xf32>
    %cst_61 = arith.constant dense<0.000000e+00> : vector<64x8xf32>
    %156 = tpu.matmul %155, %146, %cst_61 {dimension_numbers = #tpu.dot_dimension_numbers<[1], [0], [0], [1], [0, 0, 1, 1], [], []>} : vector<64x64xf32>, vector<64x8xf32>, vector<64x8xf32> -> vector<64x8xf32>
    %157 = arith.addf %153, %156 : vector<64x8xf32>
    %c0_62 = arith.constant 0 : index
    %c0_63 = arith.constant 0 : index
    %158 = vector.load %arg11[%c0_62, %c0_63] : memref<64x1xf32, #tpu.memory_space<vmem>>, vector<64x1xf32>
    %159 = vector.broadcast %158 : vector<64x1xf32> to vector<64x8xf32>
    %160 = arith.addf %157, %159 : vector<64x8xf32>
    %cst_64 = arith.constant 0.000000e+00 : f32
    %161 = vector.broadcast %cst_64 : f32 to vector<64x8xf32>
    %162 = arith.maximumf %160, %161 : vector<64x8xf32>
    %c0_65 = arith.constant 0 : index
    %c0_66 = arith.constant 0 : index
    %c0_67 = arith.constant 0 : index
    %163 = vector.load %arg12[%c0_65, %c0_66, %c0_67] : memref<3x10x64xf32, #tpu.memory_space<vmem>>, vector<3x10x64xf32>
    %c0_68 = arith.constant 0 : index
    %c2_69 = arith.constant 2 : index
    %164 = vector.load %arg14[%c0_68, %c2_69] : memref<64x12xf32, #tpu.memory_space<vmem>>, vector<64x8xf32>
    tpu.vector_store %arg14[%c0_68, %c2_69], %162 {strides = array<i32>} : memref<64x12xf32, #tpu.memory_space<vmem>>, vector<64x8xf32>,
    %c0_70 = arith.constant 0 : index
    %c0_71 = arith.constant 0 : index
    %165 = vector.load %arg14[%c0_70, %c0_71] : memref<64x12xf32, #tpu.memory_space<vmem>>, vector<64x8xf32>
    %c0_72 = arith.constant 0 : index
    %c4_73 = arith.constant 4 : index
    %166 = vector.load %arg14[%c0_72, %c4_73] : memref<64x12xf32, #tpu.memory_space<vmem>>, vector<64x8xf32>
    %167 = vector.extract_strided_slice %163 {offsets = [1, 0, 0], sizes = [1, 10, 64], strides = [1, 1, 1]} : vector<3x10x64xf32> to vector<1x10x64xf32>
    %168 = vector.shape_cast %167 : vector<1x10x64xf32> to vector<10x64xf32>
    %cst_74 = arith.constant dense<0.000000e+00> : vector<10x8xf32>
    %169 = tpu.matmul %168, %162, %cst_74 {dimension_numbers = #tpu.dot_dimension_numbers<[1], [0], [0], [1], [0, 0, 1, 1], [], []>} : vector<10x64xf32>, vector<64x8xf32>, vector<10x8xf32> -> vector<10x8xf32>
    %170 = vector.extract_strided_slice %163 {offsets = [0, 0, 0], sizes = [1, 10, 64], strides = [1, 1, 1]} : vector<3x10x64xf32> to vector<1x10x64xf32>
    %171 = vector.shape_cast %170 : vector<1x10x64xf32> to vector<10x64xf32>
    %cst_75 = arith.constant dense<0.000000e+00> : vector<10x8xf32>
    %172 = tpu.matmul %171, %165, %cst_75 {dimension_numbers = #tpu.dot_dimension_numbers<[1], [0], [0], [1], [0, 0, 1, 1], [], []>} : vector<10x64xf32>, vector<64x8xf32>, vector<10x8xf32> -> vector<10x8xf32>
    %173 = arith.addf %169, %172 : vector<10x8xf32>
    %174 = vector.extract_strided_slice %163 {offsets = [2, 0, 0], sizes = [1, 10, 64], strides = [1, 1, 1]} : vector<3x10x64xf32> to vector<1x10x64xf32>
    %175 = vector.shape_cast %174 : vector<1x10x64xf32> to vector<10x64xf32>
    %cst_76 = arith.constant dense<0.000000e+00> : vector<10x8xf32>
    %176 = tpu.matmul %175, %166, %cst_76 {dimension_numbers = #tpu.dot_dimension_numbers<[1], [0], [0], [1], [0, 0, 1, 1], [], []>} : vector<10x64xf32>, vector<64x8xf32>, vector<10x8xf32> -> vector<10x8xf32>
    %177 = arith.addf %173, %176 : vector<10x8xf32>
    %c0_77 = arith.constant 0 : index
    %c0_78 = arith.constant 0 : index
    %c0_79 = arith.constant 0 : index
    %178 = vector.load %arg13[%c0_77, %c0_78, %c0_79] : memref<1x10x8xf32, #tpu.memory_space<vmem>>, vector<1x10x8xf32>
    %179 = vector.shape_cast %178 : vector<1x10x8xf32> to vector<10x8xf32>
    %180 = vector.shape_cast %177 : vector<10x8xf32> to vector<1x10x8xf32>
    tpu.vector_store %arg13[%c0_77, %c0_78, %c0_79], %180 {strides = array<i32>} : memref<1x10x8xf32, #tpu.memory_space<vmem>>, vector<1x10x8xf32>,
    return
  }
  func.func @transform_0(%arg0: i32) -> (i32, i32, i32, i32) {
    %c0_i32 = arith.constant 0 : i32
    %c0_i32_0 = arith.constant 0 : i32
    %c0_i32_1 = arith.constant 0 : i32
    %c0_i32_2 = arith.constant 0 : i32
    return %arg0, %c0_i32, %c0_i32_0, %c0_i32_1 : i32, i32, i32, i32
  }
  func.func @transform_1(%arg0: i32) -> (i32, i32) {
    %c0_i32 = arith.constant 0 : i32
    %c0_i32_0 = arith.constant 0 : i32
    %c0_i32_1 = arith.constant 0 : i32
    return %c0_i32, %c0_i32_0 : i32, i32
  }
  func.func @transform_2(%arg0: i32) -> (i32, i32) {
    %c0_i32 = arith.constant 0 : i32
    %c0_i32_0 = arith.constant 0 : i32
    %c0_i32_1 = arith.constant 0 : i32
    return %c0_i32, %c0_i32_0 : i32, i32
  }
  func.func @transform_3(%arg0: i32) -> (i32, i32) {
    %c0_i32 = arith.constant 0 : i32
    %c0_i32_0 = arith.constant 0 : i32
    %c0_i32_1 = arith.constant 0 : i32
    return %c0_i32, %c0_i32_0 : i32, i32
  }
  func.func @transform_4(%arg0: i32) -> (i32, i32) {
    %c0_i32 = arith.constant 0 : i32
    %c0_i32_0 = arith.constant 0 : i32
    %c0_i32_1 = arith.constant 0 : i32
    return %c0_i32, %c0_i32_0 : i32, i32
  }
  func.func @transform_5(%arg0: i32) -> (i32, i32, i32) {
    %c0_i32 = arith.constant 0 : i32
    %c0_i32_0 = arith.constant 0 : i32
    %c0_i32_1 = arith.constant 0 : i32
    %c0_i32_2 = arith.constant 0 : i32
    return %c0_i32, %c0_i32_0, %c0_i32_1 : i32, i32, i32
  }
  func.func @transform_6(%arg0: i32) -> (i32, i32) {
    %c0_i32 = arith.constant 0 : i32
    %c0_i32_0 = arith.constant 0 : i32
    %c0_i32_1 = arith.constant 0 : i32
    return %c0_i32, %c0_i32_0 : i32, i32
  }
  func.func @transform_7(%arg0: i32) -> (i32, i32, i32) {
    %c0_i32 = arith.constant 0 : i32
    %c0_i32_0 = arith.constant 0 : i32
    %c0_i32_1 = arith.constant 0 : i32
    %c0_i32_2 = arith.constant 0 : i32
    return %c0_i32, %c0_i32_0, %c0_i32_1 : i32, i32, i32
  }
  func.func @transform_8(%arg0: i32) -> (i32, i32) {
    %c0_i32 = arith.constant 0 : i32
    %c0_i32_0 = arith.constant 0 : i32
    %c0_i32_1 = arith.constant 0 : i32
    return %c0_i32, %c0_i32_0 : i32, i32
  }
  func.func @transform_9(%arg0: i32) -> (i32, i32, i32) {
    %c0_i32 = arith.constant 0 : i32
    %c0_i32_0 = arith.constant 0 : i32
    %c0_i32_1 = arith.constant 0 : i32
    %c0_i32_2 = arith.constant 0 : i32
    return %c0_i32, %c0_i32_0, %c0_i32_1 : i32, i32, i32
  }
  func.func @transform_10(%arg0: i32) -> (i32, i32) {
    %c0_i32 = arith.constant 0 : i32
    %c0_i32_0 = arith.constant 0 : i32
    %c0_i32_1 = arith.constant 0 : i32
    return %c0_i32, %c0_i32_0 : i32, i32
  }
  func.func @transform_11(%arg0: i32) -> (i32, i32, i32) {
    %c0_i32 = arith.constant 0 : i32
    %c0_i32_0 = arith.constant 0 : i32
    %c0_i32_1 = arith.constant 0 : i32
    %c0_i32_2 = arith.constant 0 : i32
    return %c0_i32, %c0_i32_0, %c0_i32_1 : i32, i32, i32
  }
  func.func @transform_12(%arg0: i32) -> (i32, i32, i32) {
    %c0_i32 = arith.constant 0 : i32
    %c0_i32_0 = arith.constant 0 : i32
    %c0_i32_1 = arith.constant 0 : i32
    return %arg0, %c0_i32, %c0_i32_0 : i32, i32, i32
  }
}

</mosaic_0001>

<bundles_post_ra>
// kernel: tpu_custom_call.1
= control target key start
LH: loop header
LB: loop body
LE: loop exit
PB: predicated region body
PF: predicated region fallthrough
CT: control target
= control target key end

     0   :  { %s11262_s0 = inlined_call_operand.hbm [shape: f32[2,8,12,2], index: 0, kind: input, shape index: {}]   ;;  %s11263_s1 = inlined_call_operand.hbm [shape: f32[12,12], index: 1, kind: input, shape index: {}]   ;;  %s11264_s2 = inlined_call_operand.hbm [shape: f32[2,16], index: 2, kind: input, shape index: {}]   ;;  %s11265_s3 = inlined_call_operand.hbm [shape: f32[1,16], index: 3, kind: input, shape index: {}]   ;;  %s11266_s4 = inlined_call_operand.hbm [shape: f32[16,16], index: 4, kind: input, shape index: {}]   ;;  %s11267_s5 = inlined_call_operand.hbm [shape: f32[12,64,16], index: 5, kind: input, shape index: {}]   ;;  %s11268_s6 = inlined_call_operand.hbm [shape: f32[64,1], index: 6, kind: input, shape index: {}]   ;;  %s11269_s7 = inlined_call_operand.hbm [shape: f32[3,64,64], index: 7, kind: input, shape index: {}]   ;;  %s11270_s8 = inlined_call_operand.hbm [shape: f32[64,1], index: 8, kind: input, shape index: {}]   ;;  %s11271_s9 = inlined_call_operand.hbm [shape: f32[3,64,64], index: 9, kind: input, shape index: {}]   ;;  %s11272_s10 = inlined_call_operand.hbm [shape: f32[64,1], index: 10, kind: input, shape index: {}]   ;;  %s11273_s11 = inlined_call_operand.hbm [shape: f32[3,10,64], index: 11, kind: input, shape index: {}]   ;;  %s11274_s12 = inlined_call_operand.hbm [shape: f32[2,10,8], index: 12, kind: output, shape index: {}]  }
   0x1   :  { %11286 = sst [smem:[#allocation34_spill]] %s11262_s0 }
   0x2   :  { %11287 = sst [smem:[#allocation35_spill]] %s11263_s1 }
   0x3   :  { %11288 = sst [smem:[#allocation36_spill]] %s11264_s2 }
   0x4   :  { %11289 = sst [smem:[#allocation37_spill]] %s11274_s12 }
   0x5   :  { %17 = vsyncpa [#allocation4], 0 }
   0x6   :  { %19 = vsyncpa [#allocation4 + $0x1], 0 }
   0x7   :  { %20 = vsyncpa [#allocation7], 0 }
   0x8   :  { %21 = vsyncpa [#allocation10], 0 }
   0x9   :  { %22 = vsyncpa [#allocation13], 0 }
   0xa   :  { %23 = vsyncpa [#allocation16], 0 }
   0xb   :  { %24 = vsyncpa [#allocation19], 0 }
   0xc   :  { %25 = vsyncpa [#allocation22], 0 }
   0xd   :  { %26 = vsyncpa [#allocation5], 0 }
   0xe   :  { %28 = vsyncpa [#allocation5 + $0x1], 0  ;;  %s9886_s21 = smov 0   ;;  %s9888_s22 = smov 0  }
   0xf   :  { %s9890_s23 = smov 0   ;;  %s9892_s24 = smov 0  }
  0x10 LB: > { %s9796_s25 = smov [#allocation6]   ;;  %s9907_s27 = sadd.s32 4294967295, %s9794_s24   ;;  %s9794_s24 = sphi %s9892_s24, %s11332_s24   ;;  %s9790_s23 = sphi %s9890_s23, %s11331_s23   ;;  %s9786_s22 = sphi %s9888_s22, %s11330_s22   ;;  %s9782_s21 = sphi %s9886_s21, %s11329_s21  }
  0x11   : > { %s334_s26 = sshll.u32 %s9796_s25, 4  ;;  %11290 = sst [smem:[#allocation32_spill]] %s9907_s27  ;;  %s9912_s26 = int_to_ptr.vmem [resolvable:$true] %s334_s26 }
  0x12   : > { %p7309_p0 = scmp.ge.s32.totalorder %s9794_s24, 1  ;;  %p11281_p1 = scmp.eq.s32.totalorder %s9907_s27, 0 }
  0x13   : > { %p322_p2 = scmp.lt.s32.totalorder %s9794_s24, 3  ;;  %s9797_s29 = smov [#allocation9]  }
  0x14   : > { %s359_s30 = sshll.u32 %s9797_s29, 4  ;;  %s9798_s14 = smov [#allocation12]   ;;  %s9927_s30 = int_to_ptr.vmem [resolvable:$true] %s359_s30 }
  0x15   : > { %p9914_p3 = pnand %p7309_p0, %p322_p2  ;;  %s382_s15 = sshll.u32 %s9798_s14, 4  ;;  %s9929_s15 = int_to_ptr.vmem [resolvable:$true] %s382_s15 }
  0x16   : > { %s11294_s1 = sld [smem:[#allocation35_spill]] }
  0x17   : > { %s11291_s28 = scalar_select %p9914_p3, 1, 0 }
  0x18   : > { %p9076_p5 = pneg %p9914_p3 }
  0x19   : > { %11292 = sst [smem:[#allocation33_spill]] %s11291_s28 }
  0x1a   : > { %p9923_p6 = pnand %p9076_p5, %p11281_p1 }
  0x1c   : > { %s9366_s18 = scalar_lea.hbm %s11294_s1, 256  ;;  %p9939_p8 = pneg %p9923_p6 }
  0x1d   : > { %p9367_p7 = scmp.ne.s32.totalorder %s11294_s1, %s9366_s18  ;;  %p9373_p11 = scmp.lt.u32.totalorder %s9366_s18, %s11294_s1 }
  0x1f   : > { %p9369_p9 = pnand %p9939_p8, %p9367_p7 }
  0x21   : > { %p9370_p10 = pneg %p9369_p9 }
  0x23   : > { %p9375_p12 = pnand %p9373_p11, %p9370_p10 }
  0x25   : > { %9378 = shalt.err (!%p9375_p12)
}
  0x26   : > { %s9379_s16 = scalar_lea.vmem %s9912_s26, 256  ;;  %p9387_p5 = scmp.lt.s32.totalorder %s9912_s26, %s9912_s26 }
  0x27   : > { %p9380_p13 = scmp.ne.s32.totalorder %s9912_s26, %s9379_s16  ;;  %p9388_p4 = scmp.lt.s32.totalorder %s9379_s16, %s9379_s16 }
  0x29   : > { %p9382_p0 = pnand %p9380_p13, %p9939_p8  ;;  %p9389_p7 = por %p9388_p4, %p9387_p5 }
  0x2b   : > { %p9383_p2 = pneg %p9382_p0 }
  0x2d   : > { %p9390_p9 = pnand %p9389_p7, %p9383_p2 }
  0x2f   : > { %9393 = shalt.err (!%p9390_p9)
}
  0x30   : > { %s11283_s17 = smov 128   ;;  %s11284_s18 = smov 8  }
  0x31   : > { %9079 = dma.hbm_to_vmem [thread:$0]  (!%p9923_p6), %s11294_s1, 256, %s9912_s26, [#allocation7], %s11283_s17, %s11283_s17, %s11284_s18  }
  0x32   : > { %s9394_s16 = scalar_lea.hbm %s11265_s3, 16 }
  0x33   : > { %p9395_p4 = scmp.ne.s32.totalorder %s11265_s3, %s9394_s16  ;;  %p9401_p12 = scmp.lt.u32.totalorder %s9394_s16, %s11265_s3 }
  0x35   : > { %p9397_p10 = pnand %p9395_p4, %p9939_p8 }
  0x37   : > { %p9398_p11 = pneg %p9397_p10 }
  0x39   : > { %p9403_p13 = pnand %p9401_p12, %p9398_p11 }
  0x3b   : > { %9406 = shalt.err (!%p9403_p13)
}
  0x3c   : > { %s9407_s26 = scalar_lea.vmem %s9927_s30, 16  ;;  %s9414_s12 = scalar_lea.vmem %s9927_s30, 32 }
  0x3d   : > { %p9408_p0 = scmp.ne.s32.totalorder %s9927_s30, %s9407_s26  ;;  %p9415_p7 = scmp.lt.s32.totalorder %s9927_s30, %s9927_s30 }
  0x3e   : > { %p9416_p9 = scmp.lt.s32.totalorder %s9414_s12, %s9407_s26 }
  0x3f   : > { %p9410_p2 = pnand %p9408_p0, %p9939_p8 }
  0x40   : > { %p9417_p4 = por %p9416_p9, %p9415_p7 }
  0x41   : > { %p9411_p5 = pneg %p9410_p2 }
  0x43   : > { %p9418_p10 = pnand %p9417_p4, %p9411_p5 }
  0x45   : > { %9421 = shalt.err (!%p9418_p10)
}
  0x46   : > { %9085 = dma.hbm_to_vmem [thread:$0]  (!%p9923_p6), %s11265_s3, 16, %s9927_s30, [#allocation10]  }
  0x47   : > { %s9422_s20 = scalar_lea.hbm %s11267_s5, 12288 }
  0x48   : > { %p9423_p11 = scmp.ne.s32.totalorder %s11267_s5, %s9422_s20  ;;  %p9429_p0 = scmp.lt.u32.totalorder %s9422_s20, %s11267_s5 }
  0x4a   : > { %p9425_p12 = pnand %p9423_p11, %p9939_p8 }
  0x4c   : > { %p9426_p13 = pneg %p9425_p12 }
  0x4e   : > { %p9431_p2 = pnand %p9429_p0, %p9426_p13 }
  0x50   : > { %9434 = shalt.err (!%p9431_p2)
}
  0x51   : > { %s9435_s30 = scalar_lea.vmem %s9929_s15, 12288  ;;  %p9443_p4 = scmp.lt.s32.totalorder %s9929_s15, %s9929_s15 }
  0x52   : > { %p9436_p5 = scmp.ne.s32.totalorder %s9929_s15, %s9435_s30  ;;  %p9444_p10 = scmp.lt.s32.totalorder %s9435_s30, %s9435_s30 }
  0x54   : > { %p9438_p7 = pnand %p9436_p5, %p9939_p8  ;;  %p9445_p11 = por %p9444_p10, %p9443_p4 }
  0x56   : > { %p9439_p9 = pneg %p9438_p7 }
  0x58   : > { %p9446_p12 = pnand %p9445_p11, %p9439_p9 }
  0x5a   : > { %9449 = shalt.err (!%p9446_p12)
}
  0x5b   : > { %9091 = dma.hbm_to_vmem [thread:$0]  (!%p9923_p6), %s11267_s5, 12288, %s9929_s15, [#allocation13], %s11283_s17, %s11283_s17, %s11284_s18  }
  0x5c   : > { %s9801_s27 = smov [#allocation15]   ;;  %s9802_s19 = smov [#allocation18]  }
  0x5d   : > { %s408_s28 = sshll.u32 %s9801_s27, 4  ;;  %s434_s20 = sshll.u32 %s9802_s19, 4  ;;  %s409_s28 = int_to_ptr.vmem [resolvable:$true] %s408_s28  ;;  %s435_s20 = int_to_ptr.vmem [resolvable:$true] %s434_s20 }
  0x5e   : > { %s9450_s16 = scalar_lea.hbm %s11269_s7, 3072 }
  0x5f   : > { %p9451_p13 = scmp.ne.s32.totalorder %s11269_s7, %s9450_s16  ;;  %p9457_p5 = scmp.lt.u32.totalorder %s9450_s16, %s11269_s7 }
  0x61   : > { %p9453_p0 = pnand %p9451_p13, %p9939_p8 }
  0x63   : > { %p9454_p2 = pneg %p9453_p0 }
  0x65   : > { %p9459_p7 = pnand %p9457_p5, %p9454_p2 }
  0x67   : > { %9462 = shalt.err (!%p9459_p7)
}
  0x68   : > { %s9463_s15 = scalar_lea.vmem %s409_s28, 3072  ;;  %p9471_p11 = scmp.lt.s32.totalorder %s409_s28, %s409_s28 }
  0x69   : > { %p9464_p9 = scmp.ne.s32.totalorder %s409_s28, %s9463_s15  ;;  %p9472_p12 = scmp.lt.s32.totalorder %s9463_s15, %s9463_s15 }
  0x6b   : > { %p9466_p4 = pnand %p9464_p9, %p9939_p8  ;;  %p9473_p1 = por %p9472_p12, %p9471_p11 }
  0x6d   : > { %p9467_p10 = pneg %p9466_p4 }
  0x6f   : > { %p9474_p3 = pnand %p9473_p1, %p9467_p10 }
  0x71   : > { %9477 = shalt.err (!%p9474_p3)
}
  0x72   : > { %9097 = dma.hbm_to_vmem [thread:$0]  (!%p9923_p6), %s11269_s7, 3072, %s409_s28, [#allocation16], %s11283_s17, %s11283_s17, %s11284_s18  }
  0x73   : > { %s9478_s29 = scalar_lea.hbm %s11271_s9, 3072 }
  0x74   : > { %p9479_p1 = scmp.ne.s32.totalorder %s11271_s9, %s9478_s29  ;;  %p9485_p0 = scmp.lt.u32.totalorder %s9478_s29, %s11271_s9 }
  0x76   : > { %p9481_p3 = pnand %p9479_p1, %p9939_p8 }
  0x78   : > { %p9482_p13 = pneg %p9481_p3 }
  0x7a   : > { %p9487_p2 = pnand %p9485_p0, %p9482_p13 }
  0x7c   : > { %9490 = shalt.err (!%p9487_p2)
}
  0x7d   : > { %s9491_s12 = scalar_lea.vmem %s435_s20, 3072  ;;  %p9499_p4 = scmp.lt.s32.totalorder %s435_s20, %s435_s20 }
  0x7e   : > { %p9492_p5 = scmp.ne.s32.totalorder %s435_s20, %s9491_s12  ;;  %p9500_p10 = scmp.lt.s32.totalorder %s9491_s12, %s9491_s12 }
  0x80   : > { %p9494_p7 = pnand %p9492_p5, %p9939_p8  ;;  %p9501_p11 = por %p9500_p10, %p9499_p4 }
  0x82   : > { %p9495_p9 = pneg %p9494_p7 }
  0x84   : > { %p9502_p12 = pnand %p9501_p11, %p9495_p9 }
  0x86   : > { %9505 = shalt.err (!%p9502_p12)
}
  0x87   : > { %9103 = dma.hbm_to_vmem [thread:$0]  (!%p9923_p6), %s11271_s9, 3072, %s435_s20, [#allocation19], %s11283_s17, %s11283_s17, %s11284_s18  }
  0x88   : > { %s9803_s1 = smov [#allocation8]   ;;  %s9804_s27 = smov [#allocation11]  }
  0x89   : > { %s348_s0 = sshll.u32 %s9803_s1, 4  ;;  %s369_s19 = sshll.u32 %s9804_s27, 4  ;;  %s349_s0 = int_to_ptr.vmem [resolvable:$true] %s348_s0  ;;  %s370_s19 = int_to_ptr.vmem [resolvable:$true] %s369_s19 }
  0x8a   : > { %s11296_s2 = sld [smem:[#allocation36_spill]] }
  0x90   : > { %s9506_s16 = scalar_lea.hbm %s11296_s2, 32 }
  0x91   : > { %p9507_p1 = scmp.ne.s32.totalorder %s11296_s2, %s9506_s16  ;;  %p9513_p0 = scmp.lt.u32.totalorder %s9506_s16, %s11296_s2 }
  0x93   : > { %p9509_p3 = pnand %p9507_p1, %p9939_p8 }
  0x95   : > { %p9510_p13 = pneg %p9509_p3 }
  0x97   : > { %p9515_p2 = pnand %p9513_p0, %p9510_p13 }
  0x99   : > { %9518 = shalt.err (!%p9515_p2)
}
  0x9a   : > { %s9519_s20 = scalar_lea.vmem %s349_s0, 32  ;;  %p9527_p4 = scmp.lt.s32.totalorder %s349_s0, %s349_s0 }
  0x9b   : > { %p9520_p5 = scmp.ne.s32.totalorder %s349_s0, %s9519_s20  ;;  %p9528_p10 = scmp.lt.s32.totalorder %s9519_s20, %s9519_s20 }
  0x9d   : > { %p9522_p7 = pnand %p9520_p5, %p9939_p8  ;;  %p9529_p11 = por %p9528_p10, %p9527_p4 }
  0x9f   : > { %p9523_p9 = pneg %p9522_p7 }
  0xa1   : > { %p9530_p12 = pnand %p9529_p11, %p9523_p9 }
  0xa3   : > { %9533 = shalt.err (!%p9530_p12)
}
  0xa4   : > { %9082 = dma.hbm_to_vmem [thread:$0]  (!%p9923_p6), %s11296_s2, 32, %s349_s0, [#allocation7]  }
  0xa5   : > { %s9534_s14 = scalar_lea.hbm %s11266_s4, 256 }
  0xa6   : > { %p9535_p1 = scmp.ne.s32.totalorder %s11266_s4, %s9534_s14  ;;  %p9541_p0 = scmp.lt.u32.totalorder %s9534_s14, %s11266_s4 }
  0xa8   : > { %p9537_p3 = pnand %p9535_p1, %p9939_p8 }
  0xaa   : > { %p9538_p13 = pneg %p9537_p3 }
  0xac   : > { %p9543_p2 = pnand %p9541_p0, %p9538_p13 }
  0xae   : > { %9546 = shalt.err (!%p9543_p2)
}
  0xaf   : > { %s9547_s28 = scalar_lea.vmem %s370_s19, 256  ;;  %p9555_p4 = scmp.lt.s32.totalorder %s370_s19, %s370_s19 }
  0xb0   : > { %p9548_p5 = scmp.ne.s32.totalorder %s370_s19, %s9547_s28  ;;  %p9556_p10 = scmp.lt.s32.totalorder %s9547_s28, %s9547_s28 }
  0xb2   : > { %p9550_p7 = pnand %p9548_p5, %p9939_p8  ;;  %p9557_p11 = por %p9556_p10, %p9555_p4 }
  0xb4   : > { %p9551_p9 = pneg %p9550_p7 }
  0xb6   : > { %p9558_p12 = pnand %p9557_p11, %p9551_p9 }
  0xb8   : > { %9561 = shalt.err (!%p9558_p12)
}
  0xb9   : > { %9088 = dma.hbm_to_vmem [thread:$0]  (!%p9923_p6), %s11266_s4, 256, %s370_s19, [#allocation10], %s11283_s17, %s11283_s17, %s11284_s18  }
  0xba   : > { %s9805_s15 = smov [#allocation14]   ;;  %s9806_s27 = smov [#allocation17]  }
  0xbb   : > { %s395_s1 = sshll.u32 %s9805_s15, 4  ;;  %s421_s29 = sshll.u32 %s9806_s27, 4  ;;  %s396_s1 = int_to_ptr.vmem [resolvable:$true] %s395_s1  ;;  %s422_s29 = int_to_ptr.vmem [resolvable:$true] %s421_s29 }
  0xbc   : > { %s9562_s26 = scalar_lea.hbm %s11268_s6, 1024 }
  0xbd   : > { %p9563_p1 = scmp.ne.s32.totalorder %s11268_s6, %s9562_s26  ;;  %p9569_p0 = scmp.lt.u32.totalorder %s9562_s26, %s11268_s6 }
  0xbf   : > { %p9565_p3 = pnand %p9563_p1, %p9939_p8 }
  0xc1   : > { %p9566_p13 = pneg %p9565_p3 }
  0xc3   : > { %p9571_p2 = pnand %p9569_p0, %p9566_p13 }
  0xc5   : > { %9574 = shalt.err (!%p9571_p2)
}
  0xc6   : > { %s9575_s19 = scalar_lea.vmem %s396_s1, 1024  ;;  %p9583_p4 = scmp.lt.s32.totalorder %s396_s1, %s396_s1 }
  0xc7   : > { %p9576_p5 = scmp.ne.s32.totalorder %s396_s1, %s9575_s19  ;;  %p9584_p10 = scmp.lt.s32.totalorder %s9575_s19, %s9575_s19 }
  0xc9   : > { %p9578_p7 = pnand %p9576_p5, %p9939_p8  ;;  %p9585_p11 = por %p9584_p10, %p9583_p4 }
  0xcb   : > { %p9579_p9 = pneg %p9578_p7 }
  0xcd   : > { %p9586_p12 = pnand %p9585_p11, %p9579_p9 }
  0xcf   : > { %9589 = shalt.err (!%p9586_p12)
}
  0xd0   : > { %9094 = dma.hbm_to_vmem [thread:$0]  (!%p9923_p6), %s11268_s6, 1024, %s396_s1, [#allocation13], %s11283_s17, %s11283_s17, %s11284_s18  }
  0xd1   : > { %s9590_s16 = scalar_lea.hbm %s11270_s8, 1024 }
  0xd2   : > { %p9591_p1 = scmp.ne.s32.totalorder %s11270_s8, %s9590_s16  ;;  %p9597_p0 = scmp.lt.u32.totalorder %s9590_s16, %s11270_s8 }
  0xd4   : > { %p9593_p3 = pnand %p9591_p1, %p9939_p8 }
  0xd6   : > { %p9594_p13 = pneg %p9593_p3 }
  0xd8   : > { %p9599_p2 = pnand %p9597_p0, %p9594_p13 }
  0xda   : > { %9602 = shalt.err (!%p9599_p2)
}
  0xdb   : > { %s9603_s0 = scalar_lea.vmem %s422_s29, 1024  ;;  %p9611_p4 = scmp.lt.s32.totalorder %s422_s29, %s422_s29 }
  0xdc   : > { %p9604_p5 = scmp.ne.s32.totalorder %s422_s29, %s9603_s0  ;;  %p9612_p10 = scmp.lt.s32.totalorder %s9603_s0, %s9603_s0 }
  0xde   : > { %p9606_p7 = pnand %p9604_p5, %p9939_p8  ;;  %p9613_p11 = por %p9612_p10, %p9611_p4 }
  0xe0   : > { %p9607_p9 = pneg %p9606_p7 }
  0xe2   : > { %p9614_p12 = pnand %p9613_p11, %p9607_p9 }
  0xe4   : > { %9617 = shalt.err (!%p9614_p12)
}
  0xe5   : > { %9100 = dma.hbm_to_vmem [thread:$0]  (!%p9923_p6), %s11270_s8, 1024, %s422_s29, [#allocation16], %s11283_s17, %s11283_s17, %s11284_s18  }
  0xe6   : > { %s9807_s20 = smov [#allocation20]   ;;  %s9808_s27 = smov [#allocation21]  }
  0xe7   : > { %s447_s15 = sshll.u32 %s9807_s20, 4  ;;  %s460_s14 = sshll.u32 %s9808_s27, 4  ;;  %s448_s15 = int_to_ptr.vmem [resolvable:$true] %s447_s15  ;;  %s461_s14 = int_to_ptr.vmem [resolvable:$true] %s460_s14 }
  0xe8   : > { %s9618_s30 = scalar_lea.hbm %s11272_s10, 1024 }
  0xe9   : > { %p9619_p1 = scmp.ne.s32.totalorder %s11272_s10, %s9618_s30  ;;  %p9625_p0 = scmp.lt.u32.totalorder %s9618_s30, %s11272_s10 }
  0xeb   : > { %p9621_p3 = pnand %p9619_p1, %p9939_p8 }
  0xed   : > { %p9622_p13 = pneg %p9621_p3 }
  0xef   : > { %p9627_p2 = pnand %p9625_p0, %p9622_p13 }
  0xf1   : > { %9630 = shalt.err (!%p9627_p2)
}
  0xf2   : > { %s9631_s29 = scalar_lea.vmem %s448_s15, 1024  ;;  %p9639_p4 = scmp.lt.s32.totalorder %s448_s15, %s448_s15 }
  0xf3   : > { %p9632_p5 = scmp.ne.s32.totalorder %s448_s15, %s9631_s29  ;;  %p9640_p10 = scmp.lt.s32.totalorder %s9631_s29, %s9631_s29 }
  0xf5   : > { %p9634_p7 = pnand %p9632_p5, %p9939_p8  ;;  %p9641_p11 = por %p9640_p10, %p9639_p4 }
  0xf7   : > { %p9635_p9 = pneg %p9634_p7 }
  0xf9   : > { %p9642_p12 = pnand %p9641_p11, %p9635_p9 }
  0xfb   : > { %9645 = shalt.err (!%p9642_p12)
}
  0xfc   : > { %9106 = dma.hbm_to_vmem [thread:$0]  (!%p9923_p6), %s11272_s10, 1024, %s448_s15, [#allocation19], %s11283_s17, %s11283_s17, %s11284_s18  }
  0xfd   : > { %s9646_s26 = scalar_lea.hbm %s11273_s11, 768 }
  0xfe   : > { %p9647_p1 = scmp.ne.s32.totalorder %s11273_s11, %s9646_s26  ;;  %p9653_p0 = scmp.lt.u32.totalorder %s9646_s26, %s11273_s11 }
 0x100   : > { %p9649_p3 = pnand %p9647_p1, %p9939_p8 }
 0x102   : > { %p9650_p13 = pneg %p9649_p3 }
 0x104   : > { %p9655_p2 = pnand %p9653_p0, %p9650_p13 }
 0x106   : > { %9658 = shalt.err (!%p9655_p2)
}
 0x107   : > { %s9659_s1 = scalar_lea.vmem %s461_s14, 768  ;;  %p9667_p4 = scmp.lt.s32.totalorder %s461_s14, %s461_s14 }
 0x108   : > { %p9660_p5 = scmp.ne.s32.totalorder %s461_s14, %s9659_s1  ;;  %p9668_p10 = scmp.lt.s32.totalorder %s9659_s1, %s9659_s1 }
 0x10a   : > { %p9662_p7 = pnand %p9660_p5, %p9939_p8  ;;  %p9669_p11 = por %p9668_p10, %p9667_p4 }
 0x10c   : > { %p9663_p9 = pneg %p9662_p7 }
 0x10e   : > { %p9670_p12 = pnand %p9669_p11, %p9663_p9 }
 0x110   : > { %9673 = shalt.err (!%p9670_p12)
}
 0x111   : > { %s11297_s25 = sld [smem:[#allocation32_spill]]  ;;  %s7308_s13 = sadd.s32 4294967294, %s9794_s24  }
 0x112   : > { %9109 = dma.hbm_to_vmem [thread:$0]  (!%p9923_p6), %s11273_s11, 768, %s461_s14, [#allocation22], %s11283_s17, %s11283_s17, %s11284_s18  }
 0x113   : > { %s10180_s19 = sadd.s32 1, %s9794_s24   ;;  %s41_s20 = sadd.s32 1, %s9790_s23 }
 0x114   : > { %s38_s27 = ssub.s32 %s9794_s24, %s10180_s19  ;;  %p48_p8 = scmp.ne.s32.totalorder %s9790_s23, %s9786_s22 }
 0x115   : > { %p39_p1 = scmp.eq.s32.totalorder %s38_s27, 0  ;;  %p49_p3 = scmp.eq.s32.totalorder %s9794_s24, 0 }
 0x116   : > { %p54_p13 = scmp.ne.s32.totalorder %s9786_s22, %s9782_s21  ;;  %p315_p9 = scmp.eq.s32.totalorder %s7308_s13, 1 }
 0x117   : > { %p309_p0 = scmp.eq.s32.totalorder %s11297_s25, 1  ;;  %p50_p2 = por %p49_p3, %p48_p8 }
 0x118   : > { %s10192_s16 = scalar_select %p39_p1, %s9790_s23, %s41_s20  }
 0x119   : > { %p11298_p5 = scmp.eq.s32.totalorder %s11297_s25, 0  ;;  %p10200_p6 = por %p309_p0, %p48_p8 }
 0x11a   : > { %p9129_p4 = scmp.lt.s32.totalorder %s9794_s24, 2  ;;  %s474_s30 = sand.u32 1, %s9790_s23  }
 0x11b   : > { %p10196_p7 = por %p11298_p5, %p54_p13  ;;  %p10206_p10 = por %p315_p9, %p54_p13 }
 0x11c   : > { %s11300_s14 = scalar_select %p10200_p6, 1, 0 }
 0x11d   : > { %s11301_s12 = scalar_select %p10206_p10, 1, 0 }
 0x11e   : > { %s7322_s28 = sshll.u32 %s474_s30, 7  ;;  %s7603_s0 = sshll.u32 %s9794_s24, 11 }
 0x11f   : > { %s11302_s29 = sld [smem:[#allocation34_spill]]  ;;  %s478_s20 = scalar_lea.vmem [#allocation3], %s7322_s28 }
 0x120   : > { %s485_s27 = sshll.u32 %s478_s20, 4  ;;  %p10216_p11 = pnand %p9129_p4, %p50_p2  ;;  %s10220_s27 = int_to_ptr.vmem [resolvable:$true] %s485_s27 }
 0x121   : > { %s10222_s17 = scalar_lea.sflag [#allocation4], %s474_s30 }
 0x122   : > { %p9676_p8 = pneg %p10216_p11 }
 0x125   : > { %s10214_s25 = scalar_lea.hbm %s11302_s29, %s7603_s0  ;;  %s9679_s1 = scalar_lea.hbm %s11302_s29, 4096 }
 0x126   : > { %s9674_s18 = scalar_lea.hbm %s10214_s25, 2048  ;;  %p9680_p13 = scmp.lt.u32.totalorder %s10214_s25, %s11302_s29 }
 0x127   : > { %p9675_p12 = scmp.ne.s32.totalorder %s10214_s25, %s9674_s18  ;;  %p9681_p0 = scmp.lt.u32.totalorder %s9679_s1, %s9674_s18 }
 0x128   : > { %p9683_p5 = scmp.lt.u32.totalorder %s9674_s18, %s10214_s25 }
 0x129   : > { %p9677_p1 = pnand %p9676_p8, %p9675_p12  ;;  %p9682_p2 = por %p9681_p0, %p9680_p13 }
 0x12b   : > { %p9678_p3 = pneg %p9677_p1  ;;  %p9684_p9 = por %p9683_p5, %p9682_p2 }
 0x12d   : > { %p9685_p4 = pnand %p9684_p9, %p9678_p3 }
 0x12f   : > { %9688 = shalt.err (!%p9685_p4)
}
 0x130   : > { %s9689_s30 = scalar_lea.vmem %s10220_s27, 2048  ;;  %s9809_s28 = smov [#allocation3]  }
 0x131   : > { %p9690_p12 = scmp.ne.s32.totalorder %s10220_s27, %s9689_s30  ;;  %s9694_s0 = sshll.u32 %s9809_s28, 4  ;;  %s9695_s0 = int_to_ptr.vmem [resolvable:$false] %s9694_s0 }
 0x132   : > { %s9696_s15 = scalar_lea.vmem %s9695_s0, 4096  ;;  %p9697_p6 = scmp.lt.s32.totalorder %s10220_s27, %s9695_s0 }
 0x133   : > { %p9692_p1 = pnand %p9690_p12, %p9676_p8  ;;  %p9698_p13 = scmp.lt.s32.totalorder %s9696_s15, %s9689_s30 }
 0x135   : > { %p9693_p10 = pneg %p9692_p1  ;;  %p9699_p0 = por %p9698_p13, %p9697_p6 }
 0x137   : > { %p9700_p2 = pnand %p9699_p0, %p9693_p10 }
 0x139   : > { %9703 = shalt.err (!%p9700_p2)
}
 0x13a   : > { %s11304_s18 = smov 8   ;;  %s11305_s1 = smov 128  }
 0x13b   : > { %9113 = dma.hbm_to_vmem [thread:$0]  (!%p10216_p11), %s10214_s25, 2048, %s10220_s27, %s10222_s17, %s11305_s1, %s11305_s1, %s11304_s18  }
 0x13c   : > { %s11306_s20 = sld [smem:[#allocation33_spill]] }
 0x142   : > { %p11307_p8 = scmp.ne.s32.totalorder %s11306_s20, 0 }
 0x143   : > { %s10256_s28 = sand.u32 (!%p11307_p8), 1, %s9786_s22  }
 0x144   : > { %497 = sbr.rel (%p11307_p8) target bundleno = 3593 (0xe09), region = 68  ;;  %s7326_s30 = sshll.u32 (!%p11307_p8), %s10256_s28, 7 }
 0x145   : > { %s500_s0 = scalar_lea.sflag (!%p11307_p8), [#allocation4], %s10256_s28  ;;  %s10260_s15 = scalar_lea.vmem (!%p11307_p8), [#allocation3], %s7326_s30 }
 0x14b   : > { %9749 = dma.done.wait (%p10196_p7), %s500_s0, 2048  }
 0x14c   : > { %9751 = vsyncadd (%p10196_p7), %s500_s0, 4294965248  ;;  %s11308_s13 = sld [smem:[#allocation32_spill]] }
 0x152   : > { %p11309_p6 = scmp.eq.s32.totalorder %s11308_s13, 0 }
 0x154   : > { %9753 = dma.done.wait (%p11309_p6), [#allocation7], 288   ;;  %p11310_p10 = pmov %p11309_p6 }
 0x155   : > { %p11311_p11 = pmov %p11309_p6 }
 0x156   : > { %9755 = vsyncadd (%p11310_p10), [#allocation7], 4294967008 }
 0x157   : > { %9757 = dma.done.wait (%p11311_p11), [#allocation10], 272   ;;  %p11312_p3 = pmov %p11309_p6 }
 0x159   : > { %9759 = vsyncadd (%p11312_p3), [#allocation10], 4294967024  ;;  %p11313_p5 = pmov %p11312_p3 }
 0x15a   : > { %p11314_p9 = pmov %p11312_p3 }
 0x15b   : > { %9761 = dma.done.wait (%p11313_p5), [#allocation13], 13312  }
 0x15c   : > { %9763 = vsyncadd (%p11314_p9), [#allocation13], 4294953984  ;;  %p11315_p7 = pmov %p11312_p3 }
 0x15d   : > { %p11316_p4 = pmov %p11312_p3 }
 0x15e   : > { %9765 = dma.done.wait (%p11315_p7), [#allocation16], 4096  }
 0x15f   : > { %9767 = vsyncadd (%p11316_p4), [#allocation16], 4294963200  ;;  %p11317_p12 = pmov %p11312_p3 }
 0x160   : > { %p11318_p1 = pmov %p11312_p3 }
 0x161   : > { %9769 = dma.done.wait (%p11317_p12), [#allocation19], 4096  }
 0x162   : > { %9771 = vsyncadd (%p11318_p1), [#allocation19], 4294963200  ;;  %p11319_p13 = pmov %p11318_p1 }
 0x163   : > { %p11320_p0 = pmov %p11318_p1 }
 0x164   : > { %9773 = dma.done.wait (%p11319_p13), [#allocation22], 768  }
 0x165   : > { %9775 = vsyncadd (%p11320_p0), [#allocation22], 4294966528  ;;  %v9810_v0 = vmov 1   ;;  %v9811_v1 = vmov 0   ;;  %vm613_vm0 = vcmask 1043456   ;;  %vm9812_vm1 = vmmov 1  }
 0x166   : > { %9200 = vset.pattern.permute.xlu0 %v9810_v0  ;;  %9197 = vset.pattern.permute.xlu1 %v9811_v1  ;;  %vm10292_vm2 = vmpackc.low %vm613_vm0, %vm9812_vm1  ;;  %vm606_vm3 = vcmask 97280   ;;  %v588_v3 = vld [vmem:[%s10260_s15] sm:$0xff]  ;;  %v589_v4 = vld [vmem:[%s10260_s15 + $0x8] sm:$0xf]  ;;  %v1319_v48 = vlaneseq  ;;  %vm1480_vm4 = vcmask 130048   ;;  %vm2780_vm6 = vcmask 93184  }
 0x167   : > { %v590_v5 = vld [vmem:[%s10260_s15 + $0x10] sm:$0xff]  ;;  %v8584_v6 = vpack.c.bf16 %v589_v4, %v588_v3  ;;  %v591_v7 = vld [vmem:[%s10260_s15 + $0x18] sm:$0xf]  ;;  %v604_v8 = vld [vmem:[#allocation6] sm:$0xff]  ;;  %vm3723_vm7 = vcmask 1041409   ;;  %vm3726_vm8 = vcmask 1042434  }
 0x168   : > { %v8590_v9 = vpack.c.bf16 %v591_v7, %v590_v5  ;;  %7971 = vmatprep.mubr.msk.f32.mxu0 %vm606_vm3, %v604_v8  ;;  %7978 = vmatprep.mubr.msk.f32.mxu1 %vm606_vm3, %v604_v8  ;;  %v592_v10 = vld [vmem:[%s10260_s15 + $0x20] sm:$0xff]  ;;  %v593_v11 = vld [vmem:[%s10260_s15 + $0x28] sm:$0xf]  ;;  %v594_v12 = vld [vmem:[%s10260_s15 + $0x30] sm:$0xff]  ;;  %v1320_v49 = vshrl.u32 %v1319_v48, 7  ;;  %vm3729_vm9 = vcmask 1043459  }
 0x169   : > { %8586 = vmatprep.subr.msk.bf16.mxu0 %vm10292_vm2, %v8584_v6  ;;  %v8596_v13 = vpack.c.bf16 %v593_v11, %v592_v10  ;;  %v595_v14 = vld [vmem:[%s10260_s15 + $0x38] sm:$0xf]  ;;  %v596_v15 = vld [vmem:[%s10260_s15 + $0x40] sm:$0xff]  ;;  %v597_v16 = vld [vmem:[%s10260_s15 + $0x48] sm:$0xf]  ;;  %vm3732_vm10 = vcmask 1044484  }
 0x16a   : > { %8592 = vmatprep.subr.msk.bf16.mxu1 %vm10292_vm2, %v8590_v9  ;;  %8589 = vmatpush3.bf16.msk.msra.mxu0 %vm10292_vm2, %v8584_v6  ;;  %v605_v17 = vld [vmem:[#allocation6 + $0x8] sm:$0xf]  ;;  %v8602_v18 = vpack.c.bf16 %v595_v14, %v594_v12  ;;  %v598_v19 = vld [vmem:[%s10260_s15 + $0x50] sm:$0xff]  ;;  %v599_v20 = vld [vmem:[%s10260_s15 + $0x58] sm:$0xf]  ;;  %v8608_v21 = vpack.c.bf16 %v597_v16, %v596_v15  ;;  %v1405_v50 = vsub.s32 1, %v1320_v49 }
 0x16b   : > { %8595 = vmatpush3.bf16.msk.msra.mxu1 %vm10292_vm2, %v8590_v9  ;;  %8598 = vmatprep.subr.msk.bf16.mxu0 %vm10292_vm2, %v8596_v13  ;;  %v8614_v22 = vpack.c.bf16 %v599_v20, %v598_v19  ;;  %v600_v23 = vld [vmem:[%s10260_s15 + $0x60] sm:$0xff]  ;;  %v601_v24 = vld [vmem:[%s10260_s15 + $0x68] sm:$0xf]  ;;  %v602_v25 = vld [vmem:[%s10260_s15 + $0x70] sm:$0xff]  ;;  %v1321_v52 = vsub.s32 0, %v1320_v49  ;;  %vm3735_vm11 = vcmask 1045509  }
 0x16c   : > { %8604 = vmatprep.subr.msk.bf16.mxu1 %vm10292_vm2, %v8602_v18  ;;  %v603_v26 = vld [vmem:[%s10260_s15 + $0x78] sm:$0xf]  ;;  %v8620_v27 = vpack.c.bf16 %v601_v24, %v600_v23  ;;  %v1479_v46 = vld [vmem:[#allocation11 + $0x8] sm:$0xff]  ;;  %v1238_v54 = vld [vmem:[#allocation8] sm:$0x3]  ;;  %vm3738_vm12 = vcmask 1046534  }
 0x16d   : > { %7972 = vmatmul.mubr.msk.f32.vlgmr.msra.gmra.mrb[0].mxu0 %vm606_vm3, %v605_v17  ;;  %v8626_v28 = vpack.c.bf16 %v603_v26, %v602_v25  ;;  %v1478_v45 = vld [vmem:[#allocation11] sm:$0xff]  ;;  %v10391_v55 = vrot.slane %v1238_v54, %v1405_v50  ;;  %v10393_v56 = vrot.slane %v1238_v54, %v1321_v52  ;;  %v10399_v3 = vld [vmem:[#allocation9] ss:$0 sm:$0xff]  ;;  %vm10488_vm5 = vmpackc.low %vm1480_vm4, %vm1480_vm4  ;;  %vm3741_vm13 = vcmask 1047559   ;;  %s9814_s17 = smov 2   ;;  %s9815_s26 = smov 127  }
 0x16e   : > { %7979 = vmatmul.mubr.msk.f32.vlgmr.msra.gmra.mrb[0].mxu1 %vm606_vm3, %v605_v17  ;;  %8601 = vmatpush3.bf16.msk.msra.mxu0 %vm10292_vm2, %v8596_v13  ;;  %v10364_v47 = vpack.c.bf16 %v1479_v46, %v1478_v45  ;;  %vm5685_vm14 = vcmask 80912   ;;  %vm5734_vm15 = vcmask 523264   ;;  %s9816_s25 = smov 125   ;;  %s9817_s27 = smov 124   ;;  %vm7114_vm0 = vcmask 58368  }
 0x16f   : > { %7985 = vmatprep.mubr.msk.f32.mxu0 %vm606_vm3, %v604_v8  ;;  %8607 = vmatpush3.bf16.msk.msra.mxu1 %vm10292_vm2, %v8602_v18  ;;  %s7338_s18 = sshll.u32 %s10256_s28, 4  ;;  %s7604_s30 = sshll.u32 %s11308_s13, 8  ;;  %vm7112_vm1 = vcmask 64512  }
 0x170   : > { %7992 = vmatprep.mubr.msk.f32.mxu1 %vm606_vm3, %v604_v8  ;;  %8610 = vmatprep.subr.msk.bf16.mxu0 %vm10292_vm2, %v8608_v21  ;;  %s587_s1 = scalar_lea.vmem [#allocation23], %s7338_s18  ;;  %p11326_p8 = scmp.ne.s32.totalorder %s11300_s14, 0 }
 0x171   : > { %7986 = vmatmul.mubr.msk.f32.vlgmr.msra.gmra.mrb[2].mxu0 %vm606_vm3, %v605_v17  ;;  %8616 = vmatprep.subr.msk.bf16.mxu1 %vm10292_vm2, %v8614_v22  ;;  %s7130_s20 = sshll.u32 %s587_s1, 4  ;;  %s9818_s13 = smov [#allocation23]   ;;  %s11213_s20 = int_to_ptr.vmem [resolvable:$true] %s7130_s20 }
 0x172   : > { %7993 = vmatmul.mubr.msk.f32.vlgmr.msra.gmra.mrb[2].mxu1 %vm606_vm3, %v605_v17  ;;  %8613 = vmatpush3.bf16.msk.msra.mxu0 %vm10292_vm2, %v8608_v21  ;;  %s9708_s18 = sshll.u32 %s9818_s13, 4  ;;  %s9709_s18 = int_to_ptr.vmem [resolvable:$false] %s9708_s18 }
 0x173   : > { %7999 = vmatprep.mubr.msk.f32.mxu0 %vm606_vm3, %v604_v8  ;;  %8619 = vmatpush3.bf16.msk.msra.mxu1 %vm10292_vm2, %v8614_v22  ;;  %s9710_s2 = scalar_lea.vmem %s9709_s18, 512  ;;  %p9711_p11 = scmp.lt.s32.totalorder %s11213_s20, %s9709_s18 }
 0x174   : > { %8006 = vmatprep.mubr.msk.f32.mxu1 %vm606_vm3, %v604_v8  ;;  %8622 = vmatprep.subr.msk.bf16.mxu0 %vm10292_vm2, %v8620_v27 }
 0x175   : > { %8000 = vmatmul.mubr.msk.f32.vlgmr.msra.gmra.mrb[4].mxu0 %vm606_vm3, %v605_v17  ;;  %8628 = vmatprep.subr.msk.bf16.mxu1 %vm10292_vm2, %v8626_v28 }
 0x176   : > { %8007 = vmatmul.mubr.msk.f32.vlgmr.msra.gmra.mrb[4].mxu1 %vm606_vm3, %v605_v17  ;;  %8625 = vmatpush3.bf16.msk.msra.mxu0 %vm10292_vm2, %v8620_v27 }
 0x177   : > { %8013 = vmatprep.mubr.msk.f32.mxu0 %vm606_vm3, %v604_v8  ;;  %8631 = vmatpush3.bf16.msk.msra.mxu1 %vm10292_vm2, %v8626_v28 }
 0x178   : > { %8020 = vmatprep.mubr.msk.f32.mxu1 %vm606_vm3, %v604_v8  ;;  %8633 = vmatprep.subr.bf16.mxu0 %v10364_v47 }
 0x179   : > { %8014 = vmatmul.mubr.msk.f32.vlgmr.msra.gmra.mrb[6].mxu0 %vm606_vm3, %v605_v17  ;;  %8637 = vmatprep.subr.bf16.mxu1 %v10364_v47 }
 0x17a   : > { %8021 = vmatmul.mubr.msk.f32.vlgmr.msra.gmra.mrb[6].mxu1 %vm606_vm3, %v605_v17  ;;  %8635 = vmatpush3.bf16.msra.mxu0 %v10364_v47 }
 0x17b   : > { %8639 = vmatpush3.bf16.msra.mxu1 %v10364_v47  ;;  %8641 = vmatprep.subr.bf16.mxu0 %v10364_v47 }
 0x17c   : > { %8645 = vmatprep.subr.bf16.mxu1 %v10364_v47 }
 0x240   : > { %v7973_v29 = vpop.f32.mrb[0].mxu0 }
 0x241   : > { %v7980_v30 = vpop.f32.mrb[0].mxu1  ;;  %1246 = vperm.xlu1 %9197, %v7973_v29   ;;  %v683_v31 = vpop.f32.mrb[1].mxu0 }
 0x242   : > { %1352 = vperm.xlu0 %9200, %v7980_v30   ;;  %v761_v32 = vpop.f32.mrb[1].mxu1 }
 0x244   : > { %v7987_v33 = vpop.f32.mrb[2].mxu0 }
 0x245   : > { %9198 = vset.pattern.permute.xlu1 %v9810_v0  ;;  %v839_v34 = vpop.f32.mrb[3].mxu0  ;;  %v7994_v35 = vpop.f32.mrb[2].mxu1 }
 0x246   : > { %9201 = vset.pattern.permute.xlu0 %v9811_v1  ;;  %1344 = vperm.xlu1 %9198, %v7973_v29   ;;  %v917_v36 = vpop.f32.mrb[3].mxu1 }
 0x247   : > { %1241 = vperm.xlu0 %9201, %v683_v31  }
 0x248   : > { %v8001_v37 = vpop.f32.mrb[4].mxu0 }
 0x249   : > { %v8008_v38 = vpop.f32.mrb[4].mxu1  ;;  %v995_v39 = vpop.f32.mrb[5].mxu0 }
 0x24a   : > { %9199 = vset.pattern.permute.xlu1 %v9811_v1  ;;  %v1073_v40 = vpop.f32.mrb[5].mxu1 }
 0x24b   : > { %9202 = vset.pattern.permute.xlu0 %v9810_v0  ;;  %1256 = vperm.xlu1 %9199, %v7980_v30  }
 0x24c   : > { %1340 = vperm.xlu0 %9202, %v683_v31   ;;  %v8015_v41 = vpop.f32.mrb[6].mxu0 }
 0x24d   : > { %v1151_v42 = vpop.f32.mrb[7].mxu0  ;;  %v8022_v43 = vpop.f32.mrb[6].mxu1 }
 0x24e   : > { %v1229_v44 = vpop.f32.mrb[7].mxu1 }
 0x24f   : > { %1251 = vperm.xlu1 %9199, %v761_v32  }
 0x250   : > { %1348 = vperm.xlu0 %9202, %v761_v32  }
 0x253   : > { %1266 = vperm.xlu1 %9199, %v7987_v33  }
 0x254   : > { %9204 = vset.pattern.permute.xlu0 %v9811_v1 }
 0x255   : > { %1276 = vperm.xlu0 %9204, %v7994_v35  }
 0x257   : > { %9203 = vset.pattern.permute.xlu1 %v9810_v0 }
 0x258   : > { %1360 = vperm.xlu1 %9203, %v7987_v33  }
 0x259   : > { %9206 = vset.pattern.permute.xlu0 %v9810_v0 }
 0x25a   : > { %1356 = vperm.xlu0 %9206, %v839_v34  }
 0x25c   : > { %1368 = vperm.xlu1 %9203, %v7994_v35  }
 0x25e   : > { %9207 = vset.pattern.permute.xlu0 %v9811_v1 }
 0x25f   : > { %1271 = vperm.xlu0 %9207, %v917_v36  }
 0x260   : > { %9205 = vset.pattern.permute.xlu1 %v9811_v1 }
 0x261   : > { %1261 = vperm.xlu1 %9205, %v839_v34  }
 0x263   : > { %1286 = vperm.xlu0 %9207, %v8001_v37  }
 0x265   : > { %9208 = vset.pattern.permute.xlu1 %v9810_v0 }
 0x266   : > { %1364 = vperm.xlu1 %9208, %v917_v36  }
 0x267   : > { %9209 = vset.pattern.permute.xlu0 %v9810_v0 }
 0x268   : > { %1376 = vperm.xlu0 %9209, %v8001_v37  }
 0x26a   : > { %9210 = vset.pattern.permute.xlu1 %v9811_v1 }
 0x26b   : > { %1296 = vperm.xlu1 %9210, %v8008_v38  }
 0x26c   : > { %1384 = vperm.xlu0 %9209, %v8008_v38  }
 0x26f   : > { %9212 = vset.pattern.permute.xlu1 %v9810_v0 }
 0x270   : > { %9211 = vset.pattern.permute.xlu0 %v9811_v1  ;;  %1372 = vperm.xlu1 %9212, %v995_v39  }
 0x271   : > { %1281 = vperm.xlu0 %9211, %v995_v39  }
 0x274   : > { %9213 = vset.pattern.permute.xlu1 %v9811_v1 }
 0x275   : > { %1291 = vperm.xlu1 %9213, %v1073_v40   ;;  %9218 = vset.pattern.permute.xlu0 %v9810_v0 }
 0x276   : > { %1388 = vperm.xlu0 %9218, %v1151_v42  }
 0x279   : > { %9214 = vset.pattern.permute.xlu1 %v9810_v0 }
 0x27a   : > { %1380 = vperm.xlu1 %9214, %v1073_v40   ;;  %9219 = vset.pattern.permute.xlu0 %v9811_v1 }
 0x27b   : > { %1311 = vperm.xlu0 %9219, %v1229_v44  }
 0x27e   : > { %9215 = vset.pattern.permute.xlu1 %v9811_v1 }
 0x27f   : > { %1306 = vperm.xlu1 %9215, %v8015_v41   ;;  %1316 = vperm.xlu0 %9219, %v8022_v43  }
 0x283   : > { %9216 = vset.pattern.permute.xlu1 %v9810_v0 }
 0x284   : > { %1392 = vperm.xlu1 %9216, %v8015_v41  }
 0x288   : > { %9217 = vset.pattern.permute.xlu1 %v9811_v1 }
 0x289   : > { %1301 = vperm.xlu1 %9217, %v1151_v42  }
 0x28d   : > { %9220 = vset.pattern.permute.xlu1 %v9810_v0 }
 0x28e   : > { %1396 = vperm.xlu1 %9220, %v1229_v44  }
 0x292   : > { %1400 = vperm.xlu1 %9220, %v8022_v43  }
 0x296   : > { %9221 = vset.pattern.permute.xlu1 %v9811_v1 }
 0x2c0   : > { %v1247_v51 = vpop.permute.xlu1 %1246 }
 0x2c1   : > { %v1353_v53 = vpop.permute.xlu0 %1352  ;;  %v1324_v60 = vmul.f32 %v10393_v56, %v1247_v51 }
 0x2c2   : > { %v1410_v62 = vmul.f32 %v10391_v55, %v1353_v53 }
 0x2c5   : > { %v1345_v57 = vpop.permute.xlu1 %1344 }
 0x2c6   : > { %v1242_v58 = vpop.permute.xlu0 %1241  ;;  %v1408_v59 = vmul.f32 %v10391_v55, %v1345_v57 }
 0x2c7   : > { %v1323_v4 = vmul.f32 %v10393_v56, %v1242_v58 }
 0x2c8   : > { %v1424_v63 = vadd.f32 %v1408_v59, %v1324_v60 }
 0x2ca   : > { %v1257_v61 = vpop.permute.xlu1 %1256  ;;  %v10404_v8 = vadd.f32 %v10399_v3, %v1424_v63 }
 0x2cb   : > { %v1326_v0 = vmul.f32 %v10393_v56, %v1257_v61  ;;  %v1341_v1 = vpop.permute.xlu0 %1340 }
 0x2cc   : > { %v1407_v5 = vmul.f32 %v10391_v55, %v1341_v1  ;;  %v1463_v17 = vmax.f32 %v10404_v8, 0.0 }
 0x2cd   : > { %v1426_v9 = vadd.f32 %v1410_v62, %v1326_v0 }
 0x2ce   : > { %v1423_v6 = vadd.f32 %v1407_v5, %v1323_v4  ;;  %v1252_v7 = vpop.permute.xlu1 %1251 }
 0x2cf   : > { %v1325_v10 = vmul.f32 %v10393_v56, %v1252_v7  ;;  %v1349_v11 = vpop.permute.xlu0 %1348  ;;  %v10414_v18 = vadd.f32 %v10399_v3, %v1426_v9 }
 0x2d0   : > { %v10408_v12 = vadd.f32 %v10399_v3, %v1423_v6  ;;  %v1409_v13 = vmul.f32 %v10391_v55, %v1349_v11 }
 0x2d1   : > { %v1465_v22 = vmax.f32 %v10414_v18, 0.0 }
 0x2d2   : > { %v1462_v14 = vmax.f32 %v10408_v12, 0.0  ;;  %v1425_v15 = vadd.f32 %v1409_v13, %v1325_v10  ;;  %v1267_v16 = vpop.permute.xlu1 %1266 }
 0x2d3   : > { %v1328_v27 = vmul.f32 %v10393_v56, %v1267_v16 }
 0x2d4   : > { %v10417_v19 = vadd.f32 %v10399_v3, %v1425_v15  ;;  %8027 = vmatprep.mubr.msk.f32.mxu0 %vm1480_vm4, %v1462_v14  ;;  %v1277_v20 = vpop.permute.xlu0 %1276 }
 0x2d5   : > { %8028 = vmatmul.mubr.msk.f32.vlgmr.msra.gmra.mrb[8].mxu0 %vm1480_vm4, %v1463_v17  ;;  %v1330_v31 = vmul.f32 %v10393_v56, %v1277_v20 }
 0x2d6   : > { %v1464_v21 = vmax.f32 %v10417_v19, 0.0  ;;  %8643 = vmatpush3.bf16.msra.mxu0 %v10364_v47 }
 0x2d7   : > { %v1361_v23 = vpop.permute.xlu1 %1360  ;;  %8649 = vmatprep.subr.bf16.mxu0 %v10364_v47 }
 0x2d8   : > { %8034 = vmatprep.mubr.msk.f32.mxu1 %vm1480_vm4, %v1464_v21  ;;  %v1412_v26 = vmul.f32 %v10391_v55, %v1361_v23  ;;  %v10501_v23 = vpack.c.bf16 %v1463_v17, %v1462_v14  ;;  %v10517_v14 = vpack.c.bf16 %v1465_v22, %v1464_v21 }
 0x2d9   : > { %8035 = vmatmul.mubr.msk.f32.vlgmr.msra.gmra.mrb[8].mxu1 %vm1480_vm4, %v1465_v22  ;;  %v1357_v24 = vpop.permute.xlu0 %1356 }
 0x2da   : > { %8647 = vmatpush3.bf16.msra.mxu1 %v10364_v47  ;;  %v1428_v29 = vadd.f32 %v1412_v26, %v1328_v27  ;;  %v1411_v32 = vmul.f32 %v10391_v55, %v1357_v24 }
 0x2db   : > { %v1369_v25 = vpop.permute.xlu1 %1368  ;;  %8653 = vmatprep.subr.bf16.mxu1 %v10364_v47 }
 0x2dc   : > { %v1414_v33 = vmul.f32 %v10391_v55, %v1369_v25  ;;  %v10444_v37 = vadd.f32 %v10399_v3, %v1428_v29 }
 0x2de   : > { %v1272_v28 = vpop.permute.xlu0 %1271  ;;  %v1430_v38 = vadd.f32 %v1414_v33, %v1330_v31  ;;  %v1467_v45 = vmax.f32 %v10444_v37, 0.0 }
 0x2df   : > { %v1329_v41 = vmul.f32 %v10393_v56, %v1272_v28 }
 0x2e0   : > { %v1262_v30 = vpop.permute.xlu1 %1261  ;;  %v10454_v48 = vadd.f32 %v10399_v3, %v1430_v38 }
 0x2e1   : > { %v1327_v34 = vmul.f32 %v10393_v56, %v1262_v30 }
 0x2e2   : > { %v1287_v35 = vpop.permute.xlu0 %1286  ;;  %v1469_v57 = vmax.f32 %v10454_v48, 0.0 }
 0x2e3   : > { %v1427_v36 = vadd.f32 %v1411_v32, %v1327_v34  ;;  %v1332_v49 = vmul.f32 %v10393_v56, %v1287_v35 }
 0x2e5   : > { %v10447_v39 = vadd.f32 %v10399_v3, %v1427_v36  ;;  %v1365_v40 = vpop.permute.xlu1 %1364 }
 0x2e6   : > { %v1413_v42 = vmul.f32 %v10391_v55, %v1365_v40 }
 0x2e7   : > { %v1466_v43 = vmax.f32 %v10447_v39, 0.0  ;;  %v1377_v44 = vpop.permute.xlu0 %1376 }
 0x2e8   : > { %v1429_v46 = vadd.f32 %v1413_v42, %v1329_v41  ;;  %v1416_v50 = vmul.f32 %v10391_v55, %v1377_v44 }
 0x2e9   : > { %8041 = vmatprep.mubr.msk.f32.mxu0 %vm1480_vm4, %v1466_v43 }
 0x2ea   : > { %v10462_v51 = vadd.f32 %v10399_v3, %v1429_v46  ;;  %8042 = vmatmul.mubr.msk.f32.vlgmr.msra.gmra.mrb[10].mxu0 %vm1480_vm4, %v1467_v45  ;;  %v1297_v52 = vpop.permute.xlu1 %1296  ;;  %v1432_v58 = vadd.f32 %v1416_v50, %v1332_v49 }
 0x2eb   : > { %v1385_v53 = vpop.permute.xlu0 %1384  ;;  %8651 = vmatpush3.bf16.msra.mxu0 %v10364_v47  ;;  %v1334_v1 = vmul.f32 %v10393_v56, %v1297_v52 }
 0x2ec   : > { %v1468_v54 = vmax.f32 %v10462_v51, 0.0  ;;  %8657 = vmatprep.subr.bf16.mxu0 %v10364_v47  ;;  %v1455_v62 = vadd.f32 %v10399_v3, %v1432_v58  ;;  %v1418_v4 = vmul.f32 %v10391_v55, %v1385_v53  ;;  %v10542_v58 = vpack.c.bf16 %v1467_v45, %v1466_v43 }
 0x2ee   : > { %8048 = vmatprep.mubr.msk.f32.mxu1 %vm1480_vm4, %v1468_v54  ;;  %v1471_v6 = vmax.f32 %v1455_v62, 0.0  ;;  %v1434_v10 = vadd.f32 %v1418_v4, %v1334_v1  ;;  %v10559_v37 = vpack.c.bf16 %v1469_v57, %v1468_v54 }
 0x2ef   : > { %8049 = vmatmul.mubr.msk.f32.vlgmr.msra.gmra.mrb[10].mxu1 %vm1480_vm4, %v1469_v57  ;;  %v1373_v59 = vpop.permute.xlu1 %1372 }
 0x2f0   : > { %v1415_v60 = vmul.f32 %v10391_v55, %v1373_v59  ;;  %v1282_v61 = vpop.permute.xlu0 %1281  ;;  %8655 = vmatpush3.bf16.msra.mxu1 %v10364_v47  ;;  %v1457_v24 = vadd.f32 %v10399_v3, %v1434_v10 }
 0x2f1   : > { %v1331_v63 = vmul.f32 %v10393_v56, %v1282_v61  ;;  %8661 = vmatprep.subr.bf16.mxu1 %v10364_v47 }
 0x2f2   : > { %v1473_v28 = vmax.f32 %v1457_v24, 0.0 }
 0x2f3   : > { %v1431_v0 = vadd.f32 %v1415_v60, %v1331_v63 }
 0x2f4   : > { %v1292_v5 = vpop.permute.xlu1 %1291 }
 0x2f5   : > { %v1454_v7 = vadd.f32 %v10399_v3, %v1431_v0  ;;  %v1333_v16 = vmul.f32 %v10393_v56, %v1292_v5  ;;  %v1389_v31 = vpop.permute.xlu0 %1388 }
 0x2f6   : > { %v1419_v34 = vmul.f32 %v10391_v55, %v1389_v31 }
 0x2f7   : > { %v1470_v9 = vmax.f32 %v1454_v7, 0.0 }
 0x2f9   : > { %8055 = vmatprep.mubr.msk.f32.mxu0 %vm1480_vm4, %v1470_v9  ;;  %v1381_v11 = vpop.permute.xlu1 %1380  ;;  %v10492_v15 = vpack.c.bf16 %v1471_v6, %v1470_v9 }
 0x2fa   : > { %v1417_v20 = vmul.f32 %v10391_v55, %v1381_v11  ;;  %8056 = vmatmul.mubr.msk.f32.vlgmr.msra.gmra.mrb[12].mxu0 %vm1480_vm4, %v1471_v6  ;;  %v1312_v19 = vpop.permute.xlu0 %1311 }
 0x2fb   : > { %8659 = vmatpush3.bf16.msra.mxu0 %v10364_v47 }
 0x2fc   : > { %v1433_v25 = vadd.f32 %v1417_v20, %v1333_v16  ;;  %8666 = vmatprep.subr.msk.bf16.mxu0 %vm10488_vm5, %v10501_v23 }
 0x2fe   : > { %v1456_v26 = vadd.f32 %v10399_v3, %v1433_v25  ;;  %v1307_v27 = vpop.permute.xlu1 %1306  ;;  %v1317_v42 = vpop.permute.xlu0 %1316 }
 0x2ff   : > { %v1336_v30 = vmul.f32 %v10393_v56, %v1307_v27  ;;  %v1338_v50 = vmul.f32 %v10393_v56, %v1317_v42 }
 0x300   : > { %v1472_v29 = vmax.f32 %v1456_v26, 0.0 }
 0x302   : > { %8062 = vmatprep.mubr.msk.f32.mxu1 %vm1480_vm4, %v1472_v29  ;;  %v10510_v12 = vpack.c.bf16 %v1473_v28, %v1472_v29 }
 0x303   : > { %8063 = vmatmul.mubr.msk.f32.vlgmr.msra.gmra.mrb[12].mxu1 %vm1480_vm4, %v1473_v28  ;;  %v1393_v8 = vpop.permute.xlu1 %1392 }
 0x304   : > { %8663 = vmatpush3.bf16.msra.mxu1 %v10364_v47  ;;  %v1420_v17 = vmul.f32 %v10391_v55, %v1393_v8  ;;  %v1337_v47 = vmul.f32 %v10393_v56, %v1312_v19 }
 0x305   : > { %8672 = vmatprep.subr.msk.bf16.mxu1 %vm10488_vm5, %v10517_v14 }
 0x306   : > { %v1436_v32 = vadd.f32 %v1420_v17, %v1336_v30 }
 0x308   : > { %v1302_v33 = vpop.permute.xlu1 %1301  ;;  %v1459_v21 = vadd.f32 %v10399_v3, %v1436_v32 }
 0x309   : > { %v1335_v18 = vmul.f32 %v10393_v56, %v1302_v33 }
 0x30a   : > { %v1475_v40 = vmax.f32 %v1459_v21, 0.0 }
 0x30b   : > { %v1435_v22 = vadd.f32 %v1419_v34, %v1335_v18 }
 0x30d   : > { %v1458_v35 = vadd.f32 %v10399_v3, %v1435_v22  ;;  %v1397_v36 = vpop.permute.xlu1 %1396 }
 0x30e   : > { %v1421_v38 = vmul.f32 %v10391_v55, %v1397_v36 }
 0x30f   : > { %v1474_v41 = vmax.f32 %v1458_v35, 0.0 }
 0x310   : > { %v1437_v44 = vadd.f32 %v1421_v38, %v1337_v47 }
 0x311   : > { %8069 = vmatprep.mubr.msk.f32.mxu0 %vm1480_vm4, %v1474_v41  ;;  %v1401_v46 = vpop.permute.xlu1 %1400  ;;  %v10532_v49 = vpack.c.bf16 %v1475_v40, %v1474_v41 }
 0x312   : > { %v1460_v52 = vadd.f32 %v10399_v3, %v1437_v44  ;;  %v1422_v53 = vmul.f32 %v10391_v55, %v1401_v46  ;;  %8070 = vmatmul.mubr.msk.f32.vlgmr.msra.gmra.mrb[14].mxu0 %vm1480_vm4, %v1475_v40 }
 0x313   : > { %8669 = vmatpush3.bf16.xpose.msk.msra.mxu0 %vm10488_vm5, %v10501_v23 }
 0x314   : > { %v1476_v59 = vmax.f32 %v1460_v52, 0.0  ;;  %v1438_v60 = vadd.f32 %v1422_v53, %v1338_v50  ;;  %8678 = vmatprep.subr.msk.bf16.mxu0 %vm10488_vm5, %v10542_v58 }
 0x316   : > { %v1461_v55 = vadd.f32 %v10399_v3, %v1438_v60  ;;  %8076 = vmatprep.mubr.msk.f32.mxu1 %vm1480_vm4, %v1476_v59 }
 0x318   : > { %v1477_v56 = vmax.f32 %v1461_v55, 0.0 }
 0x31a   : > { %v10552_v39 = vpack.c.bf16 %v1477_v56, %v1476_v59  ;;  %8077 = vmatmul.mubr.msk.f32.vlgmr.msra.gmra.mrb[14].mxu1 %vm1480_vm4, %v1477_v56 }
 0x31b   : > { %8675 = vmatpush3.bf16.xpose.msk.msra.mxu1 %vm10488_vm5, %v10517_v14 }
 0x31c   : > { %8684 = vmatprep.subr.msk.bf16.mxu1 %vm10488_vm5, %v10559_v37 }
 0x3a8   : > { %v8029_v3 = vpop.f32.mrb[8].mxu0 }
 0x3a9   : > { %v1553_v43 = vpop.f32.mrb[9].mxu0 }
 0x3aa   : > { %8083 = vmatprep.mubr.msk.f32.mxu0 %vm1480_vm4, %v1553_v43 }
 0x3ab   : > { %8084 = vmatmul.mubr.msk.f32.vlgmr.msra.gmra.mrb[16].mxu0 %vm1480_vm4, %v8029_v3 }
 0x3ac   : > { %8681 = vmatpush3.bf16.xpose.msk.msra.mxu0 %vm10488_vm5, %v10542_v58  ;;  %v8036_v45 = vpop.f32.mrb[8].mxu1 }
 0x3ad   : > { %8690 = vmatprep.subr.msk.bf16.mxu0 %vm10488_vm5, %v10492_v15  ;;  %v1634_v48 = vpop.f32.mrb[9].mxu1 }
 0x3ae   : > { %8090 = vmatprep.mubr.msk.f32.mxu1 %vm1480_vm4, %v1634_v48 }
 0x3af   : > { %8091 = vmatmul.mubr.msk.f32.vlgmr.msra.gmra.mrb[16].mxu1 %vm1480_vm4, %v8036_v45 }
 0x3b0   : > { %8687 = vmatpush3.bf16.xpose.msk.msra.mxu1 %vm10488_vm5, %v10559_v37 }
 0x3b1   : > { %8696 = vmatprep.subr.msk.bf16.mxu1 %vm10488_vm5, %v10510_v12 }
 0x3bd   : > { %v8043_v51 = vpop.f32.mrb[10].mxu0 }
 0x3be   : > { %v1715_v54 = vpop.f32.mrb[11].mxu0 }
 0x3bf   : > { %8097 = vmatprep.mubr.msk.f32.mxu0 %vm1480_vm4, %v1715_v54 }
 0x3c0   : > { %8098 = vmatmul.mubr.msk.f32.vlgmr.msra.gmra.mrb[18].mxu0 %vm1480_vm4, %v8043_v51 }
 0x3c1   : > { %8693 = vmatpush3.bf16.xpose.msk.msra.mxu0 %vm10488_vm5, %v10492_v15 }
 0x3c2   : > { %8702 = vmatprep.subr.msk.bf16.mxu0 %vm10488_vm5, %v10532_v49  ;;  %v8050_v57 = vpop.f32.mrb[10].mxu1 }
 0x3c3   : > { %v1796_v61 = vpop.f32.mrb[11].mxu1 }
 0x3c4   : > { %8104 = vmatprep.mubr.msk.f32.mxu1 %vm1480_vm4, %v1796_v61 }
 0x3c5   : > { %8105 = vmatmul.mubr.msk.f32.vlgmr.msra.gmra.mrb[18].mxu1 %vm1480_vm4, %v8050_v57 }
 0x3c6   : > { %8699 = vmatpush3.bf16.xpose.msk.msra.mxu1 %vm10488_vm5, %v10510_v12 }
 0x3c7   : > { %8708 = vmatprep.subr.msk.bf16.mxu1 %vm10488_vm5, %v10552_v39 }
 0x3cd   : > { %v8057_v62 = vpop.f32.mrb[12].mxu0 }
 0x3ce   : > { %v1877_v63 = vpop.f32.mrb[13].mxu0 }
 0x3cf   : > { %8111 = vmatprep.mubr.msk.f32.mxu0 %vm1480_vm4, %v1877_v63 }
 0x3d0   : > { %8112 = vmatmul.mubr.msk.f32.vlgmr.msra.gmra.mrb[20].mxu0 %vm1480_vm4, %v8057_v62 }
 0x3d1   : > { %8705 = vmatpush3.bf16.xpose.msk.msra.mxu0 %vm10488_vm5, %v10532_v49 }
 0x3d2   : > { %8714 = vmatprep.subr.msk.bf16.mxu0 %vm10292_vm2, %v10501_v23 }
 0x3d6   : > { %v8064_v0 = vpop.f32.mrb[12].mxu1 }
 0x3d7   : > { %v1958_v1 = vpop.f32.mrb[13].mxu1 }
 0x3d8   : > { %8118 = vmatprep.mubr.msk.f32.mxu1 %vm1480_vm4, %v1958_v1 }
 0x3d9   : > { %8119 = vmatmul.mubr.msk.f32.vlgmr.msra.gmra.mrb[20].mxu1 %vm1480_vm4, %v8064_v0 }
 0x3da   : > { %8711 = vmatpush3.bf16.xpose.msk.msra.mxu1 %vm10488_vm5, %v10552_v39 }
 0x3db   : > { %8720 = vmatprep.subr.msk.bf16.mxu1 %vm10292_vm2, %v10517_v14 }
 0x3e5   : > { %v8071_v4 = vpop.f32.mrb[14].mxu0 }
 0x3e6   : > { %v2039_v5 = vpop.f32.mrb[15].mxu0 }
 0x3e7   : > { %8125 = vmatprep.mubr.msk.f32.mxu0 %vm1480_vm4, %v2039_v5 }
 0x3e8   : > { %8126 = vmatmul.mubr.msk.f32.vlgmr.msra.gmra.mrb[22].mxu0 %vm1480_vm4, %v8071_v4 }
 0x3e9   : > { %8717 = vmatpush3.bf16.msk.msra.mxu0 %vm10292_vm2, %v10501_v23 }
 0x3ea   : > { %8726 = vmatprep.subr.msk.bf16.mxu0 %vm10292_vm2, %v10542_v58 }
 0x3ed   : > { %v8078_v6 = vpop.f32.mrb[14].mxu1 }
 0x3ee   : > { %v2120_v7 = vpop.f32.mrb[15].mxu1 }
 0x3ef   : > { %8132 = vmatprep.mubr.msk.f32.mxu1 %vm1480_vm4, %v2120_v7 }
 0x3f0   : > { %8133 = vmatmul.mubr.msk.f32.vlgmr.msra.gmra.mrb[22].mxu1 %vm1480_vm4, %v8078_v6 }
 0x3f1   : > { %8723 = vmatpush3.bf16.msk.msra.mxu1 %vm10292_vm2, %v10517_v14 }
 0x3f2   : > { %8732 = vmatprep.subr.msk.bf16.mxu1 %vm10292_vm2, %v10559_v37 }
 0x47e   : > { %v8085_v9 = vpop.f32.mrb[16].mxu0 }
 0x47f   : > { %v2201_v10 = vpop.f32.mrb[17].mxu0  ;;  %v2781_v11 = vsel %vm2780_vm6, %v8085_v9, -inf }
 0x480   : > { %2782 = vmax.xlane.f32.xlu1 %v2781_v11  ;;  %v2777_v23 = vsel %vm606_vm3, %v2201_v10, -inf }
 0x482   : > { %v8092_v13 = vpop.f32.mrb[16].mxu1 }
 0x483   : > { %v2282_v16 = vpop.f32.mrb[17].mxu1  ;;  %v2787_v20 = vsel %vm2780_vm6, %v8092_v13, -inf }
 0x484   : > { %2788 = vmax.xlane.f32.xlu0 %v2787_v20  ;;  %v2784_v24 = vsel %vm606_vm3, %v2282_v16, -inf }
 0x488   : > { %2778 = vmax.xlane.f32.xlu0 %v2777_v23 }
 0x48c   : > { %2785 = vmax.xlane.f32.xlu0 %v2784_v24 }
 0x493   : > { %v10635_v25 = vpop.f32.mrb[18].mxu0 }
 0x494   : > { %v10637_v26 = vpop.f32.mrb[19].mxu0  ;;  %v2793_v27 = vsel %vm2780_vm6, %v10635_v25, -inf }
 0x495   : > { %2794 = vmax.xlane.f32.xlu0 %v2793_v27  ;;  %v2790_v28 = vsel %vm606_vm3, %v10637_v26, -inf }
 0x496   : > { %2791 = vmax.xlane.f32.xlu1 %v2790_v28 }
 0x498   : > { %v10643_v29 = vpop.f32.mrb[18].mxu1 }
 0x499   : > { %v10645_v8 = vpop.f32.mrb[19].mxu1  ;;  %v2799_v14 = vsel %vm2780_vm6, %v10643_v29, -inf }
 0x49a   : > { %2800 = vmax.xlane.f32.xlu0 %v2799_v14  ;;  %v2796_v17 = vsel %vm606_vm3, %v10645_v8, -inf }
 0x49b   : > { %2797 = vmax.xlane.f32.xlu1 %v2796_v17 }
 0x4a3   : > { %v10651_v30 = vpop.f32.mrb[20].mxu0 }
 0x4a4   : > { %v10653_v31 = vpop.f32.mrb[21].mxu0  ;;  %v2805_v32 = vsel %vm2780_vm6, %v10651_v30, -inf }
 0x4a5   : > { %2806 = vmax.xlane.f32.xlu0 %v2805_v32  ;;  %v2802_v33 = vsel %vm606_vm3, %v10653_v31, -inf }
 0x4a6   : > { %2803 = vmax.xlane.f32.xlu1 %v2802_v33 }
 0x4ac   : > { %v10659_v34 = vpop.f32.mrb[20].mxu1 }
 0x4ad   : > { %v10661_v19 = vpop.f32.mrb[21].mxu1  ;;  %v2811_v18 = vsel %vm2780_vm6, %v10659_v34, -inf }
 0x4ae   : > { %2812 = vmax.xlane.f32.xlu0 %v2811_v18  ;;  %v2808_v21 = vsel %vm606_vm3, %v10661_v19, -inf }
 0x4af   : > { %2809 = vmax.xlane.f32.xlu1 %v2808_v21 }
 0x4bb   : > { %v10667_v22 = vpop.f32.mrb[22].mxu0 }
 0x4bc   : > { %v10669_v47 = vpop.f32.mrb[23].mxu0  ;;  %v2817_v35 = vsel %vm2780_vm6, %v10667_v22, -inf }
 0x4bd   : > { %2818 = vmax.xlane.f32.xlu0 %v2817_v35  ;;  %v2814_v36 = vsel %vm606_vm3, %v10669_v47, -inf }
 0x4be   : > { %2815 = vmax.xlane.f32.xlu1 %v2814_v36 }
 0x4c3   : > { %v10675_v38 = vpop.f32.mrb[22].mxu1 }
 0x4c4   : > { %v10677_v40 = vpop.f32.mrb[23].mxu1  ;;  %v2823_v41 = vsel %vm2780_vm6, %v10675_v38, -inf }
 0x4c5   : > { %2824 = vmax.xlane.f32.xlu0 %v2823_v41  ;;  %v2820_v42 = vsel %vm606_vm3, %v10677_v40, -inf }
 0x4c6   : > { %2821 = vmax.xlane.f32.xlu1 %v2820_v42 }
 0x50d   : > { %v2783_v44 = vpop.xlane.xlu1 %2782 }
 0x50e   : > { %v2827_v46 = vsub.f32 %v8085_v9, %v2783_v44 }
 0x510   : > { %v2844_v50 = vmul.f32 1.442695, %v2827_v46 }
 0x511   : > { %v2789_v52 = vpop.xlane.xlu0 %2788 }
 0x512   : > { %9302 = vpow2.f32 %v2844_v50  ;;  %v2829_v53 = vsub.f32 %v8092_v13, %v2789_v52 }
 0x514   : > { %v2848_v59 = vmul.f32 1.442695, %v2829_v53 }
 0x515   : > { %v2779_v60 = vpop.xlane.xlu0 %2778 }
 0x516   : > { %9304 = vpow2.f32 %v2848_v59  ;;  %v2826_v55 = vsub.f32 %v2201_v10, %v2779_v60 }
 0x518   : > { %v2842_v56 = vmul.f32 1.442695, %v2826_v55 }
 0x519   : > { %v2786_v3 = vpop.xlane.xlu0 %2785 }
 0x51a   : > { %9306 = vpow2.f32 %v2842_v56  ;;  %v2828_v43 = vsub.f32 %v2282_v16, %v2786_v3 }
 0x51c   : > { %v10683_v45 = vpop.eup %9302  ;;  %v2846_v48 = vmul.f32 1.442695, %v2828_v43 }
 0x51d   : > { %v2877_v51 = vsel %vm2780_vm6, %v10683_v45, 0.0 }
 0x51e   : > { %9308 = vpow2.f32 %v2846_v48  ;;  %2878 = vadd.xlane.f32.xlu0 %v2877_v51 }
 0x520   : > { %v10687_v54 = vpop.eup %9304 }
 0x521   : > { %v2883_v57 = vsel %vm2780_vm6, %v10687_v54, 0.0 }
 0x522   : > { %2884 = vadd.xlane.f32.xlu0 %v2883_v57  ;;  %v2795_v61 = vpop.xlane.xlu0 %2794 }
 0x523   : > { %v2831_v62 = vsub.f32 %v10635_v25, %v2795_v61  ;;  %v2792_v63 = vpop.xlane.xlu1 %2791 }
 0x524   : > { %v10692_v0 = vpop.eup %9306  ;;  %v2830_v1 = vsub.f32 %v10637_v26, %v2792_v63 }
 0x525   : > { %v2852_v4 = vmul.f32 1.442695, %v2831_v62  ;;  %v2874_v5 = vsel %vm606_vm3, %v10692_v0, 0.0 }
 0x526   : > { %v2850_v6 = vmul.f32 1.442695, %v2830_v1  ;;  %2875 = vadd.xlane.f32.xlu1 %v2874_v5 }
 0x527   : > { %9310 = vpow2.f32 %v2852_v4  ;;  %v2801_v7 = vpop.xlane.xlu0 %2800 }
 0x528   : > { %v10697_v9 = vpop.eup %9308  ;;  %9312 = vpow2.f32 %v2850_v6  ;;  %v2833_v10 = vsub.f32 %v10643_v29, %v2801_v7  ;;  %v2798_v11 = vpop.xlane.xlu1 %2797 }
 0x529   : > { %v2832_v13 = vsub.f32 %v10645_v8, %v2798_v11  ;;  %v2880_v16 = vsel %vm606_vm3, %v10697_v9, 0.0  ;;  %v5558_v11 = vld [vmem:[#allocation14 + $0x8] sm:$0xff] }
 0x52a   : > { %v2856_v20 = vmul.f32 1.442695, %v2833_v10  ;;  %2881 = vadd.xlane.f32.xlu1 %v2880_v16  ;;  %v5563_v16 = vld [vmem:[#allocation14 + $0x30] sm:$0xff] }
 0x52b   : > { %v2854_v23 = vmul.f32 1.442695, %v2832_v13  ;;  %v5561_v13 = vld [vmem:[#allocation14 + $0x20] sm:$0xff] }
 0x52c   : > { %9314 = vpow2.f32 %v2856_v20 }
 0x52d   : > { %9316 = vpow2.f32 %v2854_v23 }
 0x531   : > { %v10703_v24 = vpop.eup %9310 }
 0x532   : > { %v10705_v25 = vpop.eup %9312  ;;  %v2807_v26 = vpop.xlane.xlu0 %2806  ;;  %v2889_v27 = vsel %vm2780_vm6, %v10703_v24, 0.0 }
 0x533   : > { %v2835_v28 = vsub.f32 %v10651_v30, %v2807_v26  ;;  %v2804_v29 = vpop.xlane.xlu1 %2803  ;;  %2890 = vadd.xlane.f32.xlu0 %v2889_v27  ;;  %v2886_v8 = vsel %vm606_vm3, %v10705_v25, 0.0 }
 0x534   : > { %v2834_v14 = vsub.f32 %v10653_v31, %v2804_v29  ;;  %2887 = vadd.xlane.f32.xlu1 %v2886_v8 }
 0x535   : > { %v2860_v17 = vmul.f32 1.442695, %v2835_v28 }
 0x536   : > { %v10713_v32 = vpop.eup %9314  ;;  %v2858_v33 = vmul.f32 1.442695, %v2834_v14 }
 0x537   : > { %v10715_v18 = vpop.eup %9316  ;;  %9318 = vpow2.f32 %v2860_v17  ;;  %v2895_v21 = vsel %vm2780_vm6, %v10713_v32, 0.0 }
 0x538   : > { %9320 = vpow2.f32 %v2858_v33  ;;  %2896 = vadd.xlane.f32.xlu0 %v2895_v21  ;;  %v2892_v30 = vsel %vm606_vm3, %v10715_v18, 0.0 }
 0x539   : > { %2893 = vadd.xlane.f32.xlu1 %v2892_v30 }
 0x53b   : > { %v2813_v35 = vpop.xlane.xlu0 %2812 }
 0x53c   : > { %v2837_v31 = vsub.f32 %v10659_v34, %v2813_v35  ;;  %v2810_v36 = vpop.xlane.xlu1 %2809 }
 0x53d   : > { %v2836_v41 = vsub.f32 %v10661_v19, %v2810_v36 }
 0x53e   : > { %v2864_v42 = vmul.f32 1.442695, %v2837_v31 }
 0x53f   : > { %v2862_v44 = vmul.f32 1.442695, %v2836_v41 }
 0x540   : > { %9322 = vpow2.f32 %v2864_v42 }
 0x541   : > { %v10723_v46 = vpop.eup %9318  ;;  %9324 = vpow2.f32 %v2862_v44 }
 0x542   : > { %v10725_v50 = vpop.eup %9320  ;;  %v2901_v52 = vsel %vm2780_vm6, %v10723_v46, 0.0 }
 0x543   : > { %2902 = vadd.xlane.f32.xlu0 %v2901_v52  ;;  %v2898_v53 = vsel %vm606_vm3, %v10725_v50, 0.0 }
 0x544   : > { %2899 = vadd.xlane.f32.xlu1 %v2898_v53 }
 0x54a   : > { %v10731_v34 = vpop.eup %9322  ;;  %v2819_v59 = vpop.xlane.xlu0 %2818 }
 0x54b   : > { %v10733_v19 = vpop.eup %9324  ;;  %v2839_v60 = vsub.f32 %v10667_v22, %v2819_v59  ;;  %v2816_v55 = vpop.xlane.xlu1 %2815  ;;  %v2907_v56 = vsel %vm2780_vm6, %v10731_v34, 0.0 }
 0x54c   : > { %v2838_v3 = vsub.f32 %v10669_v47, %v2816_v55  ;;  %2908 = vadd.xlane.f32.xlu0 %v2907_v56  ;;  %v2904_v43 = vsel %vm606_vm3, %v10733_v19, 0.0 }
 0x54d   : > { %v2868_v48 = vmul.f32 1.442695, %v2839_v60  ;;  %2905 = vadd.xlane.f32.xlu1 %v2904_v43 }
 0x54e   : > { %v2866_v51 = vmul.f32 1.442695, %v2838_v3 }
 0x54f   : > { %9326 = vpow2.f32 %v2868_v48 }
 0x550   : > { %9328 = vpow2.f32 %v2866_v51 }
 0x552   : > { %v2825_v57 = vpop.xlane.xlu0 %2824 }
 0x553   : > { %v2841_v61 = vsub.f32 %v10675_v38, %v2825_v57  ;;  %v2822_v62 = vpop.xlane.xlu1 %2821 }
 0x554   : > { %v2840_v22 = vsub.f32 %v10677_v40, %v2822_v62  ;;  %v3626_v62 = vld [vmem:[#allocation12 + $0x40] sm:$0xff] }
 0x555   : > { %v2872_v63 = vmul.f32 1.442695, %v2841_v61  ;;  %v3634_v61 = vld [vmem:[#allocation12 + $0x80] sm:$0xff] }
 0x556   : > { %v2870_v1 = vmul.f32 1.442695, %v2840_v22 }
 0x557   : > { %9330 = vpow2.f32 %v2872_v63 }
 0x558   : > { %9332 = vpow2.f32 %v2870_v1 }
 0x559   : > { %v10743_v47 = vpop.eup %9326 }
 0x55a   : > { %v10745_v4 = vpop.eup %9328  ;;  %v2913_v5 = vsel %vm2780_vm6, %v10743_v47, 0.0 }
 0x55b   : > { %2914 = vadd.xlane.f32.xlu0 %v2913_v5  ;;  %v2910_v6 = vsel %vm606_vm3, %v10745_v4, 0.0 }
 0x55c   : > { %2911 = vadd.xlane.f32.xlu1 %v2910_v6 }
 0x561   : > { %v10751_v38 = vpop.eup %9330 }
 0x562   : > { %v10753_v7 = vpop.eup %9332  ;;  %v2919_v40 = vsel %vm2780_vm6, %v10751_v38, 0.0 }
 0x563   : > { %2920 = vadd.xlane.f32.xlu0 %v2919_v40  ;;  %v2916_v10 = vsel %vm606_vm3, %v10753_v7, 0.0 }
 0x564   : > { %2917 = vadd.xlane.f32.xlu1 %v2916_v10 }
 0x579   : > { %5572 = vperm.xlu0 %9219, %v5558_v11  }
 0x57d   : > { %5587 = vperm.xlu0 %9219, %v5561_v13  }
 0x581   : > { %5597 = vperm.xlu0 %9219, %v5563_v16  }
 0x5ab   : > { %v2879_v20 = vpop.xlane.xlu0 %2878 }
 0x5ac   : > { %9334 = vrcp.f32 %v2879_v20 }
 0x5af   : > { %v2885_v26 = vpop.xlane.xlu0 %2884 }
 0x5b3   : > { %v2876_v23 = vpop.xlane.xlu1 %2875 }
 0x5b4   : > { %9336 = vrcp.f32 %v2876_v23 }
 0x5b5   : > { %9338 = vrcp.f32 %v2885_v26 }
 0x5b6   : > { %v9335_v28 = vpop.eup %9334 }
 0x5b7   : > { %v2882_v27 = vpop.xlane.xlu1 %2881  ;;  %v2939_v14 = vmul.f32 %v9335_v28, %v10683_v45 }
 0x5b8   : > { %9340 = vrcp.f32 %v2882_v27 }
 0x5be   : > { %v9337_v29 = vpop.eup %9336 }
 0x5bf   : > { %v2938_v8 = vmul.f32 %v9337_v29, %v10692_v0  ;;  %v9339_v33 = vpop.eup %9338 }
 0x5c0   : > { %v2891_v17 = vpop.xlane.xlu0 %2890  ;;  %v2941_v0 = vmul.f32 %v9339_v33, %v10687_v54 }
 0x5c1   : > { %9342 = vrcp.f32 %v2891_v17  ;;  %8139 = vmatprep.mubr.msk.f32.mxu0 %vm606_vm3, %v2938_v8  ;;  %v2888_v21 = vpop.xlane.xlu1 %2887 }
 0x5c2   : > { %v9341_v30 = vpop.eup %9340  ;;  %8140 = vmatmul.mubr.msk.f32.vlgmr.msra.gmra.mrb[24].mxu0 %vm606_vm3, %v2939_v14  ;;  %9344 = vrcp.f32 %v2888_v21 }
 0x5c3   : > { %8729 = vmatpush3.bf16.msk.msra.mxu0 %vm10292_vm2, %v10542_v58  ;;  %v2940_v35 = vmul.f32 %v9341_v30, %v10697_v9 }
 0x5c4   : > { %8738 = vmatprep.subr.msk.bf16.mxu0 %vm10292_vm2, %v10492_v15 }
 0x5c5   : > { %8146 = vmatprep.mubr.msk.f32.mxu1 %vm606_vm3, %v2940_v35  ;;  %v2897_v45 = vpop.xlane.xlu0 %2896 }
 0x5c6   : > { %9346 = vrcp.f32 %v2897_v45  ;;  %8147 = vmatmul.mubr.msk.f32.vlgmr.msra.gmra.mrb[24].mxu1 %vm606_vm3, %v2941_v0  ;;  %v2894_v31 = vpop.xlane.xlu1 %2893 }
 0x5c7   : > { %8735 = vmatpush3.bf16.msk.msra.mxu1 %vm10292_vm2, %v10559_v37  ;;  %9348 = vrcp.f32 %v2894_v31 }
 0x5c8   : > { %8744 = vmatprep.subr.msk.bf16.mxu1 %vm10292_vm2, %v10510_v12 }
 0x5cb   : > { %v9343_v58 = vpop.eup %9342 }
 0x5cc   : > { %v9345_v54 = vpop.eup %9344  ;;  %v2943_v36 = vmul.f32 %v9343_v58, %v10703_v24 }
 0x5cd   : > { %v2942_v9 = vmul.f32 %v9345_v54, %v10705_v25 }
 0x5cf   : > { %8153 = vmatprep.mubr.msk.f32.mxu0 %vm606_vm3, %v2942_v9 }
 0x5d0   : > { %v9347_v41 = vpop.eup %9346  ;;  %v2903_v42 = vpop.xlane.xlu0 %2902  ;;  %8154 = vmatmul.mubr.msk.f32.vlgmr.msra.gmra.mrb[26].mxu0 %vm606_vm3, %v2943_v36 }
 0x5d1   : > { %v9349_v44 = vpop.eup %9348  ;;  %9350 = vrcp.f32 %v2903_v42  ;;  %8741 = vmatpush3.bf16.msk.msra.mxu0 %vm10292_vm2, %v10492_v15  ;;  %v2900_v37 = vpop.xlane.xlu1 %2899  ;;  %v2945_v25 = vmul.f32 %v9347_v41, %v10713_v32 }
 0x5d2   : > { %9352 = vrcp.f32 %v2900_v37  ;;  %8750 = vmatprep.subr.msk.bf16.mxu0 %vm10292_vm2, %v10532_v49  ;;  %v2944_v24 = vmul.f32 %v9349_v44, %v10715_v18 }
 0x5d4   : > { %8160 = vmatprep.mubr.msk.f32.mxu1 %vm606_vm3, %v2944_v24 }
 0x5d5   : > { %8161 = vmatmul.mubr.msk.f32.vlgmr.msra.gmra.mrb[26].mxu1 %vm606_vm3, %v2945_v25 }
 0x5d6   : > { %8747 = vmatpush3.bf16.msk.msra.mxu1 %vm10292_vm2, %v10510_v12 }
 0x5d7   : > { %8756 = vmatprep.subr.msk.bf16.mxu1 %vm10292_vm2, %v10552_v39 }
 0x5d9   : > { %v2909_v15 = vpop.xlane.xlu0 %2908 }
 0x5da   : > { %9354 = vrcp.f32 %v2909_v15  ;;  %v2906_v52 = vpop.xlane.xlu1 %2905 }
 0x5db   : > { %v9351_v53 = vpop.eup %9350  ;;  %9356 = vrcp.f32 %v2906_v52 }
 0x5dc   : > { %v9353_v18 = vpop.eup %9352  ;;  %v2947_v59 = vmul.f32 %v9351_v53, %v10723_v46 }
 0x5dd   : > { %v2946_v32 = vmul.f32 %v9353_v18, %v10725_v50 }
 0x5df   : > { %8167 = vmatprep.mubr.msk.f32.mxu0 %vm606_vm3, %v2946_v32 }
 0x5e0   : > { %8168 = vmatmul.mubr.msk.f32.vlgmr.msra.gmra.mrb[28].mxu0 %vm606_vm3, %v2947_v59 }
 0x5e1   : > { %8753 = vmatpush3.bf16.msk.msra.mxu0 %vm10292_vm2, %v10532_v49 }
 0x5e4   : > { %v9355_v12 = vpop.eup %9354 }
 0x5e5   : > { %v9357_v60 = vpop.eup %9356  ;;  %v2949_v56 = vmul.f32 %v9355_v12, %v10731_v34 }
 0x5e6   : > { %v2948_v55 = vmul.f32 %v9357_v60, %v10733_v19 }
 0x5e8   : > { %v2915_v3 = vpop.xlane.xlu0 %2914  ;;  %8174 = vmatprep.mubr.msk.f32.mxu1 %vm606_vm3, %v2948_v55 }
 0x5e9   : > { %9358 = vrcp.f32 %v2915_v3  ;;  %8175 = vmatmul.mubr.msk.f32.vlgmr.msra.gmra.mrb[28].mxu1 %vm606_vm3, %v2949_v56  ;;  %v2912_v46 = vpop.xlane.xlu1 %2911 }
 0x5ea   : > { %8759 = vmatpush3.bf16.msk.msra.mxu1 %vm10292_vm2, %v10552_v39  ;;  %9360 = vrcp.f32 %v2912_v46 }
 0x5f0   : > { %v2921_v50 = vpop.xlane.xlu0 %2920 }
 0x5f1   : > { %9362 = vrcp.f32 %v2921_v50  ;;  %v2918_v49 = vpop.xlane.xlu1 %2917 }
 0x5f2   : > { %9364 = vrcp.f32 %v2918_v49 }
 0x5f3   : > { %v9359_v43 = vpop.eup %9358 }
 0x5f4   : > { %v9361_v19 = vpop.eup %9360  ;;  %v2951_v48 = vmul.f32 %v9359_v43, %v10743_v47 }
 0x5f5   : > { %v2950_v34 = vmul.f32 %v9361_v19, %v10745_v4 }
 0x5f7   : > { %8181 = vmatprep.mubr.msk.f32.mxu0 %vm606_vm3, %v2950_v34 }
 0x5f8   : > { %8182 = vmatmul.mubr.msk.f32.vlgmr.msra.gmra.mrb[30].mxu0 %vm606_vm3, %v2951_v48 }
 0x5f9   : > { %8221 = vmatprep.mubr.msk.f32.mxu0 %vm1480_vm4, %v3634_v61 }
 0x5fb   : > { %v9363_v51 = vpop.eup %9362 }
 0x5fc   : > { %v9365_v57 = vpop.eup %9364  ;;  %v2953_v39 = vmul.f32 %v9363_v51, %v10751_v38 }
 0x5fd   : > { %v2952_v2 = vmul.f32 %v9365_v57, %v10753_v7 }
 0x5ff   : > { %8188 = vmatprep.mubr.msk.f32.mxu1 %vm606_vm3, %v2952_v2 }
 0x600   : > { %8189 = vmatmul.mubr.msk.f32.vlgmr.msra.gmra.mrb[30].mxu1 %vm606_vm3, %v2953_v39 }
 0x601   : > { %8193 = vmatprep.mubr.msk.f32.mxu1 %vm1480_vm4, %v3626_v62 }
 0x695   : > { %v8141_v22 = vpop.f32.mrb[24].mxu0 }
 0x696   : > { %v3028_v63 = vpop.f32.mrb[25].mxu0  ;;  %v5098_v1 = vrot.slane %v8141_v22, 1  ;;  %v5251_v47 = vrot.slane %v8141_v22, 2  ;;  %v5404_v4 = vrot.slane %v8141_v22, 3 }
 0x697   : > { %v3722_v5 = vrot.slane %v3028_v63, 1  ;;  %v4019_v6 = vrot.slane %v3028_v63, 2  ;;  %v4172_v7 = vrot.slane %v3028_v63, 3  ;;  %v4325_v38 = vrot.slane %v3028_v63, 4 }
 0x698   : > { %v4478_v40 = vrot.slane %v3028_v63, 5  ;;  %v4631_v10 = vrot.slane %v3028_v63, 6  ;;  %v4784_v11 = vrot.slane %v3028_v63, 7 }
 0x699   : > { %v8148_v13 = vpop.f32.mrb[24].mxu1 }
 0x69a   : > { %v4945_v16 = vrot.slane %v8148_v13, 7  ;;  %v5099_v20 = vsel %vm3723_vm7, %v8148_v13, %v5098_v1  ;;  %v5252_v23 = vrot.slane %v8148_v13, 1  ;;  %v5405_v26 = vrot.slane %v8148_v13, 2  ;;  %v3111_v27 = vpop.f32.mrb[25].mxu1 }
 0x69b   : > { %v3874_v28 = vrot.slane %v3111_v27, 7  ;;  %v4020_v29 = vrot.slane %v3111_v27, 1  ;;  %v4173_v8 = vrot.slane %v3111_v27, 2  ;;  %v4326_v14 = vrot.slane %v3111_v27, 3 }
 0x69c   : > { %v4946_v17 = vsel %vm3723_vm7, %v4945_v16, %v8141_v22  ;;  %v4479_v33 = vrot.slane %v3111_v27, 4  ;;  %v4632_v21 = vrot.slane %v3111_v27, 5  ;;  %v4785_v30 = vrot.slane %v3111_v27, 6 }
 0x69d   : > { %v5253_v35 = vsel %vm3723_vm7, %v5252_v23, %v5251_v47  ;;  %v5406_v0 = vsel %vm3723_vm7, %v5405_v26, %v5404_v4  ;;  %v3724_v45 = vsel %vm3723_vm7, %v3111_v27, %v3722_v5  ;;  %v4021_v31 = vsel %vm3723_vm7, %v4020_v29, %v4019_v6 }
 0x69e   : > { %v3875_v58 = vsel %vm3723_vm7, %v3874_v28, %v3028_v63  ;;  %v4174_v54 = vsel %vm3723_vm7, %v4173_v8, %v4172_v7  ;;  %v4327_v9 = vsel %vm3723_vm7, %v4326_v14, %v4325_v38  ;;  %v4480_v36 = vsel %vm3723_vm7, %v4479_v33, %v4478_v40 }
 0x69f   : > { %v4633_v41 = vsel %vm3723_vm7, %v4632_v21, %v4631_v10  ;;  %v4786_v42 = vsel %vm3723_vm7, %v4785_v30, %v4784_v11 }
 0x6a3   : > { %v8155_v44 = vpop.f32.mrb[26].mxu0 }
 0x6a4   : > { %v4947_v37 = vrot.slane %v8155_v44, 6  ;;  %v5100_v24 = vrot.slane %v8155_v44, 7  ;;  %v5254_v25 = vsel %vm3726_vm8, %v8155_v44, %v5253_v35  ;;  %v5407_v15 = vrot.slane %v8155_v44, 1  ;;  %v3194_v52 = vpop.f32.mrb[27].mxu0 }
 0x6a5   : > { %v3725_v53 = vrot.slane %v3194_v52, 7  ;;  %v4022_v18 = vsel %vm3726_vm8, %v3194_v52, %v4021_v31  ;;  %v3876_v32 = vrot.slane %v3194_v52, 6  ;;  %v4175_v59 = vrot.slane %v3194_v52, 1 }
 0x6a6   : > { %v4948_v12 = vsel %vm3726_vm8, %v4947_v37, %v4946_v17  ;;  %v5101_v60 = vsel %vm3726_vm8, %v5100_v24, %v5099_v20  ;;  %v5408_v55 = vsel %vm3726_vm8, %v5407_v15, %v5406_v0  ;;  %v4328_v56 = vrot.slane %v3194_v52, 2 }
 0x6a7   : > { %v3727_v3 = vsel %vm3726_vm8, %v3725_v53, %v3724_v45  ;;  %v3877_v46 = vsel %vm3726_vm8, %v3876_v32, %v3875_v58  ;;  %v4176_v50 = vsel %vm3726_vm8, %v4175_v59, %v4174_v54  ;;  %v4481_v19 = vrot.slane %v3194_v52, 3 }
 0x6a8   : > { %v8162_v49 = vpop.f32.mrb[26].mxu1  ;;  %v4329_v43 = vsel %vm3726_vm8, %v4328_v56, %v4327_v9  ;;  %v4634_v34 = vrot.slane %v3194_v52, 4  ;;  %v4787_v48 = vrot.slane %v3194_v52, 5 }
 0x6a9   : > { %v4949_v51 = vrot.slane %v8162_v49, 5  ;;  %v5102_v57 = vrot.slane %v8162_v49, 6  ;;  %v5255_v2 = vrot.slane %v8162_v49, 7  ;;  %v5409_v39 = vsel %vm3729_vm9, %v8162_v49, %v5408_v55  ;;  %v3277_v61 = vpop.f32.mrb[27].mxu1 }
 0x6aa   : > { %v3728_v62 = vrot.slane %v3277_v61, 6  ;;  %v4023_v22 = vrot.slane %v3277_v61, 7  ;;  %v3878_v63 = vrot.slane %v3277_v61, 5  ;;  %v4177_v1 = vsel %vm3729_vm9, %v3277_v61, %v4176_v50 }
 0x6ab   : > { %v4950_v47 = vsel %vm3729_vm9, %v4949_v51, %v4948_v12  ;;  %v5103_v4 = vsel %vm3729_vm9, %v5102_v57, %v5101_v60  ;;  %v5256_v5 = vsel %vm3729_vm9, %v5255_v2, %v5254_v25  ;;  %v4330_v6 = vrot.slane %v3277_v61, 1 }
 0x6ac   : > { %v3730_v7 = vsel %vm3729_vm9, %v3728_v62, %v3727_v3  ;;  %v4024_v38 = vsel %vm3729_vm9, %v4023_v22, %v4022_v18  ;;  %v3879_v40 = vsel %vm3729_vm9, %v3878_v63, %v3877_v46  ;;  %v4482_v10 = vsel %vm3726_vm8, %v4481_v19, %v4480_v36 }
 0x6ad   : > { %v4331_v11 = vsel %vm3729_vm9, %v4330_v6, %v4329_v43  ;;  %v4483_v13 = vrot.slane %v3277_v61, 2  ;;  %v4635_v16 = vsel %vm3726_vm8, %v4634_v34, %v4633_v41  ;;  %v4636_v20 = vrot.slane %v3277_v61, 3 }
 0x6ae   : > { %v4788_v23 = vsel %vm3726_vm8, %v4787_v48, %v4786_v42  ;;  %v4789_v26 = vrot.slane %v3277_v61, 4 }
 0x6af   : > { %v4484_v27 = vsel %vm3729_vm9, %v4483_v13, %v4482_v10  ;;  %v4637_v28 = vsel %vm3729_vm9, %v4636_v20, %v4635_v16 }
 0x6b0   : > { %v4790_v29 = vsel %vm3729_vm9, %v4789_v26, %v4788_v23 }
 0x6b3   : > { %v8169_v8 = vpop.f32.mrb[28].mxu0 }
 0x6b4   : > { %v4951_v14 = vrot.slane %v8169_v8, 4  ;;  %v5104_v17 = vrot.slane %v8169_v8, 5  ;;  %v5257_v33 = vrot.slane %v8169_v8, 6  ;;  %v5410_v21 = vrot.slane %v8169_v8, 7  ;;  %v3360_v30 = vpop.f32.mrb[29].mxu0 }
 0x6b5   : > { %v3731_v35 = vrot.slane %v3360_v30, 5  ;;  %v4025_v0 = vrot.slane %v3360_v30, 6  ;;  %v3880_v45 = vrot.slane %v3360_v30, 4  ;;  %v4178_v31 = vrot.slane %v3360_v30, 7 }
 0x6b6   : > { %v4332_v58 = vsel %vm3732_vm10, %v3360_v30, %v4331_v11  ;;  %v4485_v54 = vrot.slane %v3360_v30, 1  ;;  %v4638_v9 = vrot.slane %v3360_v30, 2  ;;  %v4791_v36 = vrot.slane %v3360_v30, 3 }
 0x6b7   : > { %v3733_v41 = vsel %vm3732_vm10, %v3731_v35, %v3730_v7  ;;  %v4026_v42 = vsel %vm3732_vm10, %v4025_v0, %v4024_v38  ;;  %v3881_v44 = vsel %vm3732_vm10, %v3880_v45, %v3879_v40  ;;  %v4179_v37 = vsel %vm3732_vm10, %v4178_v31, %v4177_v1 }
 0x6b8   : > { %v4486_v24 = vsel %vm3732_vm10, %v4485_v54, %v4484_v27  ;;  %v4639_v25 = vsel %vm3732_vm10, %v4638_v9, %v4637_v28  ;;  %v4792_v15 = vsel %vm3732_vm10, %v4791_v36, %v4790_v29  ;;  %v4952_v52 = vsel %vm3732_vm10, %v4951_v14, %v4950_v47 }
 0x6b9   : > { %v5105_v53 = vsel %vm3732_vm10, %v5104_v17, %v5103_v4  ;;  %v5258_v18 = vsel %vm3732_vm10, %v5257_v33, %v5256_v5  ;;  %v5411_v32 = vsel %vm3732_vm10, %v5410_v21, %v5409_v39 }
 0x6bc   : > { %v8176_v59 = vpop.f32.mrb[28].mxu1 }
 0x6bd   : > { %v4953_v12 = vrot.slane %v8176_v59, 3  ;;  %v5106_v60 = vrot.slane %v8176_v59, 4  ;;  %v5259_v55 = vrot.slane %v8176_v59, 5  ;;  %v5412_v56 = vrot.slane %v8176_v59, 6  ;;  %v3443_v3 = vpop.f32.mrb[29].mxu1 }
 0x6be   : > { %v3734_v46 = vrot.slane %v3443_v3, 4  ;;  %v4027_v50 = vrot.slane %v3443_v3, 5  ;;  %v3882_v49 = vrot.slane %v3443_v3, 3  ;;  %v4180_v43 = vrot.slane %v3443_v3, 6 }
 0x6bf   : > { %v4333_v19 = vrot.slane %v3443_v3, 7  ;;  %v4487_v34 = vsel %vm3735_vm11, %v3443_v3, %v4486_v24  ;;  %v4640_v48 = vrot.slane %v3443_v3, 1  ;;  %v4793_v51 = vrot.slane %v3443_v3, 2 }
 0x6c0   : > { %v3736_v57 = vsel %vm3735_vm11, %v3734_v46, %v3733_v41  ;;  %v4028_v2 = vsel %vm3735_vm11, %v4027_v50, %v4026_v42  ;;  %v3883_v39 = vsel %vm3735_vm11, %v3882_v49, %v3881_v44  ;;  %v4181_v61 = vsel %vm3735_vm11, %v4180_v43, %v4179_v37  ;;  %v3635_v50 = vld [vmem:[#allocation12 + $0x88] sm:$0xff] }
 0x6c1   : > { %v4334_v62 = vsel %vm3735_vm11, %v4333_v19, %v4332_v58  ;;  %v4641_v22 = vsel %vm3735_vm11, %v4640_v48, %v4639_v25  ;;  %v4794_v63 = vsel %vm3735_vm11, %v4793_v51, %v4792_v15  ;;  %v4954_v1 = vsel %vm3735_vm11, %v4953_v12, %v4952_v52  ;;  %v3627_v49 = vld [vmem:[#allocation12 + $0x48] sm:$0xff]  ;;  %v3636_v51 = vld [vmem:[#allocation12 + $0x90] sm:$0xff] }
 0x6c2   : > { %v5107_v47 = vsel %vm3735_vm11, %v5106_v60, %v5105_v53  ;;  %v5260_v4 = vsel %vm3735_vm11, %v5259_v55, %v5258_v18  ;;  %v5413_v5 = vsel %vm3735_vm11, %v5412_v56, %v5411_v32 }
 0x6cb   : > { %v8183_v6 = vpop.f32.mrb[30].mxu0 }
 0x6cc   : > { %v4955_v7 = vrot.slane %v8183_v6, 2  ;;  %v5108_v38 = vrot.slane %v8183_v6, 3  ;;  %v5261_v40 = vrot.slane %v8183_v6, 4  ;;  %v5414_v10 = vrot.slane %v8183_v6, 5  ;;  %v3526_v11 = vpop.f32.mrb[31].mxu0  ;;  %v3642_v6 = vld [vmem:[#allocation12 + $0xc0] sm:$0xff] }
 0x6cd   : > { %v3737_v13 = vrot.slane %v3526_v11, 3  ;;  %v4029_v16 = vrot.slane %v3526_v11, 4  ;;  %v3884_v20 = vrot.slane %v3526_v11, 2  ;;  %v4182_v23 = vrot.slane %v3526_v11, 5 }
 0x6ce   : > { %v4335_v26 = vrot.slane %v3526_v11, 6  ;;  %v4488_v27 = vrot.slane %v3526_v11, 7  ;;  %v4642_v28 = vsel %vm3738_vm12, %v3526_v11, %v4641_v22  ;;  %v4795_v29 = vrot.slane %v3526_v11, 1  ;;  %v3639_v22 = vld [vmem:[#allocation12 + $0xa8] sm:$0xff]  ;;  %v3620_v11 = vld [vmem:[#allocation12 + $0x10] sm:$0xff] }
 0x6cf   : > { %v3739_v8 = vsel %vm3738_vm12, %v3737_v13, %v3736_v57  ;;  %v4030_v14 = vsel %vm3738_vm12, %v4029_v16, %v4028_v2  ;;  %v3885_v17 = vsel %vm3738_vm12, %v3884_v20, %v3883_v39  ;;  %v4183_v33 = vsel %vm3738_vm12, %v4182_v23, %v4181_v61  ;;  %v3628_v57 = vld [vmem:[#allocation12 + $0x50] sm:$0xff]  ;;  %v3637_v2 = vld [vmem:[#allocation12 + $0x98] sm:$0xff]  ;;  %v3638_v61 = vld [vmem:[#allocation12 + $0xa0] sm:$0xff] }
 0x6d0   : > { %v4336_v21 = vsel %vm3738_vm12, %v4335_v26, %v4334_v62  ;;  %v4489_v30 = vsel %vm3738_vm12, %v4488_v27, %v4487_v34  ;;  %v4796_v35 = vsel %vm3738_vm12, %v4795_v29, %v4794_v63  ;;  %v4956_v0 = vsel %vm3738_vm12, %v4955_v7, %v4954_v1  ;;  %v3629_v39 = vld [vmem:[#allocation12 + $0x58] sm:$0xff]  ;;  %v3630_v62 = vld [vmem:[#allocation12 + $0x60] sm:$0xff]  ;;  %v3631_v63 = vld [vmem:[#allocation12 + $0x68] sm:$0xff] }
 0x6d1   : > { %v5109_v45 = vsel %vm3738_vm12, %v5108_v38, %v5107_v47  ;;  %v5262_v31 = vsel %vm3738_vm12, %v5261_v40, %v5260_v4  ;;  %v5415_v58 = vsel %vm3738_vm12, %v5414_v10, %v5413_v5  ;;  %v3640_v1 = vld [vmem:[#allocation12 + $0xb0] sm:$0xff]  ;;  %v3641_v4 = vld [vmem:[#allocation12 + $0xb8] sm:$0xff]  ;;  %v3618_v7 = vld [vmem:[#allocation12] sm:$0xff] }
 0x6d2   : > { %v3632_v47 = vld [vmem:[#allocation12 + $0x70] sm:$0xff]  ;;  %v3633_v5 = vld [vmem:[#allocation12 + $0x78] sm:$0xff]  ;;  %v3643_v38 = vld [vmem:[#allocation12 + $0xc8] sm:$0xff] }
 0x6d3   : > { %v8190_v54 = vpop.f32.mrb[30].mxu1  ;;  %v3619_v40 = vld [vmem:[#allocation12 + $0x8] sm:$0xff]  ;;  %v3644_v10 = vld [vmem:[#allocation12 + $0xd0] sm:$0xff]  ;;  %v3645_v13 = vld [vmem:[#allocation12 + $0xd8] sm:$0xff] }
 0x6d4   : > { %v4957_v9 = vrot.slane %v8190_v54, 1  ;;  %v5110_v36 = vrot.slane %v8190_v54, 2  ;;  %v5263_v41 = vrot.slane %v8190_v54, 3  ;;  %v5416_v42 = vrot.slane %v8190_v54, 4  ;;  %v3609_v44 = vpop.f32.mrb[31].mxu1  ;;  %v3621_v16 = vld [vmem:[#allocation12 + $0x18] sm:$0xff] }
 0x6d5   : > { %v3740_v37 = vrot.slane %v3609_v44, 2  ;;  %v4031_v24 = vrot.slane %v3609_v44, 3  ;;  %v3886_v25 = vrot.slane %v3609_v44, 1  ;;  %v4184_v15 = vrot.slane %v3609_v44, 4  ;;  %v3646_v20 = vld [vmem:[#allocation12 + $0xe0] sm:$0xff]  ;;  %v3647_v26 = vld [vmem:[#allocation12 + $0xe8] sm:$0xff] }
 0x6d6   : > { %v4337_v52 = vrot.slane %v3609_v44, 5  ;;  %v4490_v53 = vrot.slane %v3609_v44, 6  ;;  %v4643_v18 = vrot.slane %v3609_v44, 7  ;;  %v10896_v32 = vsel %vm3741_vm13, %v3609_v44, %v4796_v35  ;;  %v3622_v23 = vld [vmem:[#allocation12 + $0x20] sm:$0xff]  ;;  %v3623_v27 = vld [vmem:[#allocation12 + $0x28] sm:$0xff]  ;;  %v3624_v29 = vld [vmem:[#allocation12 + $0x30] sm:$0xff] }
 0x6d7   : > { %v3742_v59 = vsel %vm3741_vm13, %v3740_v37, %v3739_v8  ;;  %v4032_v12 = vsel %vm3741_vm13, %v4031_v24, %v4030_v14  ;;  %v3887_v60 = vsel %vm3741_vm13, %v3886_v25, %v3885_v17  ;;  %v4185_v55 = vsel %vm3741_vm13, %v4184_v15, %v4183_v33  ;;  %v3649_v8 = vld [vmem:[#allocation12 + $0xf8] sm:$0xff]  ;;  %v3650_v17 = vld [vmem:[#allocation12 + $0x100] sm:$0xff]  ;;  %v5559_v35 = vld [vmem:[#allocation14 + $0x10] sm:$0xff] }
 0x6d8   : > { %8191 = vmatprep.subr.msk.mxu1 %vm1480_vm4, %v3742_v59  ;;  %8219 = vmatprep.subr.msk.mxu0 %vm1480_vm4, %v4032_v12  ;;  %v4338_v56 = vsel %vm3741_vm13, %v4337_v52, %v4336_v21  ;;  %v10906_v3 = vsel %vm3741_vm13, %v4490_v53, %v4489_v30  ;;  %v10909_v46 = vsel %vm3741_vm13, %v4643_v18, %v4642_v28  ;;  %v3648_v28 = vld [vmem:[#allocation12 + $0xf0] sm:$0xff]  ;;  %v3625_v14 = vld [vmem:[#allocation12 + $0x38] sm:$0xff]  ;;  %v5557_v33 = vld [vmem:[#allocation14] sm:$0xff] }
 0x6d9   : > { %8192 = vmatpush3.xpose.msk.msra.mxu1 %vm1480_vm4, %v3742_v59  ;;  %8220 = vmatpush3.xpose.msk.msra.mxu0 %vm1480_vm4, %v4032_v12  ;;  %v10914_v43 = vsel %vm3741_vm13, %v4957_v9, %v4956_v0  ;;  %v10917_v19 = vsel %vm3741_vm13, %v5110_v36, %v5109_v45  ;;  %v10920_v34 = vsel %vm3741_vm13, %v5263_v41, %v5262_v31  ;;  %v3651_v21 = vld [vmem:[#allocation12 + $0x108] sm:$0xff]  ;;  %v3652_v30 = vld [vmem:[#allocation12 + $0x110] sm:$0xff]  ;;  %v3653_v0 = vld [vmem:[#allocation12 + $0x118] sm:$0xff] }
 0x6da   : > { %8205 = vmatprep.subr.msk.mxu1 %vm1480_vm4, %v3887_v60  ;;  %8233 = vmatprep.subr.msk.mxu0 %vm1480_vm4, %v4185_v55  ;;  %v10925_v48 = vsel %vm3741_vm13, %v5416_v42, %v5415_v58  ;;  %v3654_v45 = vld [vmem:[#allocation12 + $0x120] sm:$0xff]  ;;  %v5560_v31 = vld [vmem:[#allocation14 + $0x18] sm:$0xff]  ;;  %v3655_v58 = vld [vmem:[#allocation12 + $0x128] sm:$0xff] }
 0x6db   : > { %5567 = vperm.xlu1 %9221, %v5557_v33   ;;  %v3656_v54 = vld [vmem:[#allocation12 + $0x130] sm:$0xff]  ;;  %v5562_v9 = vld [vmem:[#allocation14 + $0x28] sm:$0xff]  ;;  %v3657_v36 = vld [vmem:[#allocation12 + $0x138] sm:$0xff] }
 0x6dc   : > { %8222 = vmatmul.mubr.msk.f32.vlgmr.msra.gmra.mrb[32].mxu0 %vm1480_vm4, %v3635_v50  ;;  %8194 = vmatmul.mubr.msk.f32.vlgmr.msra.gmra.mrb[32].mxu1 %vm1480_vm4, %v3627_v49  ;;  %v3658_v41 = vld [vmem:[#allocation12 + $0x140] sm:$0xff]  ;;  %v5564_v42 = vld [vmem:[#allocation14 + $0x38] sm:$0xff]  ;;  %v3659_v44 = vld [vmem:[#allocation12 + $0x148] sm:$0xff] }
 0x6dd   : > { %8206 = vmatpush3.xpose.msk.msra.mxu1 %vm1480_vm4, %v3887_v60  ;;  %8234 = vmatpush3.xpose.msk.msra.mxu0 %vm1480_vm4, %v4185_v55  ;;  %v3660_v37 = vld [vmem:[#allocation12 + $0x150] sm:$0xff]  ;;  %v3661_v24 = vld [vmem:[#allocation12 + $0x158] sm:$0xff]  ;;  %v3662_v25 = vld [vmem:[#allocation12 + $0x160] sm:$0xff] }
 0x6de   : > { %8247 = vmatprep.subr.msk.mxu0 %vm1480_vm4, %v4338_v56  ;;  %8224 = vmatprep.mubr.msk.f32.mxu0 %vm1480_vm4, %v3636_v51  ;;  %v3663_v15 = vld [vmem:[#allocation12 + $0x168] sm:$0xff]  ;;  %v3664_v52 = vld [vmem:[#allocation12 + $0x170] sm:$0xff]  ;;  %v3665_v53 = vld [vmem:[#allocation12 + $0x178] sm:$0xff] }
 0x6df   : > { %8196 = vmatprep.mubr.msk.f32.mxu1 %vm1480_vm4, %v3628_v57  ;;  %5577 = vperm.xlu1 %9221, %v5559_v35   ;;  %v3666_v18 = vld [vmem:[#allocation12 + $0x180] sm:$0xff]  ;;  %v3667_v59 = vld [vmem:[#allocation12 + $0x188] sm:$0xff]  ;;  %v3668_v12 = vld [vmem:[#allocation12 + $0x190] sm:$0xff] }
 0x6e0   : > { %8225 = vmatmul.mubr.msk.f32.gmra.mrb[34].mxu0 %vm1480_vm4, %v3637_v2  ;;  %8197 = vmatmul.mubr.msk.f32.gmra.mrb[34].mxu1 %vm1480_vm4, %v3629_v39  ;;  %v3669_v60 = vld [vmem:[#allocation12 + $0x198] sm:$0xff]  ;;  %v3670_v55 = vld [vmem:[#allocation12 + $0x1a0] sm:$0xff]  ;;  %v3676_v49 = vld [vmem:[#allocation12 + $0x1d0] sm:$0xff] }
 0x6e1   : > { %8227 = vmatprep.mubr.msk.f32.mxu0 %vm1480_vm4, %v3638_v61  ;;  %8199 = vmatprep.mubr.msk.f32.mxu1 %vm1480_vm4, %v3630_v62  ;;  %v3674_v50 = vld [vmem:[#allocation12 + $0x1c0] sm:$0xff]  ;;  %v3677_v51 = vld [vmem:[#allocation12 + $0x1d8] sm:$0xff]  ;;  %v3679_v2 = vld [vmem:[#allocation12 + $0x1e8] sm:$0xff] }
 0x6e2   : > { %v3678_v57 = vld [vmem:[#allocation12 + $0x1e0] sm:$0xff]  ;;  %v3680_v39 = vld [vmem:[#allocation12 + $0x1f0] sm:$0xff]  ;;  %v3681_v61 = vld [vmem:[#allocation12 + $0x1f8] sm:$0xff] }
 0x6e3   : > { %5582 = vperm.xlu1 %9221, %v5560_v31   ;;  %v3682_v62 = vld [vmem:[#allocation12 + $0x200] sm:$0xff]  ;;  %v3713_v35 = vld [vmem:[#allocation12 + $0x2f8] sm:$0xff] }
 0x6e4   : > { %8228 = vmatmul.mubr.msk.f32.gmra.mrb[36].mxu0 %vm1480_vm4, %v3639_v22  ;;  %8200 = vmatmul.mubr.msk.f32.gmra.mrb[36].mxu1 %vm1480_vm4, %v3631_v63  ;;  %v3684_v22 = vld [vmem:[#allocation12 + $0x210] sm:$0xff]  ;;  %v3685_v63 = vld [vmem:[#allocation12 + $0x218] sm:$0xff]  ;;  %v3710_v33 = vld [vmem:[#allocation12 + $0x2e0] sm:$0xff] }
 0x6e5   : > { %8230 = vmatprep.mubr.msk.f32.mxu0 %vm1480_vm4, %v3640_v1  ;;  %8202 = vmatprep.mubr.msk.f32.mxu1 %vm1480_vm4, %v3632_v47  ;;  %v3686_v1 = vld [vmem:[#allocation12 + $0x220] sm:$0xff]  ;;  %v3687_v47 = vld [vmem:[#allocation12 + $0x228] sm:$0xff] }
 0x6e7   : > { %5592 = vperm.xlu1 %9221, %v5562_v9  }
 0x6e8   : > { %8231 = vmatmul.mubr.msk.f32.gmra.mrb[38].mxu0 %vm1480_vm4, %v3641_v4  ;;  %8203 = vmatmul.mubr.msk.f32.gmra.mrb[38].mxu1 %vm1480_vm4, %v3633_v5  ;;  %v3688_v4 = vld [vmem:[#allocation12 + $0x230] sm:$0xff]  ;;  %v3689_v5 = vld [vmem:[#allocation12 + $0x238] sm:$0xff] }
 0x6e9   : > { %8235 = vmatprep.mubr.msk.f32.mxu0 %vm1480_vm4, %v3642_v6  ;;  %8207 = vmatprep.mubr.msk.f32.mxu1 %vm1480_vm4, %v3618_v7  ;;  %v3690_v6 = vld [vmem:[#allocation12 + $0x240] sm:$0xff]  ;;  %v3692_v7 = vld [vmem:[#allocation12 + $0x250] sm:$0xff] }
 0x6eb   : > { %5602 = vperm.xlu1 %9221, %v5564_v42   ;;  %v9813_v42 = vmov 0.0  }
 0x6ec   : > { %8236 = vmatmul.mubr.msk.f32.vlgmr.msra.gmra.mrb[32].mxu0 %vm1480_vm4, %v3643_v38  ;;  %8208 = vmatmul.mubr.msk.f32.vlgmr.msra.gmra.mrb[32].mxu1 %vm1480_vm4, %v3619_v40  ;;  %v3693_v38 = vld [vmem:[#allocation12 + $0x258] sm:$0xff]  ;;  %v3694_v40 = vld [vmem:[#allocation12 + $0x260] sm:$0xff]  ;;  %5622 = vst.msk [vmem:[#allocation2 + $0x8] sm:$0xff] %vm606_vm3, %v9813_v42  ;;  %5621 = vst.msk [vmem:[#allocation2] sm:$0xff] %vm606_vm3, %v9813_v42 }
 0x6ed   : > { %8248 = vmatpush3.xpose.msk.msra.mxu0 %vm1480_vm4, %v4338_v56  ;;  %8238 = vmatprep.mubr.msk.f32.mxu0 %vm1480_vm4, %v3644_v10  ;;  %v3671_v56 = vld [vmem:[#allocation12 + $0x1a8] sm:$0xff]  ;;  %5623 = vst.msk [vmem:[#allocation2 + $0x10] sm:$0xff] %vm606_vm3, %v9813_v42  ;;  %5624 = vst.msk [vmem:[#allocation2 + $0x18] sm:$0xff] %vm606_vm3, %v9813_v42 }
 0x6ee   : > { %8261 = vmatprep.subr.msk.mxu0 %vm1480_vm4, %v10906_v3  ;;  %8210 = vmatprep.mubr.msk.f32.mxu1 %vm1480_vm4, %v3620_v11  ;;  %v3695_v10 = vld [vmem:[#allocation12 + $0x268] sm:$0xff]  ;;  %v3696_v11 = vld [vmem:[#allocation12 + $0x270] sm:$0xff]  ;;  %5625 = vst.msk [vmem:[#allocation2 + $0x20] sm:$0xff] %vm606_vm3, %v9813_v42  ;;  %5626 = vst.msk [vmem:[#allocation2 + $0x28] sm:$0xff] %vm606_vm3, %v9813_v42 }
 0x6ef   : > { %5627 = vst.msk [vmem:[#allocation2 + $0x30] sm:$0xff] %vm606_vm3, %v9813_v42  ;;  %5628 = vst.msk [vmem:[#allocation2 + $0x38] sm:$0xff] %vm606_vm3, %v9813_v42 }
 0x6f0   : > { %8239 = vmatmul.mubr.msk.f32.gmra.mrb[34].mxu0 %vm1480_vm4, %v3645_v13  ;;  %8211 = vmatmul.mubr.msk.f32.gmra.mrb[34].mxu1 %vm1480_vm4, %v3621_v16  ;;  %v3697_v13 = vld [vmem:[#allocation12 + $0x278] sm:$0xff]  ;;  %v3698_v16 = vld [vmem:[#allocation12 + $0x280] sm:$0xff] }
 0x6f1   : > { %8241 = vmatprep.mubr.msk.f32.mxu0 %vm1480_vm4, %v3646_v20  ;;  %8213 = vmatprep.mubr.msk.f32.mxu1 %vm1480_vm4, %v3622_v23  ;;  %v3700_v20 = vld [vmem:[#allocation12 + $0x290] sm:$0xff]  ;;  %v3701_v23 = vld [vmem:[#allocation12 + $0x298] sm:$0xff] }
 0x6f4   : > { %8242 = vmatmul.mubr.msk.f32.gmra.mrb[36].mxu0 %vm1480_vm4, %v3647_v26  ;;  %8214 = vmatmul.mubr.msk.f32.gmra.mrb[36].mxu1 %vm1480_vm4, %v3623_v27  ;;  %v3702_v26 = vld [vmem:[#allocation12 + $0x2a0] sm:$0xff]  ;;  %v3703_v27 = vld [vmem:[#allocation12 + $0x2a8] sm:$0xff] }
 0x6f5   : > { %8244 = vmatprep.mubr.msk.f32.mxu0 %vm1480_vm4, %v3648_v28  ;;  %8216 = vmatprep.mubr.msk.f32.mxu1 %vm1480_vm4, %v3624_v29  ;;  %v3704_v28 = vld [vmem:[#allocation12 + $0x2b0] sm:$0xff]  ;;  %v3705_v29 = vld [vmem:[#allocation12 + $0x2b8] sm:$0xff] }
 0x6f8   : > { %8245 = vmatmul.mubr.msk.f32.gmra.mrb[38].mxu0 %vm1480_vm4, %v3649_v8  ;;  %8217 = vmatmul.mubr.msk.f32.gmra.mrb[38].mxu1 %vm1480_vm4, %v3625_v14  ;;  %v3706_v8 = vld [vmem:[#allocation12 + $0x2c0] sm:$0xff]  ;;  %v3708_v14 = vld [vmem:[#allocation12 + $0x2d0] sm:$0xff] }
 0x6f9   : > { %8249 = vmatprep.mubr.msk.f32.mxu0 %vm1480_vm4, %v3650_v17  ;;  %v3709_v17 = vld [vmem:[#allocation12 + $0x2d8] sm:$0xff] }
 0x6fc   : > { %8250 = vmatmul.mubr.msk.f32.vlgmr.msra.gmra.mrb[32].mxu0 %vm1480_vm4, %v3651_v21  ;;  %v3711_v21 = vld [vmem:[#allocation12 + $0x2e8] sm:$0xff] }
 0x6fd   : > { %8262 = vmatpush3.xpose.msk.msra.mxu0 %vm1480_vm4, %v10906_v3  ;;  %8252 = vmatprep.mubr.msk.f32.mxu0 %vm1480_vm4, %v3652_v30  ;;  %v3672_v3 = vld [vmem:[#allocation12 + $0x1b0] sm:$0xff] }
 0x6fe   : > { %8275 = vmatprep.subr.msk.mxu0 %vm1480_vm4, %v10909_v46  ;;  %v3712_v30 = vld [vmem:[#allocation12 + $0x2f0] sm:$0xff] }
 0x700   : > { %8253 = vmatmul.mubr.msk.f32.gmra.mrb[34].mxu0 %vm1480_vm4, %v3653_v0 }
 0x701   : > { %8255 = vmatprep.mubr.msk.f32.mxu0 %vm1480_vm4, %v3654_v45 }
 0x704   : > { %8256 = vmatmul.mubr.msk.f32.gmra.mrb[36].mxu0 %vm1480_vm4, %v3655_v58 }
 0x705   : > { %8258 = vmatprep.mubr.msk.f32.mxu0 %vm1480_vm4, %v3656_v54 }
 0x708   : > { %8259 = vmatmul.mubr.msk.f32.gmra.mrb[38].mxu0 %vm1480_vm4, %v3657_v36 }
 0x709   : > { %8263 = vmatprep.mubr.msk.f32.mxu0 %vm1480_vm4, %v3658_v41 }
 0x70c   : > { %8264 = vmatmul.mubr.msk.f32.vlgmr.msra.gmra.mrb[32].mxu0 %vm1480_vm4, %v3659_v44 }
 0x70d   : > { %8276 = vmatpush3.xpose.msk.msra.mxu0 %vm1480_vm4, %v10909_v46  ;;  %8266 = vmatprep.mubr.msk.f32.mxu0 %vm1480_vm4, %v3660_v37  ;;  %v3673_v46 = vld [vmem:[#allocation12 + $0x1b8] sm:$0xff] }
 0x70e   : > { %8289 = vmatprep.subr.msk.mxu0 %vm1480_vm4, %v10896_v32 }
 0x710   : > { %8267 = vmatmul.mubr.msk.f32.gmra.mrb[34].mxu0 %vm1480_vm4, %v3661_v24 }
 0x711   : > { %8269 = vmatprep.mubr.msk.f32.mxu0 %vm1480_vm4, %v3662_v25 }
 0x714   : > { %8270 = vmatmul.mubr.msk.f32.gmra.mrb[36].mxu0 %vm1480_vm4, %v3663_v15 }
 0x715   : > { %8272 = vmatprep.mubr.msk.f32.mxu0 %vm1480_vm4, %v3664_v52  ;;  %v5573_v52 = vpop.permute.xlu0 %5572 }
 0x718   : > { %8273 = vmatmul.mubr.msk.f32.gmra.mrb[38].mxu0 %vm1480_vm4, %v3665_v53 }
 0x719   : > { %8277 = vmatprep.mubr.msk.f32.mxu0 %vm1480_vm4, %v3666_v18 }
 0x71c   : > { %8278 = vmatmul.mubr.msk.f32.vlgmr.msra.gmra.mrb[32].mxu0 %vm1480_vm4, %v3667_v59 }
 0x71d   : > { %8290 = vmatpush3.xpose.msk.msra.mxu0 %vm1480_vm4, %v10896_v32  ;;  %8280 = vmatprep.mubr.msk.f32.mxu0 %vm1480_vm4, %v3668_v12  ;;  %v3675_v32 = vld [vmem:[#allocation12 + $0x1c8] sm:$0xff] }
 0x71e   : > { %8303 = vmatprep.subr.msk.mxu0 %vm1480_vm4, %v10914_v43 }
 0x720   : > { %8281 = vmatmul.mubr.msk.f32.gmra.mrb[34].mxu0 %vm1480_vm4, %v3669_v60 }
 0x721   : > { %8283 = vmatprep.mubr.msk.f32.mxu0 %vm1480_vm4, %v3670_v55 }
 0x724   : > { %8284 = vmatmul.mubr.msk.f32.gmra.mrb[36].mxu0 %vm1480_vm4, %v3671_v56 }
 0x725   : > { %8286 = vmatprep.mubr.msk.f32.mxu0 %vm1480_vm4, %v3672_v3 }
 0x728   : > { %8287 = vmatmul.mubr.msk.f32.gmra.mrb[38].mxu0 %vm1480_vm4, %v3673_v46 }
 0x729   : > { %8291 = vmatprep.mubr.msk.f32.mxu0 %vm1480_vm4, %v3674_v50 }
 0x72c   : > { %8292 = vmatmul.mubr.msk.f32.vlgmr.msra.gmra.mrb[32].mxu0 %vm1480_vm4, %v3675_v32 }
 0x72d   : > { %8304 = vmatpush3.xpose.msk.msra.mxu0 %vm1480_vm4, %v10914_v43  ;;  %8294 = vmatprep.mubr.msk.f32.mxu0 %vm1480_vm4, %v3676_v49  ;;  %v3683_v43 = vld [vmem:[#allocation12 + $0x208] sm:$0xff] }
 0x72e   : > { %8317 = vmatprep.subr.msk.mxu0 %vm1480_vm4, %v10917_v19 }
 0x730   : > { %8295 = vmatmul.mubr.msk.f32.gmra.mrb[34].mxu0 %vm1480_vm4, %v3677_v51 }
 0x731   : > { %8297 = vmatprep.mubr.msk.f32.mxu0 %vm1480_vm4, %v3678_v57 }
 0x734   : > { %8298 = vmatmul.mubr.msk.f32.gmra.mrb[36].mxu0 %vm1480_vm4, %v3679_v2 }
 0x735   : > { %8300 = vmatprep.mubr.msk.f32.mxu0 %vm1480_vm4, %v3680_v39  ;;  %v5588_v39 = vpop.permute.xlu0 %5587 }
 0x738   : > { %8301 = vmatmul.mubr.msk.f32.gmra.mrb[38].mxu0 %vm1480_vm4, %v3681_v61 }
 0x739   : > { %8305 = vmatprep.mubr.msk.f32.mxu0 %vm1480_vm4, %v3682_v62 }
 0x73c   : > { %8306 = vmatmul.mubr.msk.f32.vlgmr.msra.gmra.mrb[32].mxu0 %vm1480_vm4, %v3683_v43 }
 0x73d   : > { %8318 = vmatpush3.xpose.msk.msra.mxu0 %vm1480_vm4, %v10917_v19  ;;  %8308 = vmatprep.mubr.msk.f32.mxu0 %vm1480_vm4, %v3684_v22  ;;  %v3691_v19 = vld [vmem:[#allocation12 + $0x248] sm:$0xff] }
 0x73e   : > { %8331 = vmatprep.subr.msk.mxu0 %vm1480_vm4, %v10920_v34 }
 0x740   : > { %8309 = vmatmul.mubr.msk.f32.gmra.mrb[34].mxu0 %vm1480_vm4, %v3685_v63 }
 0x741   : > { %8311 = vmatprep.mubr.msk.f32.mxu0 %vm1480_vm4, %v3686_v1 }
 0x744   : > { %8312 = vmatmul.mubr.msk.f32.gmra.mrb[36].mxu0 %vm1480_vm4, %v3687_v47 }
 0x745   : > { %8314 = vmatprep.mubr.msk.f32.mxu0 %vm1480_vm4, %v3688_v4 }
 0x748   : > { %8315 = vmatmul.mubr.msk.f32.gmra.mrb[38].mxu0 %vm1480_vm4, %v3689_v5 }
 0x749   : > { %8319 = vmatprep.mubr.msk.f32.mxu0 %vm1480_vm4, %v3690_v6 }
 0x74c   : > { %8320 = vmatmul.mubr.msk.f32.vlgmr.msra.gmra.mrb[32].mxu0 %vm1480_vm4, %v3691_v19 }
 0x74d   : > { %8332 = vmatpush3.xpose.msk.msra.mxu0 %vm1480_vm4, %v10920_v34  ;;  %8322 = vmatprep.mubr.msk.f32.mxu0 %vm1480_vm4, %v3692_v7  ;;  %v3699_v34 = vld [vmem:[#allocation12 + $0x288] sm:$0xff] }
 0x74e   : > { %8345 = vmatprep.subr.msk.mxu0 %vm1480_vm4, %v10925_v48 }
 0x750   : > { %8323 = vmatmul.mubr.msk.f32.gmra.mrb[34].mxu0 %vm1480_vm4, %v3693_v38 }
 0x751   : > { %8325 = vmatprep.mubr.msk.f32.mxu0 %vm1480_vm4, %v3694_v40 }
 0x754   : > { %8326 = vmatmul.mubr.msk.f32.gmra.mrb[36].mxu0 %vm1480_vm4, %v3695_v10 }
 0x755   : > { %8328 = vmatprep.mubr.msk.f32.mxu0 %vm1480_vm4, %v3696_v11  ;;  %v5598_v11 = vpop.permute.xlu0 %5597 }
 0x758   : > { %8329 = vmatmul.mubr.msk.f32.gmra.mrb[38].mxu0 %vm1480_vm4, %v3697_v13 }
 0x759   : > { %8333 = vmatprep.mubr.msk.f32.mxu0 %vm1480_vm4, %v3698_v16 }
 0x75a   : > { %v5568_v44 = vpop.permute.xlu1 %5567 }
 0x75c   : > { %8334 = vmatmul.mubr.msk.f32.vlgmr.msra.gmra.mrb[32].mxu0 %vm1480_vm4, %v3699_v34 }
 0x75d   : > { %8346 = vmatpush3.xpose.msk.msra.mxu0 %vm1480_vm4, %v10925_v48  ;;  %8336 = vmatprep.mubr.msk.f32.mxu0 %vm1480_vm4, %v3700_v20  ;;  %v3707_v48 = vld [vmem:[#allocation12 + $0x2c8] sm:$0xff] }
 0x75e   : > { %v5578_v37 = vpop.permute.xlu1 %5577 }
 0x760   : > { %8337 = vmatmul.mubr.msk.f32.gmra.mrb[34].mxu0 %vm1480_vm4, %v3701_v23 }
 0x761   : > { %8339 = vmatprep.mubr.msk.f32.mxu0 %vm1480_vm4, %v3702_v26 }
 0x762   : > { %v5583_v53 = vpop.permute.xlu1 %5582 }
 0x764   : > { %8340 = vmatmul.mubr.msk.f32.gmra.mrb[36].mxu0 %vm1480_vm4, %v3703_v27 }
 0x765   : > { %8342 = vmatprep.mubr.msk.f32.mxu0 %vm1480_vm4, %v3704_v28 }
 0x766   : > { %v5593_v49 = vpop.permute.xlu1 %5592 }
 0x768   : > { %8343 = vmatmul.mubr.msk.f32.gmra.mrb[38].mxu0 %vm1480_vm4, %v3705_v29 }
 0x769   : > { %8347 = vmatprep.mubr.msk.f32.mxu0 %vm1480_vm4, %v3706_v8 }
 0x76a   : > { %v5603_v38 = vpop.permute.xlu1 %5602 }
 0x76c   : > { %8348 = vmatmul.mubr.msk.f32.vlgmr.msra.gmra.mrb[32].mxu0 %vm1480_vm4, %v3707_v48 }
 0x76d   : > { %8350 = vmatprep.mubr.msk.f32.mxu0 %vm1480_vm4, %v3708_v14 }
 0x770   : > { %8351 = vmatmul.mubr.msk.f32.gmra.mrb[34].mxu0 %vm1480_vm4, %v3709_v17 }
 0x771   : > { %8353 = vmatprep.mubr.msk.f32.mxu0 %vm1480_vm4, %v3710_v33 }
 0x774   : > { %8354 = vmatmul.mubr.msk.f32.gmra.mrb[36].mxu0 %vm1480_vm4, %v3711_v21 }
 0x775   : > { %8356 = vmatprep.mubr.msk.f32.mxu0 %vm1480_vm4, %v3712_v30 }
 0x778   : > { %8357 = vmatmul.mubr.msk.f32.gmra.mrb[38].mxu0 %vm1480_vm4, %v3713_v35 }
 0x7bf   : > { %v8209_v0 = vpop.f32.mrb[32].mxu1 }
 0x7c0   : > { %v3980_v45 = vpop.f32.mrb[33].mxu1 }
 0x7c3   : > { %v8212_v31 = vpop.f32.mrb[34].mxu1 }
 0x7c4   : > { %v3990_v58 = vpop.f32.mrb[35].mxu1 }
 0x7c7   : > { %v8215_v54 = vpop.f32.mrb[36].mxu1 }
 0x7c8   : > { %v4000_v9 = vpop.f32.mrb[37].mxu1 }
 0x7cb   : > { %v8218_v36 = vpop.f32.mrb[38].mxu1 }
 0x7cc   : > { %v4010_v41 = vpop.f32.mrb[39].mxu1 }
 0x83f   : > { %v8349_v24 = vpop.f32.mrb[32].mxu0 }
 0x840   : > { %v8904_v25 = vadd.f32 %v8349_v24, %v8209_v0  ;;  %v5510_v15 = vpop.f32.mrb[33].mxu0  ;;  %v6156_v24 = vld [vmem:[#allocation17 + $0x10] sm:$0xff] }
 0x841   : > { %v8905_v18 = vadd.f32 %v5510_v15, %v3980_v45  ;;  %v6158_v15 = vld [vmem:[#allocation17 + $0x20] sm:$0xff] }
 0x842   : > { %v5606_v59 = vadd.f32 %v8904_v25, %v5573_v52  ;;  %v6155_v25 = vld [vmem:[#allocation17 + $0x8] sm:$0xff]  ;;  %v6157_v52 = vld [vmem:[#allocation17 + $0x18] sm:$0xff] }
 0x843   : > { %v5605_v12 = vadd.f32 %v8905_v18, %v5568_v44  ;;  %v8352_v60 = vpop.f32.mrb[34].mxu0  ;;  %v6159_v18 = vld [vmem:[#allocation17 + $0x28] sm:$0xff] }
 0x844   : > { %v5614_v55 = vmax.f32 %v5606_v59, 0.0  ;;  %v8906_v56 = vadd.f32 %v8352_v60, %v8212_v31  ;;  %v5520_v3 = vpop.f32.mrb[35].mxu0  ;;  %v6161_v59 = vld [vmem:[#allocation17 + $0x38] sm:$0xff] }
 0x845   : > { %v5613_v46 = vmax.f32 %v5605_v12, 0.0  ;;  %v8907_v50 = vadd.f32 %v5520_v3, %v3990_v58 }
 0x846   : > { %v5608_v32 = vadd.f32 %v8906_v56, %v5583_v53  ;;  %5663 = vrot.lane.b32.xlu1 %v5614_v55, %s9814_s17  ;;  %v6160_v53 = vld [vmem:[#allocation17 + $0x30] sm:$0xff] }
 0x847   : > { %v5607_v51 = vadd.f32 %v8907_v50, %v5578_v37  ;;  %v8355_v57 = vpop.f32.mrb[36].mxu0  ;;  %5661 = vrot.lane.b32.xlu0 %v5613_v46, %s9814_s17  ;;  %v11063_v2 = vpack.c.bf16 %v5614_v55, %v5613_v46  ;;  %v6154_v37 = vld [vmem:[#allocation17] sm:$0xff] }
 0x848   : > { %v5616_v61 = vmax.f32 %v5608_v32, 0.0  ;;  %v8908_v62 = vadd.f32 %v8355_v57, %v8215_v54  ;;  %v5530_v43 = vpop.f32.mrb[37].mxu0 }
 0x849   : > { %v5615_v22 = vmax.f32 %v5607_v51, 0.0  ;;  %v8909_v63 = vadd.f32 %v5530_v43, %v4000_v9  ;;  %v5629_v9 = vld [vmem:[#allocation15] sm:$0xff] }
 0x84a   : > { %v5610_v1 = vadd.f32 %v8908_v62, %v5593_v49  ;;  %5667 = vrot.lane.b32.xlu1 %v5616_v61, %s9814_s17  ;;  %8375 = vmatprep.mubr.msk.f32.mxu1 %vm5734_vm15, %v5629_v9  ;;  %v5649_v9 = vld [vmem:[#allocation15 + $0xa0] sm:$0xff] }
 0x84b   : > { %v5609_v47 = vadd.f32 %v8909_v63, %v5588_v39  ;;  %v8358_v4 = vpop.f32.mrb[38].mxu0  ;;  %5665 = vrot.lane.b32.xlu0 %v5615_v22, %s9814_s17  ;;  %v11067_v5 = vpack.c.bf16 %v5616_v61, %v5615_v22  ;;  %v5630_v63 = vld [vmem:[#allocation15 + $0x8] sm:$0xff] }
 0x84c   : > { %v5618_v6 = vmax.f32 %v5610_v1, 0.0  ;;  %v8910_v19 = vadd.f32 %v8358_v4, %v8218_v36  ;;  %v5540_v7 = vpop.f32.mrb[39].mxu0  ;;  %v5631_v1 = vld [vmem:[#allocation15 + $0x10] sm:$0xff]  ;;  %v5633_v4 = vld [vmem:[#allocation15 + $0x20] sm:$0xff] }
 0x84d   : > { %v5617_v40 = vmax.f32 %v5609_v47, 0.0  ;;  %v8911_v10 = vadd.f32 %v5540_v7, %v4010_v41  ;;  %v5632_v47 = vld [vmem:[#allocation15 + $0x18] sm:$0xff]  ;;  %v5635_v7 = vld [vmem:[#allocation15 + $0x30] sm:$0xff] }
 0x84e   : > { %v5612_v13 = vadd.f32 %v8910_v19, %v5603_v38  ;;  %5671 = vrot.lane.b32.xlu1 %v5618_v6, %s9814_s17  ;;  %v5634_v19 = vld [vmem:[#allocation15 + $0x28] sm:$0xff] }
 0x84f   : > { %v5611_v16 = vadd.f32 %v8911_v10, %v5598_v11  ;;  %5669 = vrot.lane.b32.xlu0 %v5617_v40, %s9814_s17  ;;  %v11071_v34 = vpack.c.bf16 %v5618_v6, %v5617_v40  ;;  %v5636_v10 = vld [vmem:[#allocation15 + $0x38] sm:$0xff]  ;;  %v5637_v11 = vld [vmem:[#allocation15 + $0x40] sm:$0xff] }
 0x850   : > { %v5620_v20 = vmax.f32 %v5612_v13, 0.0 }
 0x851   : > { %v5619_v23 = vmax.f32 %v5611_v16, 0.0 }
 0x852   : > { %5675 = vrot.lane.b32.xlu1 %v5620_v20, %s9814_s17 }
 0x853   : > { %5673 = vrot.lane.b32.xlu0 %v5619_v23, %s9814_s17  ;;  %v11075_v26 = vpack.c.bf16 %v5620_v20, %v5619_v23  ;;  %v5638_v23 = vld [vmem:[#allocation15 + $0x48] sm:$0xff] }
 0x8b8   : > { %v5664_v27 = vpop.permute.xlu1 %5663 }
 0x8b9   : > { %5687 = vst.msk [vmem:[#allocation2 + $0x8] sm:$0xff] %vm5685_vm14, %v5664_v27  ;;  %v5662_v28 = vpop.permute.xlu0 %5661  ;;  %v5639_v27 = vld [vmem:[#allocation15 + $0x50] sm:$0xff] }
 0x8ba   : > { %5686 = vst.msk [vmem:[#allocation2] sm:$0xff] %vm5685_vm14, %v5662_v28 }
 0x8bc   : > { %v5668_v29 = vpop.permute.xlu1 %5667 }
 0x8bd   : > { %5689 = vst.msk [vmem:[#allocation2 + $0x18] sm:$0xff] %vm5685_vm14, %v5668_v29  ;;  %v5666_v8 = vpop.permute.xlu0 %5665 }
 0x8be   : > { %5688 = vst.msk [vmem:[#allocation2 + $0x10] sm:$0xff] %vm5685_vm14, %v5666_v8 }
 0x8c0   : > { %v5672_v48 = vpop.permute.xlu1 %5671  ;;  %v5695_v14 = vld [vmem:[#allocation2 + $0x8] sm:$0xff] }
 0x8c1   : > { %5691 = vst.msk [vmem:[#allocation2 + $0x28] sm:$0xff] %vm5685_vm14, %v5672_v48  ;;  %v5670_v17 = vpop.permute.xlu0 %5669  ;;  %v5694_v33 = vld [vmem:[#allocation2] sm:$0xff] }
 0x8c2   : > { %5690 = vst.msk [vmem:[#allocation2 + $0x20] sm:$0xff] %vm5685_vm14, %v5670_v17  ;;  %v9222_v21 = vpack.i.bf16 %v5695_v14, %v5694_v33  ;;  %v5640_v48 = vld [vmem:[#allocation15 + $0x58] sm:$0xff]  ;;  %v5641_v14 = vld [vmem:[#allocation15 + $0x60] sm:$0xff] }
 0x8c4   : > { %9223 = vrot.lane.b32.xlu0 %v9222_v21, %s9815_s26  ;;  %v5676_v30 = vpop.permute.xlu1 %5675  ;;  %v5697_v35 = vld [vmem:[#allocation2 + $0x18] sm:$0xff] }
 0x8c5   : > { %5693 = vst.msk [vmem:[#allocation2 + $0x38] sm:$0xff] %vm5685_vm14, %v5676_v30  ;;  %v5674_v0 = vpop.permute.xlu0 %5673  ;;  %v5696_v45 = vld [vmem:[#allocation2 + $0x10] sm:$0xff] }
 0x8c6   : > { %5692 = vst.msk [vmem:[#allocation2 + $0x30] sm:$0xff] %vm5685_vm14, %v5674_v0  ;;  %v9227_v31 = vpack.i.bf16 %v5697_v35, %v5696_v45  ;;  %v5643_v30 = vld [vmem:[#allocation15 + $0x70] sm:$0xff]  ;;  %v5644_v0 = vld [vmem:[#allocation15 + $0x78] sm:$0xff]  ;;  %v5645_v45 = vld [vmem:[#allocation15 + $0x80] sm:$0xff] }
 0x8c8   : > { %9228 = vrot.lane.b32.xlu1 %v9227_v31, %s9815_s26  ;;  %v5699_v58 = vld [vmem:[#allocation2 + $0x28] sm:$0xff] }
 0x8c9   : > { %v5698_v54 = vld [vmem:[#allocation2 + $0x20] sm:$0xff] }
 0x8ca   : > { %v9232_v36 = vpack.i.bf16 %v5699_v58, %v5698_v54  ;;  %v5647_v58 = vld [vmem:[#allocation15 + $0x90] sm:$0xff]  ;;  %v5648_v54 = vld [vmem:[#allocation15 + $0x98] sm:$0xff] }
 0x8cc   : > { %9233 = vrot.lane.b32.xlu0 %v9232_v36, %s9815_s26  ;;  %v5701_v41 = vld [vmem:[#allocation2 + $0x38] sm:$0xff] }
 0x8cd   : > { %v5700_v42 = vld [vmem:[#allocation2 + $0x30] sm:$0xff] }
 0x8ce   : > { %v9237_v44 = vpack.i.bf16 %v5701_v41, %v5700_v42  ;;  %v5651_v41 = vld [vmem:[#allocation15 + $0xb0] sm:$0xff]  ;;  %v5652_v42 = vld [vmem:[#allocation15 + $0xb8] sm:$0xff] }
 0x8d0   : > { %9243 = vrot.lane.b32.xlu0 %v9222_v21, %s9816_s25  ;;  %9238 = vrot.lane.b32.xlu1 %v9237_v44, %s9815_s26  ;;  %v5642_v21 = vld [vmem:[#allocation15 + $0x68] sm:$0xff] }
 0x8d4   : > { %9253 = vrot.lane.b32.xlu0 %v9232_v36, %s9816_s25  ;;  %9248 = vrot.lane.b32.xlu1 %v9227_v31, %s9816_s25  ;;  %v5646_v31 = vld [vmem:[#allocation15 + $0x88] sm:$0xff] }
 0x8d5   : > { %v5650_v36 = vld [vmem:[#allocation15 + $0xa8] sm:$0xff] }
 0x8d8   : > { %6164 = vperm.xlu0 %9219, %v6154_v37   ;;  %9258 = vrot.lane.b32.xlu1 %v9237_v44, %s9816_s25  ;;  %s7117_s25 = scalar_lea.sflag [#allocation5], %s10256_s28 }
 0x8dc   : > { %6174 = vperm.xlu0 %9219, %v6156_v24   ;;  %6169 = vperm.xlu1 %9221, %v6155_v25  }
 0x8e0   : > { %6184 = vperm.xlu0 %9219, %v6158_v15   ;;  %6179 = vperm.xlu1 %9221, %v6157_v52  }
 0x8e4   : > { %6194 = vperm.xlu0 %9219, %v6160_v53   ;;  %6189 = vperm.xlu1 %9221, %v6159_v18  }
 0x8e8   : > { %6199 = vperm.xlu1 %9221, %v6161_v59  }
 0x936   : > { %v9224_v12 = vpop.permute.xlu0 %9223 }
 0x937   : > { %v9226_v60 = vunpack.i.h.bf16 %v9224_v12  ;;  %v9225_v55 = vunpack.i.l.bf16 %v9224_v12 }
 0x939   : > { %v8760_v56 = vpack.c.bf16 %v9226_v60, %v9225_v55 }
 0x93a   : > { %v9229_v3 = vpop.permute.xlu1 %9228 }
 0x93b   : > { %v9231_v46 = vunpack.i.h.bf16 %v9229_v3  ;;  %v9230_v50 = vunpack.i.l.bf16 %v9229_v3  ;;  %8761 = vmatprep.subr.bf16.mxu1 %v8760_v56 }
 0x93c   : > { %8763 = vmatpush3.bf16.msra.mxu1 %v8760_v56 }
 0x93d   : > { %v8764_v32 = vpack.c.bf16 %v9231_v46, %v9230_v50 }
 0x93e   : > { %v9234_v49 = vpop.permute.xlu0 %9233 }
 0x93f   : > { %v9236_v51 = vunpack.i.h.bf16 %v9234_v49  ;;  %v9235_v57 = vunpack.i.l.bf16 %v9234_v49  ;;  %8765 = vmatprep.subr.bf16.mxu1 %v8764_v32 }
 0x940   : > { %8767 = vmatpush3.bf16.msra.mxu1 %v8764_v32 }
 0x941   : > { %v8768_v39 = vpack.c.bf16 %v9236_v51, %v9235_v57 }
 0x942   : > { %v9239_v61 = vpop.permute.xlu1 %9238  ;;  %v9244_v6 = vpop.permute.xlu0 %9243 }
 0x943   : > { %v9241_v62 = vunpack.i.h.bf16 %v9239_v61  ;;  %v9240_v43 = vunpack.i.l.bf16 %v9239_v61  ;;  %8769 = vmatprep.subr.bf16.mxu1 %v8768_v39  ;;  %v9246_v38 = vunpack.i.h.bf16 %v9244_v6  ;;  %v9245_v40 = vunpack.i.l.bf16 %v9244_v6 }
 0x944   : > { %8771 = vmatpush3.bf16.msra.mxu1 %v8768_v39 }
 0x945   : > { %v8772_v22 = vpack.c.bf16 %v9241_v62, %v9240_v43 }
 0x946   : > { %v9254_v20 = vpop.permute.xlu0 %9253 }
 0x947   : > { %8773 = vmatprep.subr.bf16.mxu1 %v8772_v22  ;;  %v9255_v28 = vunpack.i.l.bf16 %v9254_v20 }
 0x948   : > { %8775 = vmatpush3.bf16.msra.mxu1 %v8772_v22 }
 0x949   : > { %8777 = vmatprep.subr.bf16.mxu1 %v11063_v2 }
 0x94b   : > { %8376 = vmatmul.mubr.msk.f32.vlgmr.msra.gmra.mrb[40].mxu1 %vm5734_vm15, %v5630_v63 }
 0x94c   : > { %8779 = vmatpush3.bf16.msra.mxu1 %v11063_v2  ;;  %8378 = vmatprep.mubr.msk.f32.mxu1 %vm5734_vm15, %v5631_v1  ;;  %v9249_v2 = vpop.permute.xlu1 %9248 }
 0x94d   : > { %8781 = vmatprep.subr.bf16.mxu1 %v11067_v5  ;;  %v9251_v13 = vunpack.i.h.bf16 %v9249_v2  ;;  %v9250_v16 = vunpack.i.l.bf16 %v9249_v2 }
 0x94f   : > { %8379 = vmatmul.mubr.msk.f32.gmra.mrb[42].mxu1 %vm5734_vm15, %v5632_v47  ;;  %v8796_v29 = vpack.c.bf16 %v9251_v13, %v9250_v16 }
 0x950   : > { %8783 = vmatpush3.bf16.msra.mxu1 %v11067_v5  ;;  %8381 = vmatprep.mubr.msk.f32.mxu1 %vm5734_vm15, %v5633_v4  ;;  %v8792_v5 = vpack.c.bf16 %v9246_v38, %v9245_v40  ;;  %v9259_v8 = vpop.permute.xlu1 %9258 }
 0x951   : > { %8785 = vmatprep.subr.bf16.mxu1 %v11071_v34  ;;  %v9261_v33 = vunpack.i.h.bf16 %v9259_v8 }
 0x953   : > { %8382 = vmatmul.mubr.msk.f32.gmra.mrb[44].mxu1 %vm5734_vm15, %v5634_v19 }
 0x954   : > { %8787 = vmatpush3.bf16.msra.mxu1 %v11071_v34  ;;  %8384 = vmatprep.mubr.msk.f32.mxu1 %vm5734_vm15, %v5635_v7  ;;  %v9256_v34 = vunpack.i.h.bf16 %v9254_v20 }
 0x955   : > { %8789 = vmatprep.subr.bf16.mxu1 %v11075_v26 }
 0x956   : > { %v8800_v17 = vpack.c.bf16 %v9256_v34, %v9255_v28 }
 0x957   : > { %8385 = vmatmul.mubr.msk.f32.gmra.mrb[46].mxu1 %vm5734_vm15, %v5636_v10  ;;  %v6165_v37 = vpop.permute.xlu0 %6164 }
 0x958   : > { %8791 = vmatpush3.bf16.msra.mxu1 %v11075_v26  ;;  %8403 = vmatprep.mubr.msk.f32.mxu1 %vm5734_vm15, %v5637_v11  ;;  %v9260_v26 = vunpack.i.l.bf16 %v9259_v8  ;;  %v6218_v11 = vld [vmem:[#allocation18] sm:$0xff] }
 0x959   : > { %8793 = vmatprep.subr.bf16.mxu1 %v8792_v5 }
 0x95a   : > { %v8804_v35 = vpack.c.bf16 %v9261_v33, %v9260_v26 }
 0x95b   : > { %8404 = vmatmul.mubr.msk.f32.vlgmr.msra.gmra.mrb[40].mxu1 %vm5734_vm15, %v5638_v23  ;;  %v6170_v44 = vpop.permute.xlu1 %6169  ;;  %v6175_v15 = vpop.permute.xlu0 %6174 }
 0x95c   : > { %8795 = vmatpush3.bf16.msra.mxu1 %v8792_v5  ;;  %8406 = vmatprep.mubr.msk.f32.mxu1 %vm5734_vm15, %v5639_v27 }
 0x95d   : > { %8797 = vmatprep.subr.bf16.mxu1 %v8796_v29 }
 0x95f   : > { %8407 = vmatmul.mubr.msk.f32.gmra.mrb[42].mxu1 %vm5734_vm15, %v5640_v48  ;;  %v6180_v24 = vpop.permute.xlu1 %6179  ;;  %v6185_v32 = vpop.permute.xlu0 %6184 }
 0x960   : > { %8799 = vmatpush3.bf16.msra.mxu1 %v8796_v29  ;;  %8409 = vmatprep.mubr.msk.f32.mxu1 %vm5734_vm15, %v5641_v14 }
 0x961   : > { %8801 = vmatprep.subr.bf16.mxu1 %v8800_v17 }
 0x963   : > { %8410 = vmatmul.mubr.msk.f32.gmra.mrb[44].mxu1 %vm5734_vm15, %v5642_v21  ;;  %v6190_v3 = vpop.permute.xlu1 %6189  ;;  %v6195_v4 = vpop.permute.xlu0 %6194 }
 0x964   : > { %8803 = vmatpush3.bf16.msra.mxu1 %v8800_v17  ;;  %8412 = vmatprep.mubr.msk.f32.mxu1 %vm5734_vm15, %v5643_v30 }
 0x965   : > { %8805 = vmatprep.subr.bf16.mxu1 %v8804_v35 }
 0x967   : > { %8413 = vmatmul.mubr.msk.f32.gmra.mrb[46].mxu1 %vm5734_vm15, %v5644_v0  ;;  %v6200_v63 = vpop.permute.xlu1 %6199 }
 0x968   : > { %8807 = vmatpush3.bf16.msra.mxu1 %v8804_v35  ;;  %8431 = vmatprep.mubr.msk.f32.mxu1 %vm5734_vm15, %v5645_v45 }
 0x96b   : > { %8432 = vmatmul.mubr.msk.f32.vlgmr.msra.gmra.mrb[40].mxu1 %vm5734_vm15, %v5646_v31 }
 0x96c   : > { %8434 = vmatprep.mubr.msk.f32.mxu1 %vm5734_vm15, %v5647_v58  ;;  %v6717_v58 = vld [vmem:[#allocation20] sm:$0xff] }
 0x96f   : > { %8435 = vmatmul.mubr.msk.f32.gmra.mrb[42].mxu1 %vm5734_vm15, %v5648_v54 }
 0x970   : > { %8437 = vmatprep.mubr.msk.f32.mxu1 %vm5734_vm15, %v5649_v9 }
 0x973   : > { %8438 = vmatmul.mubr.msk.f32.gmra.mrb[44].mxu1 %vm5734_vm15, %v5650_v36 }
 0x974   : > { %8440 = vmatprep.mubr.msk.f32.mxu1 %vm5734_vm15, %v5651_v41  ;;  %v6719_v41 = vld [vmem:[#allocation20 + $0x10] sm:$0xff] }
 0x977   : > { %8441 = vmatmul.mubr.msk.f32.gmra.mrb[46].mxu1 %vm5734_vm15, %v5652_v42  ;;  %v6718_v42 = vld [vmem:[#allocation20 + $0x8] sm:$0xff] }
 0x978   : > { %8459 = vmatprep.mubr.msk.f32.mxu1 %vm5734_vm15, %v6218_v11 }
 0xa3e   : > { %v8433_v25 = vpop.f32.mrb[40].mxu1 }
 0xa3f   : > { %v6203_v52 = vadd.f32 %v8433_v25, %v6170_v44  ;;  %v6107_v53 = vpop.f32.mrb[41].mxu1  ;;  %v6219_v44 = vld [vmem:[#allocation18 + $0x8] sm:$0xff]  ;;  %v6720_v25 = vld [vmem:[#allocation20 + $0x18] sm:$0xff] }
 0xa40   : > { %v6202_v18 = vadd.f32 %v6165_v37, %v6107_v53  ;;  %v6220_v37 = vld [vmem:[#allocation18 + $0x10] sm:$0xff] }
 0xa41   : > { %v6211_v59 = vmax.f32 %v6203_v52, 0.0  ;;  %v6222_v52 = vld [vmem:[#allocation18 + $0x20] sm:$0xff]  ;;  %v6723_v53 = vld [vmem:[#allocation20 + $0x30] sm:$0xff] }
 0xa42   : > { %v6210_v12 = vmax.f32 %v6202_v18, 0.0  ;;  %v8436_v60 = vpop.f32.mrb[42].mxu1  ;;  %v6722_v18 = vld [vmem:[#allocation20 + $0x28] sm:$0xff] }
 0xa43   : > { %v6205_v55 = vadd.f32 %v8436_v60, %v6180_v24  ;;  %6252 = vrot.lane.b32.xlu1 %v6211_v59, %s9814_s17  ;;  %v6117_v56 = vpop.f32.mrb[43].mxu1  ;;  %v6721_v24 = vld [vmem:[#allocation20 + $0x20] sm:$0xff]  ;;  %v6724_v60 = vld [vmem:[#allocation20 + $0x38] sm:$0xff] }
 0xa44   : > { %v11118_v46 = vpack.c.bf16 %v6211_v59, %v6210_v12  ;;  %v6204_v50 = vadd.f32 %v6175_v15, %v6117_v56  ;;  %6250 = vrot.lane.b32.xlu0 %v6210_v12, %s9814_s17  ;;  %v6221_v15 = vld [vmem:[#allocation18 + $0x18] sm:$0xff]  ;;  %v6223_v59 = vld [vmem:[#allocation18 + $0x28] sm:$0xff]  ;;  %v6224_v12 = vld [vmem:[#allocation18 + $0x30] sm:$0xff] }
 0xa45   : > { %v6213_v49 = vmax.f32 %v6205_v55, 0.0  ;;  %v6225_v55 = vld [vmem:[#allocation18 + $0x38] sm:$0xff]  ;;  %v6226_v56 = vld [vmem:[#allocation18 + $0x40] sm:$0xff] }
 0xa46   : > { %v6212_v51 = vmax.f32 %v6204_v50, 0.0  ;;  %v8439_v57 = vpop.f32.mrb[44].mxu1  ;;  %v6229_v50 = vld [vmem:[#allocation18 + $0x58] sm:$0xff] }
 0xa47   : > { %v6207_v39 = vadd.f32 %v8439_v57, %v6190_v3  ;;  %6256 = vrot.lane.b32.xlu1 %v6213_v49, %s9814_s17  ;;  %v6127_v61 = vpop.f32.mrb[45].mxu1  ;;  %v6227_v3 = vld [vmem:[#allocation18 + $0x48] sm:$0xff]  ;;  %v6233_v57 = vld [vmem:[#allocation18 + $0x78] sm:$0xff] }
 0xa48   : > { %v11122_v62 = vpack.c.bf16 %v6213_v49, %v6212_v51  ;;  %v6206_v43 = vadd.f32 %v6185_v32, %v6127_v61  ;;  %6254 = vrot.lane.b32.xlu0 %v6212_v51, %s9814_s17  ;;  %v6230_v32 = vld [vmem:[#allocation18 + $0x60] sm:$0xff]  ;;  %v6231_v49 = vld [vmem:[#allocation18 + $0x68] sm:$0xff]  ;;  %v6232_v51 = vld [vmem:[#allocation18 + $0x70] sm:$0xff] }
 0xa49   : > { %v6215_v22 = vmax.f32 %v6207_v39, 0.0  ;;  %v6234_v39 = vld [vmem:[#allocation18 + $0x80] sm:$0xff] }
 0xa4a   : > { %v6214_v1 = vmax.f32 %v6206_v43, 0.0  ;;  %v8442_v47 = vpop.f32.mrb[46].mxu1 }
 0xa4b   : > { %v6209_v6 = vadd.f32 %v8442_v47, %v6200_v63  ;;  %6260 = vrot.lane.b32.xlu1 %v6215_v22, %s9814_s17  ;;  %v6137_v19 = vpop.f32.mrb[47].mxu1 }
 0xa4c   : > { %v11126_v7 = vpack.c.bf16 %v6215_v22, %v6214_v1  ;;  %v6208_v38 = vadd.f32 %v6195_v4, %v6137_v19  ;;  %6258 = vrot.lane.b32.xlu0 %v6214_v1, %s9814_s17 }
 0xa4d   : > { %v6217_v40 = vmax.f32 %v6209_v6, 0.0 }
 0xa4e   : > { %v6216_v2 = vmax.f32 %v6208_v38, 0.0 }
 0xa4f   : > { %6264 = vrot.lane.b32.xlu1 %v6217_v40, %s9814_s17 }
 0xa50   : > { %v11130_v10 = vpack.c.bf16 %v6217_v40, %v6216_v2  ;;  %6262 = vrot.lane.b32.xlu0 %v6216_v2, %s9814_s17 }
 0xab5   : > { %v6253_v5 = vpop.permute.xlu1 %6252 }
 0xab6   : > { %6275 = vst.msk [vmem:[#allocation2 + $0x8] sm:$0xff] %vm5685_vm14, %v6253_v5  ;;  %v6251_v13 = vpop.permute.xlu0 %6250  ;;  %v6235_v5 = vld [vmem:[#allocation18 + $0x88] sm:$0xff] }
 0xab7   : > { %6274 = vst.msk [vmem:[#allocation2] sm:$0xff] %vm5685_vm14, %v6251_v13  ;;  %v6236_v13 = vld [vmem:[#allocation18 + $0x90] sm:$0xff] }
 0xab9   : > { %v6257_v16 = vpop.permute.xlu1 %6256 }
 0xaba   : > { %6277 = vst.msk [vmem:[#allocation2 + $0x18] sm:$0xff] %vm5685_vm14, %v6257_v16  ;;  %v6255_v20 = vpop.permute.xlu0 %6254  ;;  %v6237_v16 = vld [vmem:[#allocation18 + $0x98] sm:$0xff] }
 0xabb   : > { %6276 = vst.msk [vmem:[#allocation2 + $0x10] sm:$0xff] %vm5685_vm14, %v6255_v20  ;;  %v6238_v20 = vld [vmem:[#allocation18 + $0xa0] sm:$0xff] }
 0xabd   : > { %v6261_v23 = vpop.permute.xlu1 %6260  ;;  %v6283_v27 = vld [vmem:[#allocation2 + $0x8] sm:$0xff] }
 0xabe   : > { %6279 = vst.msk [vmem:[#allocation2 + $0x28] sm:$0xff] %vm5685_vm14, %v6261_v23  ;;  %v6259_v34 = vpop.permute.xlu0 %6258  ;;  %v6282_v28 = vld [vmem:[#allocation2] sm:$0xff]  ;;  %v6239_v23 = vld [vmem:[#allocation18 + $0xa8] sm:$0xff] }
 0xabf   : > { %6278 = vst.msk [vmem:[#allocation2 + $0x20] sm:$0xff] %vm5685_vm14, %v6259_v34  ;;  %v8808_v29 = vpack.c.bf16 %v6283_v27, %v6282_v28  ;;  %v9262_v8 = vpack.i.bf16 %v6283_v27, %v6282_v28  ;;  %v6240_v27 = vld [vmem:[#allocation18 + $0xb0] sm:$0xff]  ;;  %v6241_v34 = vld [vmem:[#allocation18 + $0xb8] sm:$0xff] }
 0xac1   : > { %8809 = vmatprep.subr.bf16.mxu1 %v8808_v29  ;;  %v6265_v48 = vpop.permute.xlu1 %6264  ;;  %9263 = vrot.lane.b32.xlu0 %v9262_v8, %s9817_s27  ;;  %v6285_v14 = vld [vmem:[#allocation2 + $0x18] sm:$0xff] }
 0xac2   : > { %6281 = vst.msk [vmem:[#allocation2 + $0x38] sm:$0xff] %vm5685_vm14, %v6265_v48  ;;  %8811 = vmatpush3.bf16.msra.mxu1 %v8808_v29  ;;  %v6263_v17 = vpop.permute.xlu0 %6262  ;;  %v6284_v33 = vld [vmem:[#allocation2 + $0x10] sm:$0xff] }
 0xac3   : > { %6280 = vst.msk [vmem:[#allocation2 + $0x30] sm:$0xff] %vm5685_vm14, %v6263_v17  ;;  %v8812_v26 = vpack.c.bf16 %v6285_v14, %v6284_v33  ;;  %v9267_v21 = vpack.i.bf16 %v6285_v14, %v6284_v33 }
 0xac5   : > { %8813 = vmatprep.subr.bf16.mxu1 %v8812_v26  ;;  %9268 = vrot.lane.b32.xlu1 %v9267_v21, %s9817_s27  ;;  %v6287_v30 = vld [vmem:[#allocation2 + $0x28] sm:$0xff] }
 0xac6   : > { %8815 = vmatpush3.bf16.msra.mxu1 %v8812_v26  ;;  %v6286_v35 = vld [vmem:[#allocation2 + $0x20] sm:$0xff] }
 0xac7   : > { %v8816_v0 = vpack.c.bf16 %v6287_v30, %v6286_v35  ;;  %v9272_v45 = vpack.i.bf16 %v6287_v30, %v6286_v35 }
 0xac9   : > { %8817 = vmatprep.subr.bf16.mxu1 %v8816_v0  ;;  %9273 = vrot.lane.b32.xlu0 %v9272_v45, %s9817_s27  ;;  %v6289_v31 = vld [vmem:[#allocation2 + $0x38] sm:$0xff] }
 0xaca   : > { %8819 = vmatpush3.bf16.msra.mxu1 %v8816_v0  ;;  %v6288_v54 = vld [vmem:[#allocation2 + $0x30] sm:$0xff] }
 0xacb   : > { %v9277_v9 = vpack.i.bf16 %v6289_v31, %v6288_v54  ;;  %v8820_v36 = vpack.c.bf16 %v6289_v31, %v6288_v54 }
 0xacd   : > { %6727 = vperm.xlu0 %9219, %v6717_v58   ;;  %9278 = vrot.lane.b32.xlu1 %v9277_v9, %s9817_s27 }
 0xace   : > { %8821 = vmatprep.subr.bf16.mxu1 %v8820_v36 }
 0xacf   : > { %8823 = vmatpush3.bf16.msra.mxu1 %v8820_v36 }
 0xad0   : > { %8825 = vmatprep.subr.bf16.mxu1 %v11118_v46 }
 0xad1   : > { %6737 = vperm.xlu0 %9219, %v6719_v41   ;;  %6732 = vperm.xlu1 %9221, %v6718_v42  }
 0xad2   : > { %8460 = vmatmul.mubr.msk.f32.vlgmr.msra.gmra.mrb[48].mxu1 %vm5734_vm15, %v6219_v44 }
 0xad3   : > { %8827 = vmatpush3.bf16.msra.mxu1 %v11118_v46  ;;  %8462 = vmatprep.mubr.msk.f32.mxu1 %vm5734_vm15, %v6220_v37  ;;  %v6228_v46 = vld [vmem:[#allocation18 + $0x50] sm:$0xff] }
 0xad4   : > { %8829 = vmatprep.subr.bf16.mxu1 %v11122_v62 }
 0xad5   : > { %6747 = vperm.xlu0 %9219, %v6721_v24   ;;  %6742 = vperm.xlu1 %9221, %v6720_v25  }
 0xad6   : > { %8463 = vmatmul.mubr.msk.f32.gmra.mrb[50].mxu1 %vm5734_vm15, %v6221_v15 }
 0xad7   : > { %8831 = vmatpush3.bf16.msra.mxu1 %v11122_v62  ;;  %8465 = vmatprep.mubr.msk.f32.mxu1 %vm5734_vm15, %v6222_v52 }
 0xad8   : > { %8833 = vmatprep.subr.bf16.mxu1 %v11126_v7 }
 0xad9   : > { %6757 = vperm.xlu0 %9219, %v6723_v53   ;;  %6752 = vperm.xlu1 %9221, %v6722_v18  }
 0xada   : > { %8466 = vmatmul.mubr.msk.f32.gmra.mrb[52].mxu1 %vm5734_vm15, %v6223_v59 }
 0xadb   : > { %8835 = vmatpush3.bf16.msra.mxu1 %v11126_v7  ;;  %8468 = vmatprep.mubr.msk.f32.mxu1 %vm5734_vm15, %v6224_v12 }
 0xadc   : > { %8837 = vmatprep.subr.bf16.mxu1 %v11130_v10 }
 0xadd   : > { %6762 = vperm.xlu1 %9221, %v6724_v60  }
 0xade   : > { %8469 = vmatmul.mubr.msk.f32.gmra.mrb[54].mxu1 %vm5734_vm15, %v6225_v55 }
 0xadf   : > { %8839 = vmatpush3.bf16.msra.mxu1 %v11130_v10  ;;  %8487 = vmatprep.mubr.msk.f32.mxu1 %vm5734_vm15, %v6226_v56 }
 0xae2   : > { %8488 = vmatmul.mubr.msk.f32.vlgmr.msra.gmra.mrb[48].mxu1 %vm5734_vm15, %v6227_v3 }
 0xae3   : > { %8490 = vmatprep.mubr.msk.f32.mxu1 %vm5734_vm15, %v6228_v46 }
 0xae6   : > { %8491 = vmatmul.mubr.msk.f32.gmra.mrb[50].mxu1 %vm5734_vm15, %v6229_v50  ;;  %v6781_v50 = vld [vmem:[#allocation21] sm:$0xff] }
 0xae7   : > { %8493 = vmatprep.mubr.msk.f32.mxu1 %vm5734_vm15, %v6230_v32 }
 0xaea   : > { %8494 = vmatmul.mubr.msk.f32.gmra.mrb[52].mxu1 %vm5734_vm15, %v6231_v49 }
 0xaeb   : > { %8496 = vmatprep.mubr.msk.f32.mxu1 %vm5734_vm15, %v6232_v51 }
 0xaee   : > { %8497 = vmatmul.mubr.msk.f32.gmra.mrb[54].mxu1 %vm5734_vm15, %v6233_v57 }
 0xaef   : > { %8515 = vmatprep.mubr.msk.f32.mxu1 %vm5734_vm15, %v6234_v39 }
 0xb33   : > { %v9264_v61 = vpop.permute.xlu0 %9263 }
 0xb34   : > { %v9266_v62 = vunpack.i.h.bf16 %v9264_v61  ;;  %v9265_v43 = vunpack.i.l.bf16 %v9264_v61 }
 0xb36   : > { %v8840_v22 = vpack.c.bf16 %v9266_v62, %v9265_v43 }
 0xb37   : > { %v9269_v63 = vpop.permute.xlu1 %9268 }
 0xb38   : > { %v9271_v1 = vunpack.i.h.bf16 %v9269_v63  ;;  %v9270_v47 = vunpack.i.l.bf16 %v9269_v63  ;;  %8841 = vmatprep.subr.bf16.mxu1 %v8840_v22 }
 0xb39   : > { %8843 = vmatpush3.bf16.msra.mxu1 %v8840_v22 }
 0xb3a   : > { %v8844_v4 = vpack.c.bf16 %v9271_v1, %v9270_v47 }
 0xb3b   : > { %v9274_v6 = vpop.permute.xlu0 %9273 }
 0xb3c   : > { %v9276_v19 = vunpack.i.h.bf16 %v9274_v6  ;;  %v9275_v7 = vunpack.i.l.bf16 %v9274_v6  ;;  %8845 = vmatprep.subr.bf16.mxu1 %v8844_v4 }
 0xb3d   : > { %8847 = vmatpush3.bf16.msra.mxu1 %v8844_v4 }
 0xb3e   : > { %v8848_v38 = vpack.c.bf16 %v9276_v19, %v9275_v7 }
 0xb3f   : > { %v9279_v40 = vpop.permute.xlu1 %9278 }
 0xb40   : > { %v9281_v2 = vunpack.i.h.bf16 %v9279_v40  ;;  %v9280_v10 = vunpack.i.l.bf16 %v9279_v40  ;;  %8849 = vmatprep.subr.bf16.mxu1 %v8848_v38 }
 0xb41   : > { %8851 = vmatpush3.bf16.msra.mxu1 %v8848_v38 }
 0xb42   : > { %v8852_v11 = vpack.c.bf16 %v9281_v2, %v9280_v10 }
 0xb44   : > { %8853 = vmatprep.subr.bf16.mxu1 %v8852_v11 }
 0xb45   : > { %8855 = vmatpush3.bf16.msra.mxu1 %v8852_v11 }
 0xb48   : > { %8516 = vmatmul.mubr.msk.f32.vlgmr.msra.gmra.mrb[48].mxu1 %vm5734_vm15, %v6235_v5 }
 0xb49   : > { %8518 = vmatprep.mubr.msk.f32.mxu1 %vm5734_vm15, %v6236_v13 }
 0xb4c   : > { %8519 = vmatmul.mubr.msk.f32.gmra.mrb[50].mxu1 %vm5734_vm15, %v6237_v16  ;;  %v6728_v29 = vpop.permute.xlu0 %6727 }
 0xb4d   : > { %8521 = vmatprep.mubr.msk.f32.mxu1 %vm5734_vm15, %v6238_v20 }
 0xb50   : > { %8522 = vmatmul.mubr.msk.f32.gmra.mrb[52].mxu1 %vm5734_vm15, %v6239_v23  ;;  %v6733_v28 = vpop.permute.xlu1 %6732  ;;  %v6738_v14 = vpop.permute.xlu0 %6737  ;;  %v6782_v23 = vld [vmem:[#allocation21 + $0x8] sm:$0x3] }
 0xb51   : > { %8524 = vmatprep.mubr.msk.f32.mxu1 %vm5734_vm15, %v6240_v27  ;;  %v6783_v27 = vld [vmem:[#allocation21 + $0x10] sm:$0xff] }
 0xb54   : > { %8525 = vmatmul.mubr.msk.f32.gmra.mrb[54].mxu1 %vm5734_vm15, %v6241_v34  ;;  %v6743_v8 = vpop.permute.xlu1 %6742  ;;  %v6748_v9 = vpop.permute.xlu0 %6747  ;;  %v6784_v34 = vld [vmem:[#allocation21 + $0x18] sm:$0x3] }
 0xb55   : > { %8543 = vmatprep.mubr.msk.f32.mxu1 %vm5734_vm15, %v6781_v50 }
 0xb58   : > { %v6753_v31 = vpop.permute.xlu1 %6752  ;;  %v6758_v59 = vpop.permute.xlu0 %6757 }
 0xb5c   : > { %v6763_v52 = vpop.permute.xlu1 %6762 }
 0xc1b   : > { %v8517_v48 = vpop.f32.mrb[48].mxu1 }
 0xc1c   : > { %v6766_v17 = vadd.f32 %v8517_v48, %v6733_v28  ;;  %v6670_v33 = vpop.f32.mrb[49].mxu1  ;;  %v6785_v28 = vld [vmem:[#allocation21 + $0x20] sm:$0xff] }
 0xc1d   : > { %v6765_v26 = vadd.f32 %v6728_v29, %v6670_v33 }
 0xc1e   : > { %v6774_v21 = vmax.f32 %v6766_v17, 0.0 }
 0xc1f   : > { %v6773_v30 = vmax.f32 %v6765_v26, 0.0  ;;  %v8520_v35 = vpop.f32.mrb[50].mxu1 }
 0xc20   : > { %v6768_v0 = vadd.f32 %v8520_v35, %v6743_v8  ;;  %6797 = vrot.lane.b32.xlu1 %v6774_v21, %s9814_s17  ;;  %v6680_v45 = vpop.f32.mrb[51].mxu1 }
 0xc21   : > { %v11178_v58 = vpack.c.bf16 %v6774_v21, %v6773_v30  ;;  %v6767_v54 = vadd.f32 %v6738_v14, %v6680_v45  ;;  %6795 = vrot.lane.b32.xlu0 %v6773_v30, %s9814_s17 }
 0xc22   : > { %v6776_v36 = vmax.f32 %v6768_v0, 0.0 }
 0xc23   : > { %v6775_v41 = vmax.f32 %v6767_v54, 0.0  ;;  %v8523_v42 = vpop.f32.mrb[52].mxu1 }
 0xc24   : > { %v6770_v44 = vadd.f32 %v8523_v42, %v6753_v31  ;;  %6801 = vrot.lane.b32.xlu1 %v6776_v36, %s9814_s17  ;;  %v6690_v37 = vpop.f32.mrb[53].mxu1 }
 0xc25   : > { %v11182_v24 = vpack.c.bf16 %v6776_v36, %v6775_v41  ;;  %v6769_v25 = vadd.f32 %v6748_v9, %v6690_v37  ;;  %6799 = vrot.lane.b32.xlu0 %v6775_v41, %s9814_s17  ;;  %v6786_v36 = vld [vmem:[#allocation21 + $0x28] sm:$0x3] }
 0xc26   : > { %v6778_v15 = vmax.f32 %v6770_v44, 0.0 }
 0xc27   : > { %v6777_v53 = vmax.f32 %v6769_v25, 0.0  ;;  %v8526_v18 = vpop.f32.mrb[54].mxu1 }
 0xc28   : > { %v6772_v12 = vadd.f32 %v8526_v18, %v6763_v52  ;;  %6805 = vrot.lane.b32.xlu1 %v6778_v15, %s9814_s17  ;;  %v6700_v60 = vpop.f32.mrb[55].mxu1 }
 0xc29   : > { %v8880_v55 = vpack.c.bf16 %v6778_v15, %v6777_v53  ;;  %v6771_v56 = vadd.f32 %v6758_v59, %v6700_v60  ;;  %6803 = vrot.lane.b32.xlu0 %v6777_v53, %s9814_s17 }
 0xc2a   : > { %v6780_v3 = vmax.f32 %v6772_v12, 0.0 }
 0xc2b   : > { %v6779_v46 = vmax.f32 %v6771_v56, 0.0 }
 0xc2c   : > { %6809 = vrot.lane.b32.xlu1 %v6780_v3, %s9814_s17 }
 0xc2d   : > { %v8884_v32 = vpack.c.bf16 %v6780_v3, %v6779_v46  ;;  %6807 = vrot.lane.b32.xlu0 %v6779_v46, %s9814_s17  ;;  %s11325_s17 = sld [smem:[#allocation37_spill]] }
 0xc33   : > { %s11218_s26 = scalar_lea.hbm %s11325_s17, %s7604_s30 }
 0xc92   : > { %v6798_v49 = vpop.permute.xlu1 %6797 }
 0xc93   : > { %6820 = vst.msk [vmem:[#allocation2 + $0x8] sm:$0xff] %vm5685_vm14, %v6798_v49  ;;  %v6796_v51 = vpop.permute.xlu0 %6795 }
 0xc94   : > { %6819 = vst.msk [vmem:[#allocation2] sm:$0xff] %vm5685_vm14, %v6796_v51 }
 0xc96   : > { %v6802_v57 = vpop.permute.xlu1 %6801 }
 0xc97   : > { %6822 = vst.msk [vmem:[#allocation2 + $0x18] sm:$0xff] %vm5685_vm14, %v6802_v57  ;;  %v6800_v39 = vpop.permute.xlu0 %6799 }
 0xc98   : > { %6821 = vst.msk [vmem:[#allocation2 + $0x10] sm:$0xff] %vm5685_vm14, %v6800_v39 }
 0xc9a   : > { %v6806_v61 = vpop.permute.xlu1 %6805  ;;  %v6828_v62 = vld [vmem:[#allocation2 + $0x8] sm:$0xff] }
 0xc9b   : > { %6824 = vst.msk [vmem:[#allocation2 + $0x28] sm:$0xff] %vm5685_vm14, %v6806_v61  ;;  %v6804_v43 = vpop.permute.xlu0 %6803  ;;  %v6827_v22 = vld [vmem:[#allocation2] sm:$0xff] }
 0xc9c   : > { %6823 = vst.msk [vmem:[#allocation2 + $0x20] sm:$0xff] %vm5685_vm14, %v6804_v43  ;;  %v9282_v63 = vpack.i.bf16 %v6828_v62, %v6827_v22  ;;  %v8856_v1 = vpack.c.bf16 %v6828_v62, %v6827_v22 }
 0xc9e   : > { %8857 = vmatprep.subr.bf16.mxu1 %v8856_v1  ;;  %v6810_v47 = vpop.permute.xlu1 %6809  ;;  %9283 = vrot.lane.b32.xlu0 %v9282_v63, %s9817_s27  ;;  %v6830_v4 = vld [vmem:[#allocation2 + $0x18] sm:$0xff] }
 0xc9f   : > { %6826 = vst.msk [vmem:[#allocation2 + $0x38] sm:$0xff] %vm5685_vm14, %v6810_v47  ;;  %8859 = vmatpush3.bf16.msra.mxu1 %v8856_v1  ;;  %v6808_v6 = vpop.permute.xlu0 %6807  ;;  %v6829_v19 = vld [vmem:[#allocation2 + $0x10] sm:$0xff] }
 0xca0   : > { %6825 = vst.msk [vmem:[#allocation2 + $0x30] sm:$0xff] %vm5685_vm14, %v6808_v6  ;;  %v9287_v7 = vpack.i.bf16 %v6830_v4, %v6829_v19  ;;  %v8860_v38 = vpack.c.bf16 %v6830_v4, %v6829_v19 }
 0xca2   : > { %8861 = vmatprep.subr.bf16.mxu1 %v8860_v38  ;;  %9288 = vrot.lane.b32.xlu1 %v9287_v7, %s9817_s27  ;;  %v6832_v40 = vld [vmem:[#allocation2 + $0x28] sm:$0xff] }
 0xca3   : > { %8863 = vmatpush3.bf16.msra.mxu1 %v8860_v38  ;;  %v6831_v2 = vld [vmem:[#allocation2 + $0x20] sm:$0xff] }
 0xca4   : > { %v9292_v10 = vpack.i.bf16 %v6832_v40, %v6831_v2  ;;  %v8864_v11 = vpack.c.bf16 %v6832_v40, %v6831_v2 }
 0xca6   : > { %8865 = vmatprep.subr.bf16.mxu1 %v8864_v11  ;;  %9293 = vrot.lane.b32.xlu0 %v9292_v10, %s9817_s27  ;;  %v6834_v5 = vld [vmem:[#allocation2 + $0x38] sm:$0xff] }
 0xca7   : > { %8867 = vmatpush3.bf16.msra.mxu1 %v8864_v11  ;;  %v6833_v13 = vld [vmem:[#allocation2 + $0x30] sm:$0xff] }
 0xca8   : > { %v9297_v16 = vpack.i.bf16 %v6834_v5, %v6833_v13  ;;  %v8868_v20 = vpack.c.bf16 %v6834_v5, %v6833_v13 }
 0xcaa   : > { %9298 = vrot.lane.b32.xlu1 %v9297_v16, %s9817_s27  ;;  %8869 = vmatprep.subr.bf16.mxu1 %v8868_v20  ;;  %s9704_s27 = scalar_lea.vmem %s11213_s20, 256 }
 0xcab   : > { %8871 = vmatpush3.bf16.msra.mxu1 %v8868_v20  ;;  %p9705_p2 = scmp.ne.s32.totalorder %s11213_s20, %s9704_s27  ;;  %p9712_p3 = scmp.lt.s32.totalorder %s9710_s2, %s9704_s27 }
 0xcac   : > { %8873 = vmatprep.subr.bf16.mxu1 %v11178_v58 }
 0xcad   : > { %p9706_p6 = pnand %p9705_p2, %p11326_p8  ;;  %p9713_p5 = por %p9712_p3, %p9711_p11 }
 0xcae   : > { %8544 = vmatmul.mubr.msk.f32.vlgmr.msra.gmra.mrb[56].mxu1 %vm5734_vm15, %v6782_v23 }
 0xcaf   : > { %8875 = vmatpush3.bf16.msra.mxu1 %v11178_v58  ;;  %8562 = vmatprep.mubr.msk.f32.mxu1 %vm5734_vm15, %v6783_v27  ;;  %p9707_p10 = pneg %p9706_p6 }
 0xcb0   : > { %8877 = vmatprep.subr.bf16.mxu1 %v11182_v24 }
 0xcb1   : > { %p9714_p9 = pnand %p9713_p5, %p9707_p10 }
 0xcb3   : > { %8879 = vmatpush3.bf16.msra.mxu1 %v11182_v24 }
 0xcb4   : > { %8881 = vmatprep.subr.bf16.mxu1 %v8880_v55 }
 0xcb7   : > { %8883 = vmatpush3.bf16.msra.mxu1 %v8880_v55 }
 0xcb8   : > { %8885 = vmatprep.subr.bf16.mxu1 %v8884_v32 }
 0xcbb   : > { %8887 = vmatpush3.bf16.msra.mxu1 %v8884_v32 }
 0xcbe   : > { %8563 = vmatmul.mubr.msk.f32.vlgmr.msra.gmra.mrb[56].mxu1 %vm5734_vm15, %v6784_v34 }
 0xcbf   : > { %8581 = vmatprep.mubr.msk.f32.mxu1 %vm5734_vm15, %v6785_v28 }
 0xd10   : > { %v9284_v29 = vpop.permute.xlu0 %9283 }
 0xd11   : > { %v9286_v8 = vunpack.i.h.bf16 %v9284_v29  ;;  %v9285_v48 = vunpack.i.l.bf16 %v9284_v29 }
 0xd13   : > { %v8888_v14 = vpack.c.bf16 %v9286_v8, %v9285_v48 }
 0xd14   : > { %v9289_v17 = vpop.permute.xlu1 %9288 }
 0xd15   : > { %v9291_v33 = vunpack.i.h.bf16 %v9289_v17  ;;  %v9290_v26 = vunpack.i.l.bf16 %v9289_v17  ;;  %8889 = vmatprep.subr.bf16.mxu1 %v8888_v14 }
 0xd16   : > { %8891 = vmatpush3.bf16.msra.mxu1 %v8888_v14 }
 0xd17   : > { %v8892_v21 = vpack.c.bf16 %v9291_v33, %v9290_v26 }
 0xd18   : > { %v9294_v30 = vpop.permute.xlu0 %9293 }
 0xd19   : > { %v9296_v35 = vunpack.i.h.bf16 %v9294_v30  ;;  %v9295_v0 = vunpack.i.l.bf16 %v9294_v30  ;;  %8893 = vmatprep.subr.bf16.mxu1 %v8892_v21 }
 0xd1a   : > { %8895 = vmatpush3.bf16.msra.mxu1 %v8892_v21 }
 0xd1b   : > { %v8896_v45 = vpack.c.bf16 %v9296_v35, %v9295_v0 }
 0xd1c   : > { %v9299_v31 = vpop.permute.xlu1 %9298 }
 0xd1d   : > { %v9301_v58 = vunpack.i.h.bf16 %v9299_v31  ;;  %v9300_v54 = vunpack.i.l.bf16 %v9299_v31  ;;  %8897 = vmatprep.subr.bf16.mxu1 %v8896_v45 }
 0xd1e   : > { %8899 = vmatpush3.bf16.msra.mxu1 %v8896_v45 }
 0xd1f   : > { %v8900_v9 = vpack.c.bf16 %v9301_v58, %v9300_v54 }
 0xd21   : > { %8901 = vmatprep.subr.bf16.mxu1 %v8900_v9 }
 0xd22   : > { %8903 = vmatpush3.bf16.msra.mxu1 %v8900_v9 }
 0xd25   : > { %8582 = vmatmul.mubr.msk.f32.vlgmr.msra.gmra.mrb[56].mxu1 %vm5734_vm15, %v6786_v36 }
 0xdf8   : > { %v8583_v41 = vpop.f32.mrb[56].mxu1 }
 0xdf9   : > { %7115 = vst.msk [vmem:[%s587_s1 + $0x8] sm:$0x3] %vm7114_vm0, %v8583_v41  ;;  %v7101_v42 = vpop.f32.mrb[57].mxu1 }
 0xdfa   : > { %7113 = vst.msk [vmem:[%s587_s1] sm:$0xff] %vm7112_vm1, %v7101_v42 }
 0xdfb   : > { %9717 = shalt.err (!%p9714_p9)
}
 0xdfc   : > { %s9718_s1 = scalar_lea.hbm %s11218_s26, 256  ;;  %s9722_s15 = scalar_lea.hbm %s11325_s17, 512 }
 0xdfd   : > { %p9719_p7 = scmp.ne.s32.totalorder %s11218_s26, %s9718_s1  ;;  %p9723_p1 = scmp.lt.u32.totalorder %s11218_s26, %s11325_s17 }
 0xdfe   : > { %p9724_p13 = scmp.lt.u32.totalorder %s9722_s15, %s9718_s1  ;;  %p9726_p2 = scmp.lt.u32.totalorder %s9718_s1, %s11218_s26 }
 0xdff   : > { %p9720_p4 = pnand %p9719_p7, %p11326_p8 }
 0xe00   : > { %p9725_p0 = por %p9724_p13, %p9723_p1 }
 0xe01   : > { %p9721_p12 = pneg %p9720_p4 }
 0xe02   : > { %p9727_p6 = por %p9726_p2, %p9725_p0 }
 0xe04   : > { %p9728_p10 = pnand %p9727_p6, %p9721_p12 }
 0xe06   : > { %9731 = shalt.err (!%p9728_p10)
}
 0xe07   : > { %s9819_s2 = smov 128   ;;  %s9820_s27 = smov 8  }
 0xe08   : > { %9074 = dma.vmem_to_hbm [thread:$0]  (%p11326_p8), %s11213_s20, 256, %s11218_s26, %s7117_s25, %s9819_s2, %s9819_s2, %s9820_s27  }
 0xe09 PF: > { %s7145_s30 = sand.u32 1, %s9782_s21   ;;  %p11327_p11 = scmp.ne.s32.totalorder %s11301_s12, 0 }
 0xe0a   : > { %p11328_p3 = scmp.ge.s32.totalorder %s9794_s24, 2  ;;  %s7146_s1 = scalar_lea.sflag [#allocation5], %s7145_s30 }
 0xe0c   : > { %p9115_p5 = pnand %p11328_p3, %p11327_p11 }
 0xe0e   : > { %9777 = dma.done.wait (!%p9115_p5), %s7146_s1, 256  }
 0xe0f   : > { %9779 = vsyncadd (!%p9115_p5), %s7146_s1, 4294967040  ;;  %p31_p9 = scmp.ge.s32.totalorder %s10180_s19, 4   ;;  %s11329_s21 = smov %s9786_s22 }
 0xe10   : > { %s11330_s22 = smov %s9790_s23  ;;  %s11331_s23 = smov %s10192_s16 }
 0xe11   : > { %s11332_s24 = smov %s10180_s19  ;;  %33 = sbr.rel (!%p31_p9) target bundleno = 16 (0x10), region = 157 }
 0xe18   :  { %7151 = vsyncpa [#allocation4], 1 }
 0xe19   :  { %7153 = vsyncpa [#allocation4 + $0x1], 1 }
 0xe1a   :  { %7154 = vsyncpa [#allocation7], 1 }
 0xe1b   :  { %7155 = vsyncpa [#allocation10], 1 }
 0xe1c   :  { %7156 = vsyncpa [#allocation13], 1 }
 0xe1d   :  { %7157 = vsyncpa [#allocation16], 1 }
 0xe1e   :  { %7158 = vsyncpa [#allocation19], 1 }
 0xe1f   :  { %7159 = vsyncpa [#allocation22], 1 }
 0xe20   :  { %7160 = vsyncpa [#allocation5], 1 }
 0xe21   :  { %7162 = vsyncpa [#allocation5 + $0x1], 1 }

</bundles_post_ra>
